<compile_context>
chip_gen: v7x
topology: tpu7x:2x2x1
jax: 0.10.0
libtpu: 0.0.40
codegen_flags: <defaults>
</compile_context>

<pallas_src>
import math

import jax
import jax.numpy as jnp
import numpy as np
from jax import lax
from jax.experimental import pallas as pl
from jax.experimental.pallas import tpu as pltpu


def gru_seq_kernel(x_ref, w_ih_ref, w_hh_ref, b_i_ref, b_hn_ref, h0_ref,
                   out_ref, gi_ref):
    """Whole-sequence GRU, single invocation (no grid).

    x_ref   : (T, H)  f32  pre-gathered embeddings emb[tokens]
    w_ih_ref: (H, 3H) bf16 input->hidden weights  (pre-transposed at init)
    w_hh_ref: (H, 3H) bf16 hidden->hidden weights (pre-transposed at init)
    b_i_ref : (1, 3H) f32  folded bias [b_ir+b_hr, b_iz+b_hz, b_in]
    b_hn_ref: (1, H)  f32  hidden-side bias of the 'n' gate (kept separate)
    h0_ref  : (1, H)  f32  initial hidden state
    out_ref : (T, H)  f32  per-step GRU outputs (dense output slab)
    gi_ref  : (T, 3H) f32  VMEM scratch for the batched GI pre-activations
    """
    T, H = out_ref.shape

    # ---- Prologue: batched input->hidden matmul for ALL timesteps (M=T). ----
    # This is the only matmul with a decent M; it is off the serial h->h path.
    gi_ref[...] = (
        jnp.dot(x_ref[...].astype(w_ih_ref.dtype), w_ih_ref[...],
                preferred_element_type=jnp.float32) + b_i_ref[...])

    w_hh = w_hh_ref[...]                      # resident bf16 (H, 3H)
    b_hn = b_hn_ref[...]                      # (1, H) f32

    # ---- Serial recurrence: per step only h @ W_hh + gate math. ----
    def step(t, h):
        gh = jnp.dot(h.astype(w_hh.dtype), w_hh,
                     preferred_element_type=jnp.float32)        # (1, 3H)
        g = gi_ref[pl.ds(t, 1), :]                              # (1, 3H)
        # H = 256 -> gate slice boundaries sit on 128-lane multiples.
        r = jax.nn.sigmoid(g[:, 0:H] + gh[:, 0:H])
        z = jax.nn.sigmoid(g[:, H:2 * H] + gh[:, H:2 * H])
        n = jnp.tanh(g[:, 2 * H:3 * H] + r * (gh[:, 2 * H:3 * H] + b_hn))
        h_new = n + z * (h - n)               # == (1 - z) * n + z * h
        out_ref[pl.ds(t, 1), :] = h_new.astype(out_ref.dtype)
        return h_new

    lax.fori_loop(0, T, step, h0_ref[...], unroll=True)


def encoder_rnn_forward(tokens, hidden, params):
    """Fused EncoderRNN pass over T tokens (one pallas_call total).

    tokens: (T,) int32 token ids
    hidden: (1, 1, H) f32 initial hidden state
    returns (output (T, 1, H), hidden (1, 1, H))  [PyTorch GRU convention]
    """
    emb = params["embedding"]                 # (V, H) f32
    V, H = emb.shape
    T = int(tokens.shape[0])

    # Bounds-safety: OOB ids would silently gather a wrong row.
    tokens = jnp.clip(tokens.astype(jnp.int32), 0, V - 1)
    # Tiny table (V*H*4 bytes): one XLA gather in the wrapper replaces T
    # per-step (1, H) HBM row-DMAs.
    x = jnp.take(emb, tokens, axis=0).astype(jnp.float32)        # (T, H)
    h0 = hidden.reshape(1, H).astype(jnp.float32)

    outs = pl.pallas_call(
        gru_seq_kernel,
        out_shape=jax.ShapeDtypeStruct((T, H), jnp.float32),
        in_specs=[pl.BlockSpec(memory_space=pltpu.MemorySpace.VMEM)] * 6,
        out_specs=pl.BlockSpec(memory_space=pltpu.MemorySpace.VMEM),
        scratch_shapes=[pltpu.VMEM((T, 3 * H), jnp.float32)],
        compiler_params=pltpu.CompilerParams(
            # Resident set is ~1 MiB; keep the budget honest (v7x: 64 MiB VMEM).
            vmem_limit_bytes=8 * 1024 * 1024,
        ),
    )(x, params["w_ih_t"], params["w_hh_t"], params["b_i"],
      params["b_hn"], h0)

    output = outs.reshape(T, 1, H)
    hidden_out = outs[T - 1].reshape(1, 1, H)
    return output, hidden_out


def encoder_rnn_step(token, hidden, params):
    """Exact analogue of EncoderRNN.forward(input, hidden): one token."""
    output, hidden_out = encoder_rnn_forward(token.reshape(1), hidden, params)
    return output, hidden_out                 # (1, 1, H), (1, 1, H)


def encoder_rnn_reference(tokens, hidden, params):
    """Pure-JAX reference with identical numerics (bf16 matmul operands,
    f32 accumulation, folded biases — folding is mathematically exact)."""
    emb = params["embedding"]
    H = emb.shape[1]
    w_ih_t, w_hh_t = params["w_ih_t"], params["w_hh_t"]
    b_i, b_hn = params["b_i"], params["b_hn"]
    tokens = jnp.clip(tokens.astype(jnp.int32), 0, emb.shape[0] - 1)
    x = jnp.take(emb, tokens, axis=0).astype(jnp.float32)
    gi = jnp.dot(x.astype(w_ih_t.dtype), w_ih_t,
                 preferred_element_type=jnp.float32) + b_i
    h = hidden.reshape(1, H).astype(jnp.float32)
    outs = []
    for t in range(int(tokens.shape[0])):
        gh = jnp.dot(h.astype(w_hh_t.dtype), w_hh_t,
                     preferred_element_type=jnp.float32)
        g = gi[t:t + 1, :]
        r = jax.nn.sigmoid(g[:, 0:H] + gh[:, 0:H])
        z = jax.nn.sigmoid(g[:, H:2 * H] + gh[:, H:2 * H])
        n = jnp.tanh(g[:, 2 * H:3 * H] + r * (gh[:, 2 * H:3 * H] + b_hn))
        h = n + z * (h - n)
        outs.append(h)
    output = jnp.stack(outs, axis=0).reshape(-1, 1, H)
    return output, h.reshape(1, 1, H)


def init_params(key, input_size, hidden_size):
    """Synthetic params matching torch shapes: Embedding(V, H), GRU(H, H).
    Weights pre-transposed to (H, 3H), cast to bf16; b_hr/b_hz folded into
    the input bias; b_hn kept separate."""
    k_emb, k_wih, k_whh, k_bih, k_bhh = jax.random.split(key, 5)
    H = hidden_size
    bound = 1.0 / math.sqrt(H)
    w_ih = jax.random.uniform(k_wih, (3 * H, H), minval=-bound, maxval=bound,
                              dtype=jnp.float32)
    w_hh = jax.random.uniform(k_whh, (3 * H, H), minval=-bound, maxval=bound,
                              dtype=jnp.float32)
    b_ih = jax.random.uniform(k_bih, (3 * H,), minval=-bound, maxval=bound,
                              dtype=jnp.float32)
    b_hh = jax.random.uniform(k_bhh, (3 * H,), minval=-bound, maxval=bound,
                              dtype=jnp.float32)
    # Fold b_hr, b_hz into the input bias (exact); keep b_hn separate because
    # it sits inside the r * (...) term.
    b_fold = b_ih + jnp.concatenate(
        [b_hh[0:H], b_hh[H:2 * H], jnp.zeros((H,), jnp.float32)])
    return {
        "embedding": jax.random.normal(k_emb, (input_size, H),
                                       dtype=jnp.float32),
        "w_ih_t": w_ih.T.astype(jnp.bfloat16),          # (H, 3H)
        "w_hh_t": w_hh.T.astype(jnp.bfloat16),          # (H, 3H)
        "b_i": b_fold.reshape(1, 3 * H),                 # (1, 3H) f32
        "b_hn": b_hh[2 * H:3 * H].reshape(1, H),         # (1, H)  f32
    }


if __name__ == "__main__":
    input_size = 20        # small synthetic vocabulary
    hidden_size = 256      # matches the module's hidden_size (lane-aligned)
    seq_len = 8

    key = jax.random.PRNGKey(0)
    params = init_params(key, input_size, hidden_size)

    tokens = jax.random.randint(jax.random.PRNGKey(1), (seq_len,), 0,
                                input_size, dtype=jnp.int32)
    hidden = jnp.zeros((1, 1, hidden_size), dtype=jnp.float32)   # initHidden()

    # Fused whole-sequence pass: one pallas_call, in-kernel time loop.
    out, hid = encoder_rnn_forward(tokens, hidden, params)
    out = jax.block_until_ready(out)
    hid = jax.block_until_ready(hid)

    out_ref, hid_ref = encoder_rnn_reference(tokens, hidden, params)
    assert out.shape == (seq_len, 1, hidden_size)
    assert hid.shape == (1, 1, hidden_size)
    # NOTE: tight tolerance holds because the reference uses the same bf16
    # weights; vs. a pure-f32 PyTorch GRU expect ~1e-2 relative differences.
    np.testing.assert_allclose(np.asarray(out), np.asarray(out_ref),
                               rtol=1e-4, atol=1e-4)
    np.testing.assert_allclose(np.asarray(hid), np.asarray(hid_ref),
                               rtol=1e-4, atol=1e-4)

    # Single-step call, exactly mirroring EncoderRNN.forward(input, hidden).
    out1, hid1 = encoder_rnn_step(tokens[0:1], hidden, params)
    out1 = jax.block_until_ready(out1)
    hid1 = jax.block_until_ready(hid1)
    out1_ref, hid1_ref = encoder_rnn_reference(tokens[0:1], hidden, params)
    assert out1.shape == (1, 1, hidden_size) and hid1.shape == (1, 1, hidden_size)
    np.testing.assert_allclose(np.asarray(out1), np.asarray(out1_ref),
                               rtol=1e-4, atol=1e-4)
    np.testing.assert_allclose(np.asarray(hid1), np.asarray(hid1_ref),
                               rtol=1e-4, atol=1e-4)

    print("KERNEL_OK")
</pallas_src>

<mosaic_0001>
module attributes {stable_mosaic.version = 11 : i64} {
  func.func @gru_seq_kernel(%arg0: memref<8x256xf32, #tpu.memory_space<vmem>>, %arg1: memref<256x768xbf16, #tpu.memory_space<vmem>>, %arg2: memref<256x768xbf16, #tpu.memory_space<vmem>>, %arg3: memref<1x768xf32, #tpu.memory_space<vmem>>, %arg4: memref<1x256xf32, #tpu.memory_space<vmem>>, %arg5: memref<1x256xf32, #tpu.memory_space<vmem>>, %arg6: memref<8x256xf32, #tpu.memory_space<vmem>>, %arg7: memref<8x768xf32, #tpu.memory_space<vmem>>) attributes {dimension_semantics = [], scalar_prefetch = 0 : i64, scratch_operands = 1 : i64, tpu.core_type = #tpu.core_type<tc>} {
    %c0 = arith.constant 0 : index
    %c0_0 = arith.constant 0 : index
    %0 = vector.load %arg0[%c0, %c0_0] : memref<8x256xf32, #tpu.memory_space<vmem>>, vector<8x256xf32>
    %1 = arith.truncf %0 : vector<8x256xf32> to vector<8x256xbf16>
    %c0_1 = arith.constant 0 : index
    %c0_2 = arith.constant 0 : index
    %2 = vector.load %arg1[%c0_1, %c0_2] : memref<256x768xbf16, #tpu.memory_space<vmem>>, vector<256x768xbf16>
    %cst = arith.constant dense<0.000000e+00> : vector<8x768xf32>
    %3 = tpu.matmul %1, %2, %cst {dimension_numbers = #tpu.dot_dimension_numbers<[1], [0], [0], [1], [0, 0, 1, 1], [], []>} : vector<8x256xbf16>, vector<256x768xbf16>, vector<8x768xf32> -> vector<8x768xf32>
    %c0_3 = arith.constant 0 : index
    %c0_4 = arith.constant 0 : index
    %4 = vector.load %arg3[%c0_3, %c0_4] : memref<1x768xf32, #tpu.memory_space<vmem>>, vector<1x768xf32>
    %5 = vector.broadcast %4 : vector<1x768xf32> to vector<8x768xf32>
    %6 = arith.addf %3, %5 : vector<8x768xf32>
    %c0_5 = arith.constant 0 : index
    %c0_6 = arith.constant 0 : index
    %7 = vector.load %arg7[%c0_5, %c0_6] : memref<8x768xf32, #tpu.memory_space<vmem>>, vector<8x768xf32>
    tpu.vector_store %arg7[%c0_5, %c0_6], %6 {strides = array<i32>} : memref<8x768xf32, #tpu.memory_space<vmem>>, vector<8x768xf32>,
    %c0_7 = arith.constant 0 : index
    %c0_8 = arith.constant 0 : index
    %8 = vector.load %arg2[%c0_7, %c0_8] : memref<256x768xbf16, #tpu.memory_space<vmem>>, vector<256x768xbf16>
    %c0_9 = arith.constant 0 : index
    %c0_10 = arith.constant 0 : index
    %9 = vector.load %arg4[%c0_9, %c0_10] : memref<1x256xf32, #tpu.memory_space<vmem>>, vector<1x256xf32>
    %c0_11 = arith.constant 0 : index
    %c0_12 = arith.constant 0 : index
    %10 = vector.load %arg5[%c0_11, %c0_12] : memref<1x256xf32, #tpu.memory_space<vmem>>, vector<1x256xf32>
    %c0_i32 = arith.constant 0 : i32
    %11 = arith.truncf %10 : vector<1x256xf32> to vector<1x256xbf16>
    %cst_13 = arith.constant dense<0.000000e+00> : vector<1x768xf32>
    %12 = tpu.matmul %11, %8, %cst_13 {dimension_numbers = #tpu.dot_dimension_numbers<[1], [0], [0], [1], [0, 0, 1, 1], [], []>} : vector<1x256xbf16>, vector<256x768xbf16>, vector<1x768xf32> -> vector<1x768xf32>
    %13 = arith.index_cast %c0_i32 : i32 to index
    %c0_14 = arith.constant 0 : index
    %14 = vector.load %arg7[%13, %c0_14] : memref<8x768xf32, #tpu.memory_space<vmem>>, vector<1x768xf32>
    %15 = vector.extract_strided_slice %14 {offsets = [0, 0], sizes = [1, 256], strides = [1, 1]} : vector<1x768xf32> to vector<1x256xf32>
    %16 = vector.extract_strided_slice %12 {offsets = [0, 0], sizes = [1, 256], strides = [1, 1]} : vector<1x768xf32> to vector<1x256xf32>
    %17 = arith.addf %15, %16 : vector<1x256xf32>
    %18 = arith.negf %17 : vector<1x256xf32>
    %19 = math.exp %18 : vector<1x256xf32>
    %cst_15 = arith.constant 1.000000e+00 : f32
    %20 = vector.broadcast %cst_15 : f32 to vector<1x256xf32>
    %21 = arith.addf %20, %19 : vector<1x256xf32>
    %22 = arith.divf %20, %21 : vector<1x256xf32>
    %23 = vector.extract_strided_slice %14 {offsets = [0, 256], sizes = [1, 256], strides = [1, 1]} : vector<1x768xf32> to vector<1x256xf32>
    %24 = vector.extract_strided_slice %12 {offsets = [0, 256], sizes = [1, 256], strides = [1, 1]} : vector<1x768xf32> to vector<1x256xf32>
    %25 = arith.addf %23, %24 : vector<1x256xf32>
    %26 = arith.negf %25 : vector<1x256xf32>
    %27 = math.exp %26 : vector<1x256xf32>
    %cst_16 = arith.constant 1.000000e+00 : f32
    %28 = vector.broadcast %cst_16 : f32 to vector<1x256xf32>
    %29 = arith.addf %28, %27 : vector<1x256xf32>
    %30 = arith.divf %28, %29 : vector<1x256xf32>
    %31 = vector.extract_strided_slice %14 {offsets = [0, 512], sizes = [1, 256], strides = [1, 1]} : vector<1x768xf32> to vector<1x256xf32>
    %32 = vector.extract_strided_slice %12 {offsets = [0, 512], sizes = [1, 256], strides = [1, 1]} : vector<1x768xf32> to vector<1x256xf32>
    %33 = arith.addf %32, %9 : vector<1x256xf32>
    %34 = arith.mulf %22, %33 : vector<1x256xf32>
    %35 = arith.addf %31, %34 : vector<1x256xf32>
    %36 = math.tanh %35 : vector<1x256xf32>
    %37 = arith.subf %10, %36 : vector<1x256xf32>
    %38 = arith.mulf %30, %37 : vector<1x256xf32>
    %39 = arith.addf %36, %38 : vector<1x256xf32>
    %40 = arith.index_cast %c0_i32 : i32 to index
    %c0_17 = arith.constant 0 : index
    %41 = vector.load %arg6[%40, %c0_17] : memref<8x256xf32, #tpu.memory_space<vmem>>, vector<1x256xf32>
    tpu.vector_store %arg6[%40, %c0_17], %39 {strides = array<i32>} : memref<8x256xf32, #tpu.memory_space<vmem>>, vector<1x256xf32>,
    %c1_i32 = arith.constant 1 : i32
    %42 = arith.truncf %39 : vector<1x256xf32> to vector<1x256xbf16>
    %cst_18 = arith.constant dense<0.000000e+00> : vector<1x768xf32>
    %43 = tpu.matmul %42, %8, %cst_18 {dimension_numbers = #tpu.dot_dimension_numbers<[1], [0], [0], [1], [0, 0, 1, 1], [], []>} : vector<1x256xbf16>, vector<256x768xbf16>, vector<1x768xf32> -> vector<1x768xf32>
    %44 = arith.index_cast %c1_i32 : i32 to index
    %c0_19 = arith.constant 0 : index
    %45 = vector.load %arg7[%44, %c0_19] : memref<8x768xf32, #tpu.memory_space<vmem>>, vector<1x768xf32>
    %46 = vector.extract_strided_slice %45 {offsets = [0, 0], sizes = [1, 256], strides = [1, 1]} : vector<1x768xf32> to vector<1x256xf32>
    %47 = vector.extract_strided_slice %43 {offsets = [0, 0], sizes = [1, 256], strides = [1, 1]} : vector<1x768xf32> to vector<1x256xf32>
    %48 = arith.addf %46, %47 : vector<1x256xf32>
    %49 = arith.negf %48 : vector<1x256xf32>
    %50 = math.exp %49 : vector<1x256xf32>
    %cst_20 = arith.constant 1.000000e+00 : f32
    %51 = vector.broadcast %cst_20 : f32 to vector<1x256xf32>
    %52 = arith.addf %51, %50 : vector<1x256xf32>
    %53 = arith.divf %51, %52 : vector<1x256xf32>
    %54 = vector.extract_strided_slice %45 {offsets = [0, 256], sizes = [1, 256], strides = [1, 1]} : vector<1x768xf32> to vector<1x256xf32>
    %55 = vector.extract_strided_slice %43 {offsets = [0, 256], sizes = [1, 256], strides = [1, 1]} : vector<1x768xf32> to vector<1x256xf32>
    %56 = arith.addf %54, %55 : vector<1x256xf32>
    %57 = arith.negf %56 : vector<1x256xf32>
    %58 = math.exp %57 : vector<1x256xf32>
    %cst_21 = arith.constant 1.000000e+00 : f32
    %59 = vector.broadcast %cst_21 : f32 to vector<1x256xf32>
    %60 = arith.addf %59, %58 : vector<1x256xf32>
    %61 = arith.divf %59, %60 : vector<1x256xf32>
    %62 = vector.extract_strided_slice %45 {offsets = [0, 512], sizes = [1, 256], strides = [1, 1]} : vector<1x768xf32> to vector<1x256xf32>
    %63 = vector.extract_strided_slice %43 {offsets = [0, 512], sizes = [1, 256], strides = [1, 1]} : vector<1x768xf32> to vector<1x256xf32>
    %64 = arith.addf %63, %9 : vector<1x256xf32>
    %65 = arith.mulf %53, %64 : vector<1x256xf32>
    %66 = arith.addf %62, %65 : vector<1x256xf32>
    %67 = math.tanh %66 : vector<1x256xf32>
    %68 = arith.subf %39, %67 : vector<1x256xf32>
    %69 = arith.mulf %61, %68 : vector<1x256xf32>
    %70 = arith.addf %67, %69 : vector<1x256xf32>
    %71 = arith.index_cast %c1_i32 : i32 to index
    %c0_22 = arith.constant 0 : index
    %72 = vector.load %arg6[%71, %c0_22] : memref<8x256xf32, #tpu.memory_space<vmem>>, vector<1x256xf32>
    tpu.vector_store %arg6[%71, %c0_22], %70 {strides = array<i32>} : memref<8x256xf32, #tpu.memory_space<vmem>>, vector<1x256xf32>,
    %c2_i32 = arith.constant 2 : i32
    %73 = arith.truncf %70 : vector<1x256xf32> to vector<1x256xbf16>
    %cst_23 = arith.constant dense<0.000000e+00> : vector<1x768xf32>
    %74 = tpu.matmul %73, %8, %cst_23 {dimension_numbers = #tpu.dot_dimension_numbers<[1], [0], [0], [1], [0, 0, 1, 1], [], []>} : vector<1x256xbf16>, vector<256x768xbf16>, vector<1x768xf32> -> vector<1x768xf32>
    %75 = arith.index_cast %c2_i32 : i32 to index
    %c0_24 = arith.constant 0 : index
    %76 = vector.load %arg7[%75, %c0_24] : memref<8x768xf32, #tpu.memory_space<vmem>>, vector<1x768xf32>
    %77 = vector.extract_strided_slice %76 {offsets = [0, 0], sizes = [1, 256], strides = [1, 1]} : vector<1x768xf32> to vector<1x256xf32>
    %78 = vector.extract_strided_slice %74 {offsets = [0, 0], sizes = [1, 256], strides = [1, 1]} : vector<1x768xf32> to vector<1x256xf32>
    %79 = arith.addf %77, %78 : vector<1x256xf32>
    %80 = arith.negf %79 : vector<1x256xf32>
    %81 = math.exp %80 : vector<1x256xf32>
    %cst_25 = arith.constant 1.000000e+00 : f32
    %82 = vector.broadcast %cst_25 : f32 to vector<1x256xf32>
    %83 = arith.addf %82, %81 : vector<1x256xf32>
    %84 = arith.divf %82, %83 : vector<1x256xf32>
    %85 = vector.extract_strided_slice %76 {offsets = [0, 256], sizes = [1, 256], strides = [1, 1]} : vector<1x768xf32> to vector<1x256xf32>
    %86 = vector.extract_strided_slice %74 {offsets = [0, 256], sizes = [1, 256], strides = [1, 1]} : vector<1x768xf32> to vector<1x256xf32>
    %87 = arith.addf %85, %86 : vector<1x256xf32>
    %88 = arith.negf %87 : vector<1x256xf32>
    %89 = math.exp %88 : vector<1x256xf32>
    %cst_26 = arith.constant 1.000000e+00 : f32
    %90 = vector.broadcast %cst_26 : f32 to vector<1x256xf32>
    %91 = arith.addf %90, %89 : vector<1x256xf32>
    %92 = arith.divf %90, %91 : vector<1x256xf32>
    %93 = vector.extract_strided_slice %76 {offsets = [0, 512], sizes = [1, 256], strides = [1, 1]} : vector<1x768xf32> to vector<1x256xf32>
    %94 = vector.extract_strided_slice %74 {offsets = [0, 512], sizes = [1, 256], strides = [1, 1]} : vector<1x768xf32> to vector<1x256xf32>
    %95 = arith.addf %94, %9 : vector<1x256xf32>
    %96 = arith.mulf %84, %95 : vector<1x256xf32>
    %97 = arith.addf %93, %96 : vector<1x256xf32>
    %98 = math.tanh %97 : vector<1x256xf32>
    %99 = arith.subf %70, %98 : vector<1x256xf32>
    %100 = arith.mulf %92, %99 : vector<1x256xf32>
    %101 = arith.addf %98, %100 : vector<1x256xf32>
    %102 = arith.index_cast %c2_i32 : i32 to index
    %c0_27 = arith.constant 0 : index
    %103 = vector.load %arg6[%102, %c0_27] : memref<8x256xf32, #tpu.memory_space<vmem>>, vector<1x256xf32>
    tpu.vector_store %arg6[%102, %c0_27], %101 {strides = array<i32>} : memref<8x256xf32, #tpu.memory_space<vmem>>, vector<1x256xf32>,
    %c3_i32 = arith.constant 3 : i32
    %104 = arith.truncf %101 : vector<1x256xf32> to vector<1x256xbf16>
    %cst_28 = arith.constant dense<0.000000e+00> : vector<1x768xf32>
    %105 = tpu.matmul %104, %8, %cst_28 {dimension_numbers = #tpu.dot_dimension_numbers<[1], [0], [0], [1], [0, 0, 1, 1], [], []>} : vector<1x256xbf16>, vector<256x768xbf16>, vector<1x768xf32> -> vector<1x768xf32>
    %106 = arith.index_cast %c3_i32 : i32 to index
    %c0_29 = arith.constant 0 : index
    %107 = vector.load %arg7[%106, %c0_29] : memref<8x768xf32, #tpu.memory_space<vmem>>, vector<1x768xf32>
    %108 = vector.extract_strided_slice %107 {offsets = [0, 0], sizes = [1, 256], strides = [1, 1]} : vector<1x768xf32> to vector<1x256xf32>
    %109 = vector.extract_strided_slice %105 {offsets = [0, 0], sizes = [1, 256], strides = [1, 1]} : vector<1x768xf32> to vector<1x256xf32>
    %110 = arith.addf %108, %109 : vector<1x256xf32>
    %111 = arith.negf %110 : vector<1x256xf32>
    %112 = math.exp %111 : vector<1x256xf32>
    %cst_30 = arith.constant 1.000000e+00 : f32
    %113 = vector.broadcast %cst_30 : f32 to vector<1x256xf32>
    %114 = arith.addf %113, %112 : vector<1x256xf32>
    %115 = arith.divf %113, %114 : vector<1x256xf32>
    %116 = vector.extract_strided_slice %107 {offsets = [0, 256], sizes = [1, 256], strides = [1, 1]} : vector<1x768xf32> to vector<1x256xf32>
    %117 = vector.extract_strided_slice %105 {offsets = [0, 256], sizes = [1, 256], strides = [1, 1]} : vector<1x768xf32> to vector<1x256xf32>
    %118 = arith.addf %116, %117 : vector<1x256xf32>
    %119 = arith.negf %118 : vector<1x256xf32>
    %120 = math.exp %119 : vector<1x256xf32>
    %cst_31 = arith.constant 1.000000e+00 : f32
    %121 = vector.broadcast %cst_31 : f32 to vector<1x256xf32>
    %122 = arith.addf %121, %120 : vector<1x256xf32>
    %123 = arith.divf %121, %122 : vector<1x256xf32>
    %124 = vector.extract_strided_slice %107 {offsets = [0, 512], sizes = [1, 256], strides = [1, 1]} : vector<1x768xf32> to vector<1x256xf32>
    %125 = vector.extract_strided_slice %105 {offsets = [0, 512], sizes = [1, 256], strides = [1, 1]} : vector<1x768xf32> to vector<1x256xf32>
    %126 = arith.addf %125, %9 : vector<1x256xf32>
    %127 = arith.mulf %115, %126 : vector<1x256xf32>
    %128 = arith.addf %124, %127 : vector<1x256xf32>
    %129 = math.tanh %128 : vector<1x256xf32>
    %130 = arith.subf %101, %129 : vector<1x256xf32>
    %131 = arith.mulf %123, %130 : vector<1x256xf32>
    %132 = arith.addf %129, %131 : vector<1x256xf32>
    %133 = arith.index_cast %c3_i32 : i32 to index
    %c0_32 = arith.constant 0 : index
    %134 = vector.load %arg6[%133, %c0_32] : memref<8x256xf32, #tpu.memory_space<vmem>>, vector<1x256xf32>
    tpu.vector_store %arg6[%133, %c0_32], %132 {strides = array<i32>} : memref<8x256xf32, #tpu.memory_space<vmem>>, vector<1x256xf32>,
    %c4_i32 = arith.constant 4 : i32
    %135 = arith.truncf %132 : vector<1x256xf32> to vector<1x256xbf16>
    %cst_33 = arith.constant dense<0.000000e+00> : vector<1x768xf32>
    %136 = tpu.matmul %135, %8, %cst_33 {dimension_numbers = #tpu.dot_dimension_numbers<[1], [0], [0], [1], [0, 0, 1, 1], [], []>} : vector<1x256xbf16>, vector<256x768xbf16>, vector<1x768xf32> -> vector<1x768xf32>
    %137 = arith.index_cast %c4_i32 : i32 to index
    %c0_34 = arith.constant 0 : index
    %138 = vector.load %arg7[%137, %c0_34] : memref<8x768xf32, #tpu.memory_space<vmem>>, vector<1x768xf32>
    %139 = vector.extract_strided_slice %138 {offsets = [0, 0], sizes = [1, 256], strides = [1, 1]} : vector<1x768xf32> to vector<1x256xf32>
    %140 = vector.extract_strided_slice %136 {offsets = [0, 0], sizes = [1, 256], strides = [1, 1]} : vector<1x768xf32> to vector<1x256xf32>
    %141 = arith.addf %139, %140 : vector<1x256xf32>
    %142 = arith.negf %141 : vector<1x256xf32>
    %143 = math.exp %142 : vector<1x256xf32>
    %cst_35 = arith.constant 1.000000e+00 : f32
    %144 = vector.broadcast %cst_35 : f32 to vector<1x256xf32>
    %145 = arith.addf %144, %143 : vector<1x256xf32>
    %146 = arith.divf %144, %145 : vector<1x256xf32>
    %147 = vector.extract_strided_slice %138 {offsets = [0, 256], sizes = [1, 256], strides = [1, 1]} : vector<1x768xf32> to vector<1x256xf32>
    %148 = vector.extract_strided_slice %136 {offsets = [0, 256], sizes = [1, 256], strides = [1, 1]} : vector<1x768xf32> to vector<1x256xf32>
    %149 = arith.addf %147, %148 : vector<1x256xf32>
    %150 = arith.negf %149 : vector<1x256xf32>
    %151 = math.exp %150 : vector<1x256xf32>
    %cst_36 = arith.constant 1.000000e+00 : f32
    %152 = vector.broadcast %cst_36 : f32 to vector<1x256xf32>
    %153 = arith.addf %152, %151 : vector<1x256xf32>
    %154 = arith.divf %152, %153 : vector<1x256xf32>
    %155 = vector.extract_strided_slice %138 {offsets = [0, 512], sizes = [1, 256], strides = [1, 1]} : vector<1x768xf32> to vector<1x256xf32>
    %156 = vector.extract_strided_slice %136 {offsets = [0, 512], sizes = [1, 256], strides = [1, 1]} : vector<1x768xf32> to vector<1x256xf32>
    %157 = arith.addf %156, %9 : vector<1x256xf32>
    %158 = arith.mulf %146, %157 : vector<1x256xf32>
    %159 = arith.addf %155, %158 : vector<1x256xf32>
    %160 = math.tanh %159 : vector<1x256xf32>
    %161 = arith.subf %132, %160 : vector<1x256xf32>
    %162 = arith.mulf %154, %161 : vector<1x256xf32>
    %163 = arith.addf %160, %162 : vector<1x256xf32>
    %164 = arith.index_cast %c4_i32 : i32 to index
    %c0_37 = arith.constant 0 : index
    %165 = vector.load %arg6[%164, %c0_37] : memref<8x256xf32, #tpu.memory_space<vmem>>, vector<1x256xf32>
    tpu.vector_store %arg6[%164, %c0_37], %163 {strides = array<i32>} : memref<8x256xf32, #tpu.memory_space<vmem>>, vector<1x256xf32>,
    %c5_i32 = arith.constant 5 : i32
    %166 = arith.truncf %163 : vector<1x256xf32> to vector<1x256xbf16>
    %cst_38 = arith.constant dense<0.000000e+00> : vector<1x768xf32>
    %167 = tpu.matmul %166, %8, %cst_38 {dimension_numbers = #tpu.dot_dimension_numbers<[1], [0], [0], [1], [0, 0, 1, 1], [], []>} : vector<1x256xbf16>, vector<256x768xbf16>, vector<1x768xf32> -> vector<1x768xf32>
    %168 = arith.index_cast %c5_i32 : i32 to index
    %c0_39 = arith.constant 0 : index
    %169 = vector.load %arg7[%168, %c0_39] : memref<8x768xf32, #tpu.memory_space<vmem>>, vector<1x768xf32>
    %170 = vector.extract_strided_slice %169 {offsets = [0, 0], sizes = [1, 256], strides = [1, 1]} : vector<1x768xf32> to vector<1x256xf32>
    %171 = vector.extract_strided_slice %167 {offsets = [0, 0], sizes = [1, 256], strides = [1, 1]} : vector<1x768xf32> to vector<1x256xf32>
    %172 = arith.addf %170, %171 : vector<1x256xf32>
    %173 = arith.negf %172 : vector<1x256xf32>
    %174 = math.exp %173 : vector<1x256xf32>
    %cst_40 = arith.constant 1.000000e+00 : f32
    %175 = vector.broadcast %cst_40 : f32 to vector<1x256xf32>
    %176 = arith.addf %175, %174 : vector<1x256xf32>
    %177 = arith.divf %175, %176 : vector<1x256xf32>
    %178 = vector.extract_strided_slice %169 {offsets = [0, 256], sizes = [1, 256], strides = [1, 1]} : vector<1x768xf32> to vector<1x256xf32>
    %179 = vector.extract_strided_slice %167 {offsets = [0, 256], sizes = [1, 256], strides = [1, 1]} : vector<1x768xf32> to vector<1x256xf32>
    %180 = arith.addf %178, %179 : vector<1x256xf32>
    %181 = arith.negf %180 : vector<1x256xf32>
    %182 = math.exp %181 : vector<1x256xf32>
    %cst_41 = arith.constant 1.000000e+00 : f32
    %183 = vector.broadcast %cst_41 : f32 to vector<1x256xf32>
    %184 = arith.addf %183, %182 : vector<1x256xf32>
    %185 = arith.divf %183, %184 : vector<1x256xf32>
    %186 = vector.extract_strided_slice %169 {offsets = [0, 512], sizes = [1, 256], strides = [1, 1]} : vector<1x768xf32> to vector<1x256xf32>
    %187 = vector.extract_strided_slice %167 {offsets = [0, 512], sizes = [1, 256], strides = [1, 1]} : vector<1x768xf32> to vector<1x256xf32>
    %188 = arith.addf %187, %9 : vector<1x256xf32>
    %189 = arith.mulf %177, %188 : vector<1x256xf32>
    %190 = arith.addf %186, %189 : vector<1x256xf32>
    %191 = math.tanh %190 : vector<1x256xf32>
    %192 = arith.subf %163, %191 : vector<1x256xf32>
    %193 = arith.mulf %185, %192 : vector<1x256xf32>
    %194 = arith.addf %191, %193 : vector<1x256xf32>
    %195 = arith.index_cast %c5_i32 : i32 to index
    %c0_42 = arith.constant 0 : index
    %196 = vector.load %arg6[%195, %c0_42] : memref<8x256xf32, #tpu.memory_space<vmem>>, vector<1x256xf32>
    tpu.vector_store %arg6[%195, %c0_42], %194 {strides = array<i32>} : memref<8x256xf32, #tpu.memory_space<vmem>>, vector<1x256xf32>,
    %c6_i32 = arith.constant 6 : i32
    %197 = arith.truncf %194 : vector<1x256xf32> to vector<1x256xbf16>
    %cst_43 = arith.constant dense<0.000000e+00> : vector<1x768xf32>
    %198 = tpu.matmul %197, %8, %cst_43 {dimension_numbers = #tpu.dot_dimension_numbers<[1], [0], [0], [1], [0, 0, 1, 1], [], []>} : vector<1x256xbf16>, vector<256x768xbf16>, vector<1x768xf32> -> vector<1x768xf32>
    %199 = arith.index_cast %c6_i32 : i32 to index
    %c0_44 = arith.constant 0 : index
    %200 = vector.load %arg7[%199, %c0_44] : memref<8x768xf32, #tpu.memory_space<vmem>>, vector<1x768xf32>
    %201 = vector.extract_strided_slice %200 {offsets = [0, 0], sizes = [1, 256], strides = [1, 1]} : vector<1x768xf32> to vector<1x256xf32>
    %202 = vector.extract_strided_slice %198 {offsets = [0, 0], sizes = [1, 256], strides = [1, 1]} : vector<1x768xf32> to vector<1x256xf32>
    %203 = arith.addf %201, %202 : vector<1x256xf32>
    %204 = arith.negf %203 : vector<1x256xf32>
    %205 = math.exp %204 : vector<1x256xf32>
    %cst_45 = arith.constant 1.000000e+00 : f32
    %206 = vector.broadcast %cst_45 : f32 to vector<1x256xf32>
    %207 = arith.addf %206, %205 : vector<1x256xf32>
    %208 = arith.divf %206, %207 : vector<1x256xf32>
    %209 = vector.extract_strided_slice %200 {offsets = [0, 256], sizes = [1, 256], strides = [1, 1]} : vector<1x768xf32> to vector<1x256xf32>
    %210 = vector.extract_strided_slice %198 {offsets = [0, 256], sizes = [1, 256], strides = [1, 1]} : vector<1x768xf32> to vector<1x256xf32>
    %211 = arith.addf %209, %210 : vector<1x256xf32>
    %212 = arith.negf %211 : vector<1x256xf32>
    %213 = math.exp %212 : vector<1x256xf32>
    %cst_46 = arith.constant 1.000000e+00 : f32
    %214 = vector.broadcast %cst_46 : f32 to vector<1x256xf32>
    %215 = arith.addf %214, %213 : vector<1x256xf32>
    %216 = arith.divf %214, %215 : vector<1x256xf32>
    %217 = vector.extract_strided_slice %200 {offsets = [0, 512], sizes = [1, 256], strides = [1, 1]} : vector<1x768xf32> to vector<1x256xf32>
    %218 = vector.extract_strided_slice %198 {offsets = [0, 512], sizes = [1, 256], strides = [1, 1]} : vector<1x768xf32> to vector<1x256xf32>
    %219 = arith.addf %218, %9 : vector<1x256xf32>
    %220 = arith.mulf %208, %219 : vector<1x256xf32>
    %221 = arith.addf %217, %220 : vector<1x256xf32>
    %222 = math.tanh %221 : vector<1x256xf32>
    %223 = arith.subf %194, %222 : vector<1x256xf32>
    %224 = arith.mulf %216, %223 : vector<1x256xf32>
    %225 = arith.addf %222, %224 : vector<1x256xf32>
    %226 = arith.index_cast %c6_i32 : i32 to index
    %c0_47 = arith.constant 0 : index
    %227 = vector.load %arg6[%226, %c0_47] : memref<8x256xf32, #tpu.memory_space<vmem>>, vector<1x256xf32>
    tpu.vector_store %arg6[%226, %c0_47], %225 {strides = array<i32>} : memref<8x256xf32, #tpu.memory_space<vmem>>, vector<1x256xf32>,
    %c7_i32 = arith.constant 7 : i32
    %228 = arith.truncf %225 : vector<1x256xf32> to vector<1x256xbf16>
    %cst_48 = arith.constant dense<0.000000e+00> : vector<1x768xf32>
    %229 = tpu.matmul %228, %8, %cst_48 {dimension_numbers = #tpu.dot_dimension_numbers<[1], [0], [0], [1], [0, 0, 1, 1], [], []>} : vector<1x256xbf16>, vector<256x768xbf16>, vector<1x768xf32> -> vector<1x768xf32>
    %230 = arith.index_cast %c7_i32 : i32 to index
    %c0_49 = arith.constant 0 : index
    %231 = vector.load %arg7[%230, %c0_49] : memref<8x768xf32, #tpu.memory_space<vmem>>, vector<1x768xf32>
    %232 = vector.extract_strided_slice %231 {offsets = [0, 0], sizes = [1, 256], strides = [1, 1]} : vector<1x768xf32> to vector<1x256xf32>
    %233 = vector.extract_strided_slice %229 {offsets = [0, 0], sizes = [1, 256], strides = [1, 1]} : vector<1x768xf32> to vector<1x256xf32>
    %234 = arith.addf %232, %233 : vector<1x256xf32>
    %235 = arith.negf %234 : vector<1x256xf32>
    %236 = math.exp %235 : vector<1x256xf32>
    %cst_50 = arith.constant 1.000000e+00 : f32
    %237 = vector.broadcast %cst_50 : f32 to vector<1x256xf32>
    %238 = arith.addf %237, %236 : vector<1x256xf32>
    %239 = arith.divf %237, %238 : vector<1x256xf32>
    %240 = vector.extract_strided_slice %231 {offsets = [0, 256], sizes = [1, 256], strides = [1, 1]} : vector<1x768xf32> to vector<1x256xf32>
    %241 = vector.extract_strided_slice %229 {offsets = [0, 256], sizes = [1, 256], strides = [1, 1]} : vector<1x768xf32> to vector<1x256xf32>
    %242 = arith.addf %240, %241 : vector<1x256xf32>
    %243 = arith.negf %242 : vector<1x256xf32>
    %244 = math.exp %243 : vector<1x256xf32>
    %cst_51 = arith.constant 1.000000e+00 : f32
    %245 = vector.broadcast %cst_51 : f32 to vector<1x256xf32>
    %246 = arith.addf %245, %244 : vector<1x256xf32>
    %247 = arith.divf %245, %246 : vector<1x256xf32>
    %248 = vector.extract_strided_slice %231 {offsets = [0, 512], sizes = [1, 256], strides = [1, 1]} : vector<1x768xf32> to vector<1x256xf32>
    %249 = vector.extract_strided_slice %229 {offsets = [0, 512], sizes = [1, 256], strides = [1, 1]} : vector<1x768xf32> to vector<1x256xf32>
    %250 = arith.addf %249, %9 : vector<1x256xf32>
    %251 = arith.mulf %239, %250 : vector<1x256xf32>
    %252 = arith.addf %248, %251 : vector<1x256xf32>
    %253 = math.tanh %252 : vector<1x256xf32>
    %254 = arith.subf %225, %253 : vector<1x256xf32>
    %255 = arith.mulf %247, %254 : vector<1x256xf32>
    %256 = arith.addf %253, %255 : vector<1x256xf32>
    %257 = arith.index_cast %c7_i32 : i32 to index
    %c0_52 = arith.constant 0 : index
    %258 = vector.load %arg6[%257, %c0_52] : memref<8x256xf32, #tpu.memory_space<vmem>>, vector<1x256xf32>
    tpu.vector_store %arg6[%257, %c0_52], %256 {strides = array<i32>} : memref<8x256xf32, #tpu.memory_space<vmem>>, vector<1x256xf32>,
    %c8_i32 = arith.constant 8 : i32
    return
  }
}

</mosaic_0001>

<bundles_post_ra>
// kernel: tpu_custom_call.1
= control target key start
LH: loop header
LB: loop body
LE: loop exit
PB: predicated region body
PF: predicated region fallthrough
CT: control target
= control target key end

     0   :  { %11 = vsyncpa [#allocation4], 0  ;;  %s5470_s0 = inlined_call_operand.hbm [shape: f32[8,256], index: 0, kind: input, shape index: {}]   ;;  %s5471_s1 = inlined_call_operand.hbm [shape: bf16[256,768], index: 1, kind: input, shape index: {}]   ;;  %s5472_s2 = inlined_call_operand.hbm [shape: bf16[256,768], index: 2, kind: input, shape index: {}]   ;;  %s5473_s3 = inlined_call_operand.vmem [shape: f32[1,768], index: 3, kind: input, shape index: {}]   ;;  %s5474_s4 = inlined_call_operand.vmem [shape: f32[1,256], index: 4, kind: input, shape index: {}]   ;;  %s5475_s5 = inlined_call_operand.vmem [shape: f32[1,256], index: 5, kind: input, shape index: {}]   ;;  %s5476_s6 = inlined_call_operand.hbm [shape: f32[8,256], index: 6, kind: output, shape index: {}]  }
   0x1   :  { %12 = vsyncpa [#allocation7], 0 }
   0x2   :  { %13 = vsyncpa [#allocation5], 0  ;;  %s4044_s21 = smov [#allocation6]   ;;  %s3950_s25 = scalar_lea.hbm %s5471_s1, 12288 }
   0x3   :  { %s29_s22 = sshll.u32 %s4044_s21, 4  ;;  %p3951_p0 = scmp.ne.s32.totalorder %s5471_s1, %s3950_s25  ;;  %s30_s22 = int_to_ptr.vmem [resolvable:$true] %s29_s22 }
   0x4   :  { %p3954_p1 = scmp.lt.u32.totalorder %s3950_s25, %s5471_s1 }
   0x6   :  { %p3956_p2 = pnand %p3954_p1, %p3951_p0 }
   0x8   :  { %3959 = shalt.err (!%p3956_p2)
}
   0x9   :  { %s3960_s30 = scalar_lea.vmem %s30_s22, 12288  ;;  %p3965_p4 = scmp.lt.s32.totalorder %s30_s22, %s30_s22 }
   0xa   :  { %p3961_p3 = scmp.ne.s32.totalorder %s30_s22, %s3960_s30  ;;  %p3966_p5 = scmp.lt.s32.totalorder %s3960_s30, %s3960_s30 }
   0xc   :  { %p3967_p6 = por %p3966_p5, %p3965_p4 }
   0xe   :  { %p3968_p7 = pnand %p3967_p6, %p3961_p3 }
  0x10   :  { %3971 = shalt.err (!%p3968_p7)
}
  0x11   :  { %s4045_s7 = smov 384   ;;  %s4046_s8 = smov 24  }
  0x12   :  { %35 = dma.hbm_to_vmem [thread:$0]  %s5471_s1, 12288, %s30_s22, [#allocation7], %s4045_s7, %s4045_s7, %s4046_s8  }
  0x13   :  { %s4047_s11 = smov [#allocation3]   ;;  %s4048_s13 = smov [#allocation8]  }
  0x14   :  { %s20_s12 = sshll.u32 %s4047_s11, 4  ;;  %s41_s14 = sshll.u32 %s4048_s13, 4  ;;  %s21_s12 = int_to_ptr.vmem [resolvable:$true] %s20_s12  ;;  %s42_s14 = int_to_ptr.vmem [resolvable:$true] %s41_s14 }
  0x15   :  { %s3972_s17 = scalar_lea.hbm %s5470_s0, 256 }
  0x16   :  { %p3973_p8 = scmp.ne.s32.totalorder %s5470_s0, %s3972_s17  ;;  %p3976_p9 = scmp.lt.u32.totalorder %s3972_s17, %s5470_s0 }
  0x18   :  { %p3978_p10 = pnand %p3976_p9, %p3973_p8 }
  0x1a   :  { %3981 = shalt.err (!%p3978_p10)
}
  0x1b   :  { %s3982_s1 = scalar_lea.vmem %s21_s12, 256  ;;  %p3987_p12 = scmp.lt.s32.totalorder %s21_s12, %s21_s12 }
  0x1c   :  { %p3983_p11 = scmp.ne.s32.totalorder %s21_s12, %s3982_s1  ;;  %p3988_p13 = scmp.lt.s32.totalorder %s3982_s1, %s3982_s1 }
  0x1e   :  { %p3989_p0 = por %p3988_p13, %p3987_p12 }
  0x20   :  { %p3990_p1 = pnand %p3989_p0, %p3983_p11 }
  0x22   :  { %3993 = shalt.err (!%p3990_p1)
}
  0x23   :  { %23 = dma.hbm_to_vmem [thread:$0]  %s5470_s0, 256, %s21_s12, [#allocation4]  }
  0x24   :  { %s3994_s26 = scalar_lea.hbm %s5472_s2, 12288 }
  0x25   :  { %p3995_p2 = scmp.ne.s32.totalorder %s5472_s2, %s3994_s26  ;;  %p3998_p3 = scmp.lt.u32.totalorder %s3994_s26, %s5472_s2 }
  0x27   :  { %p4000_p4 = pnand %p3998_p3, %p3995_p2 }
  0x29   :  { %4003 = shalt.err (!%p4000_p4)
}
  0x2a   :  { %s4004_s9 = scalar_lea.vmem %s42_s14, 12288  ;;  %p4009_p6 = scmp.lt.s32.totalorder %s42_s14, %s42_s14 }
  0x2b   :  { %p4005_p5 = scmp.ne.s32.totalorder %s42_s14, %s4004_s9  ;;  %p4010_p7 = scmp.lt.s32.totalorder %s4004_s9, %s4004_s9 }
  0x2d   :  { %p4011_p8 = por %p4010_p7, %p4009_p6 }
  0x2f   :  { %p4012_p9 = pnand %p4011_p8, %p4005_p5 }
  0x31   :  { %4015 = shalt.err (!%p4012_p9)
}
  0x32   :  { %47 = dma.hbm_to_vmem [thread:$0]  %s5472_s2, 12288, %s42_s14, [#allocation7], %s4045_s7, %s4045_s7, %s4046_s8  }
  0x33   :  { %4038 = dma.done.wait [#allocation4], 256  }
  0x34   :  { %4039 = vsyncadd [#allocation4], 4294967040 }
  0x35   :  { %4040 = dma.done.wait [#allocation7], 24576  }
  0x36   :  { %4041 = vsyncadd [#allocation7], 4294942720  ;;  %v3418_v0 = vld [vmem:[#allocation6 + $0x4] ss:$24 sps:$4 sm:$0xff]   ;;  %v3422_v2 = vld [vmem:[#allocation6] ss:$24 sps:$4 sm:$0xff]  }
  0x37   :  { %v3420_v1 = vld [vmem:[#allocation6 + $0xc] ss:$24 sps:$4 sm:$0xff]   ;;  %675 = vmatprep.subr.bf16.mxu0 %v3418_v0  ;;  %v3423_v3 = vld [vmem:[#allocation6 + $0x8] ss:$24 sps:$4 sm:$0xff]   ;;  %v3426_v5 = vld [vmem:[#allocation6 + $0x3c] ss:$24 sps:$4 sm:$0xff]  }
  0x38   :  { %716 = vmatprep.subr.bf16.mxu1 %v3420_v1  ;;  %v3424_v4 = vld [vmem:[#allocation6 + $0x34] ss:$24 sps:$4 sm:$0xff]   ;;  %676 = vmatpush1.bf16.msra.mxu0 %v3422_v2  ;;  %v3428_v6 = vld [vmem:[#allocation6 + $0x30] ss:$24 sps:$4 sm:$0xff]   ;;  %v3430_v8 = vld [vmem:[#allocation6 + $0x64] ss:$24 sps:$4 sm:$0xff]  }
  0x39   :  { %717 = vmatpush1.bf16.msra.mxu1 %v3423_v3  ;;  %677 = vmatprep.subr.bf16.mxu0 %v3424_v4  ;;  %v3429_v7 = vld [vmem:[#allocation6 + $0x38] ss:$24 sps:$4 sm:$0xff]   ;;  %v3432_v9 = vld [vmem:[#allocation6 + $0x6c] ss:$24 sps:$4 sm:$0xff]   ;;  %v3435_v11 = vld [vmem:[#allocation6 + $0x68] ss:$24 sps:$4 sm:$0xff]  }
  0x3a   :  { %718 = vmatprep.subr.bf16.mxu1 %v3426_v5  ;;  %v3434_v10 = vld [vmem:[#allocation6 + $0x60] ss:$24 sps:$4 sm:$0xff]   ;;  %v3436_v12 = vld [vmem:[#allocation6 + $0x94] ss:$24 sps:$4 sm:$0xff]   ;;  %v3440_v14 = vld [vmem:[#allocation6 + $0x90] ss:$24 sps:$4 sm:$0xff]  }
  0x3b   :  { %v3438_v13 = vld [vmem:[#allocation6 + $0x9c] ss:$24 sps:$4 sm:$0xff]   ;;  %v3441_v15 = vld [vmem:[#allocation6 + $0x98] ss:$24 sps:$4 sm:$0xff]   ;;  %v3444_v17 = vld [vmem:[#allocation6 + $0xcc] ss:$24 sps:$4 sm:$0xff]  }
  0x3c   :  { %678 = vmatpush1.bf16.msra.mxu0 %v3428_v6  ;;  %v3442_v16 = vld [vmem:[#allocation6 + $0xc4] ss:$24 sps:$4 sm:$0xff]   ;;  %v3446_v18 = vld [vmem:[#allocation6 + $0xc0] ss:$24 sps:$4 sm:$0xff]   ;;  %v3448_v20 = vld [vmem:[#allocation6 + $0xf4] ss:$24 sps:$4 sm:$0xff]  }
  0x3d   :  { %719 = vmatpush1.bf16.msra.mxu1 %v3429_v7  ;;  %679 = vmatprep.subr.bf16.mxu0 %v3430_v8  ;;  %v3447_v19 = vld [vmem:[#allocation6 + $0xc8] ss:$24 sps:$4 sm:$0xff]   ;;  %v3450_v21 = vld [vmem:[#allocation6 + $0xfc] ss:$24 sps:$4 sm:$0xff]   ;;  %v3453_v23 = vld [vmem:[#allocation6 + $0xf8] ss:$24 sps:$4 sm:$0xff]  }
  0x3e   :  { %720 = vmatprep.subr.bf16.mxu1 %v3432_v9  ;;  %v3452_v22 = vld [vmem:[#allocation6 + $0xf0] ss:$24 sps:$4 sm:$0xff]   ;;  %v3454_v24 = vld [vmem:[#allocation6 + $0x124] ss:$24 sps:$4 sm:$0xff]   ;;  %v3458_v26 = vld [vmem:[#allocation6 + $0x120] ss:$24 sps:$4 sm:$0xff]  }
  0x3f   :  { %v3456_v25 = vld [vmem:[#allocation6 + $0x12c] ss:$24 sps:$4 sm:$0xff]   ;;  %v3459_v27 = vld [vmem:[#allocation6 + $0x128] ss:$24 sps:$4 sm:$0xff]   ;;  %v3462_v29 = vld [vmem:[#allocation6 + $0x15c] ss:$24 sps:$4 sm:$0xff]  }
  0x40   :  { %680 = vmatpush1.bf16.msra.mxu0 %v3434_v10  ;;  %v3460_v28 = vld [vmem:[#allocation6 + $0x154] ss:$24 sps:$4 sm:$0xff]   ;;  %v3464_v30 = vld [vmem:[#allocation6 + $0x150] ss:$24 sps:$4 sm:$0xff]   ;;  %v3466_v32 = vld [vmem:[#allocation6 + $0x184] ss:$24 sps:$4 sm:$0xff]  }
  0x41   :  { %721 = vmatpush1.bf16.msra.mxu1 %v3435_v11  ;;  %681 = vmatprep.subr.bf16.mxu0 %v3436_v12  ;;  %v3465_v31 = vld [vmem:[#allocation6 + $0x158] ss:$24 sps:$4 sm:$0xff]   ;;  %v3468_v33 = vld [vmem:[#allocation6 + $0x18c] ss:$24 sps:$4 sm:$0xff]   ;;  %v3471_v35 = vld [vmem:[#allocation6 + $0x188] ss:$24 sps:$4 sm:$0xff]  }
  0x42   :  { %722 = vmatprep.subr.bf16.mxu1 %v3438_v13  ;;  %v3470_v34 = vld [vmem:[#allocation6 + $0x180] ss:$24 sps:$4 sm:$0xff]   ;;  %v3472_v36 = vld [vmem:[#allocation6 + $0x1b4] ss:$24 sps:$4 sm:$0xff]   ;;  %v3476_v38 = vld [vmem:[#allocation6 + $0x1b0] ss:$24 sps:$4 sm:$0xff]  }
  0x43   :  { %v3474_v37 = vld [vmem:[#allocation6 + $0x1bc] ss:$24 sps:$4 sm:$0xff]   ;;  %v3477_v39 = vld [vmem:[#allocation6 + $0x1b8] ss:$24 sps:$4 sm:$0xff]   ;;  %v3480_v41 = vld [vmem:[#allocation6 + $0x1ec] ss:$24 sps:$4 sm:$0xff]  }
  0x44   :  { %682 = vmatpush1.bf16.msra.mxu0 %v3440_v14  ;;  %v3478_v40 = vld [vmem:[#allocation6 + $0x1e4] ss:$24 sps:$4 sm:$0xff]   ;;  %v3482_v42 = vld [vmem:[#allocation6 + $0x1e0] ss:$24 sps:$4 sm:$0xff]   ;;  %v3484_v44 = vld [vmem:[#allocation6 + $0x214] ss:$24 sps:$4 sm:$0xff]  }
  0x45   :  { %723 = vmatpush1.bf16.msra.mxu1 %v3441_v15  ;;  %683 = vmatprep.subr.bf16.mxu0 %v3442_v16  ;;  %v3483_v43 = vld [vmem:[#allocation6 + $0x1e8] ss:$24 sps:$4 sm:$0xff]   ;;  %v3486_v45 = vld [vmem:[#allocation6 + $0x21c] ss:$24 sps:$4 sm:$0xff]   ;;  %v3489_v49 = vld [vmem:[#allocation6 + $0x218] ss:$24 sps:$4 sm:$0xff]  }
  0x46   :  { %724 = vmatprep.subr.bf16.mxu1 %v3444_v17  ;;  %v64_v46 = vld [vmem:[#allocation3 + $0x8] sm:$0xff]  ;;  %v3488_v48 = vld [vmem:[#allocation6 + $0x210] ss:$24 sps:$4 sm:$0xff]   ;;  %v3492_v51 = vld [vmem:[#allocation6 + $0x24c] ss:$24 sps:$4 sm:$0xff]  }
  0x47   :  { %v66_v47 = vpack.c.bf16 %v64_v46, %v64_v46  ;;  %v3490_v50 = vld [vmem:[#allocation6 + $0x244] ss:$24 sps:$4 sm:$0xff]   ;;  %v3494_v52 = vld [vmem:[#allocation6 + $0x240] ss:$24 sps:$4 sm:$0xff]   ;;  %v3496_v54 = vld [vmem:[#allocation6 + $0x274] ss:$24 sps:$4 sm:$0xff]  }
  0x48   :  { %684 = vmatpush1.bf16.msra.mxu0 %v3446_v18  ;;  %v3495_v53 = vld [vmem:[#allocation6 + $0x248] ss:$24 sps:$4 sm:$0xff]   ;;  %v3498_v55 = vld [vmem:[#allocation6 + $0x27c] ss:$24 sps:$4 sm:$0xff]   ;;  %v3501_v57 = vld [vmem:[#allocation6 + $0x278] ss:$24 sps:$4 sm:$0xff]   ;;  %v5477_v18 = vlaneseq }
  0x49   :  { %725 = vmatpush1.bf16.msra.mxu1 %v3447_v19  ;;  %685 = vmatprep.subr.bf16.mxu0 %v3448_v20  ;;  %v3500_v56 = vld [vmem:[#allocation6 + $0x270] ss:$24 sps:$4 sm:$0xff]   ;;  %v3502_v58 = vld [vmem:[#allocation6 + $0x2a4] ss:$24 sps:$4 sm:$0xff]   ;;  %v3506_v60 = vld [vmem:[#allocation6 + $0x2a0] ss:$24 sps:$4 sm:$0xff]  }
  0x4a   :  { %726 = vmatprep.subr.bf16.mxu1 %v3450_v21  ;;  %707 = vmatprep.mubr.bf16.mxu0 %v66_v47  ;;  %v3504_v59 = vld [vmem:[#allocation6 + $0x2ac] ss:$24 sps:$4 sm:$0xff]   ;;  %v3507_v61 = vld [vmem:[#allocation6 + $0x2a8] ss:$24 sps:$4 sm:$0xff]   ;;  %v3510_v63 = vld [vmem:[#allocation6 + $0x2dc] ss:$24 sps:$4 sm:$0xff]  }
  0x4b   :  { %748 = vmatprep.mubr.bf16.mxu1 %v66_v47  ;;  %v3508_v62 = vld [vmem:[#allocation6 + $0x2d4] ss:$24 sps:$4 sm:$0xff]   ;;  %v3512_v0 = vld [vmem:[#allocation6 + $0x2d0] ss:$24 sps:$4 sm:$0xff]   ;;  %v4128_v4 = vld [vmem:[#allocation8 + $0x4] ss:$24 sps:$4 sm:$0xff]  }
  0x4c   :  { %686 = vmatpush1.bf16.msra.mxu0 %v3452_v22  ;;  %v3513_v1 = vld [vmem:[#allocation6 + $0x2d8] ss:$24 sps:$4 sm:$0xff]   ;;  %v3516_v3 = vld [vmem:[#allocation6 + $0x14] ss:$24 sps:$4 sm:$0xff]   ;;  %v3522_v8 = vld [vmem:[#allocation6 + $0x44] ss:$24 sps:$4 sm:$0xff]  }
  0x4d   :  { %727 = vmatpush1.bf16.msra.mxu1 %v3453_v23  ;;  %687 = vmatprep.subr.bf16.mxu0 %v3454_v24  ;;  %v63_v2 = vld [vmem:[#allocation3] sm:$0xff]  ;;  %v4132_v7 = vld [vmem:[#allocation8] ss:$24 sps:$4 sm:$0xff]   ;;  %v4143_v13 = vld [vmem:[#allocation8 + $0x64] ss:$24 sps:$4 sm:$0xff]   ;;  %v4158_v23 = vshrl.u32 %v5477_v18, 7 }
  0x4e   :  { %728 = vmatprep.subr.bf16.mxu1 %v3456_v25  ;;  %v4130_v5 = vpack.c.bf16 %v63_v2, %v63_v2  ;;  %v3514_v6 = vld [vmem:[#allocation6 + $0x10] ss:$24 sps:$4 sm:$0xff]   ;;  %v4135_v9 = vld [vmem:[#allocation8 + $0x34] ss:$24 sps:$4 sm:$0xff]   ;;  %v3520_v10 = vld [vmem:[#allocation6 + $0x40] ss:$24 sps:$4 sm:$0xff]  }
  0x4f   :  { %v4140_v11 = vld [vmem:[#allocation8 + $0x30] ss:$24 sps:$4 sm:$0xff]   ;;  %v3528_v12 = vld [vmem:[#allocation6 + $0x74] ss:$24 sps:$4 sm:$0xff]   ;;  %v4146_v15 = vld [vmem:[#allocation8 + $0x60] ss:$24 sps:$4 sm:$0xff]  }
  0x50   :  { %688 = vmatpush1.bf16.msra.mxu0 %v3458_v26  ;;  %v3526_v14 = vld [vmem:[#allocation6 + $0x70] ss:$24 sps:$4 sm:$0xff]   ;;  %v3534_v16 = vld [vmem:[#allocation6 + $0xa4] ss:$24 sps:$4 sm:$0xff]   ;;  %v4149_v17 = vld [vmem:[#allocation8 + $0x94] ss:$24 sps:$4 sm:$0xff]  }
  0x51   :  { %729 = vmatpush1.bf16.msra.mxu1 %v3459_v27  ;;  %689 = vmatprep.subr.bf16.mxu0 %v3460_v28  ;;  %v3532_v19 = vld [vmem:[#allocation6 + $0xa0] ss:$24 sps:$4 sm:$0xff]   ;;  %v4152_v20 = vld [vmem:[#allocation8 + $0x90] ss:$24 sps:$4 sm:$0xff]   ;;  %v3540_v21 = vld [vmem:[#allocation6 + $0xd4] ss:$24 sps:$4 sm:$0xff]  }
  0x52   :  { %730 = vmatprep.subr.bf16.mxu1 %v3462_v29  ;;  %v4155_v22 = vld [vmem:[#allocation8 + $0xc4] ss:$24 sps:$4 sm:$0xff]   ;;  %5719 = vst [vmem:[#allocation13_spill] sm:$0xff] %v4158_v23  ;;  %v3538_v24 = vld [vmem:[#allocation6 + $0xd0] ss:$24 sps:$4 sm:$0xff]   ;;  %v4167_v28 = vsub.s32 1, %v4158_v23 }
  0x53   :  { %v4161_v25 = vld [vmem:[#allocation8 + $0xc0] ss:$24 sps:$4 sm:$0xff]   ;;  %v3546_v26 = vld [vmem:[#allocation6 + $0x104] ss:$24 sps:$4 sm:$0xff]   ;;  %v4164_v27 = vld [vmem:[#allocation8 + $0xf4] ss:$24 sps:$4 sm:$0xff]  }
  0x54   :  { %690 = vmatpush1.bf16.msra.mxu0 %v3464_v30  ;;  %5720 = vst [vmem:[#allocation14_spill] sm:$0xff] %v4167_v28  ;;  %v3544_v29 = vld [vmem:[#allocation6 + $0x100] ss:$24 sps:$4 sm:$0xff]   ;;  %v4170_v30 = vld [vmem:[#allocation8 + $0xf0] ss:$24 sps:$4 sm:$0xff]  }
  0x55   :  { %731 = vmatpush1.bf16.msra.mxu1 %v3465_v31  ;;  %691 = vmatprep.subr.bf16.mxu0 %v3466_v32  ;;  %v3552_v31 = vld [vmem:[#allocation6 + $0x134] ss:$24 sps:$4 sm:$0xff]   ;;  %v4173_v32 = vld [vmem:[#allocation8 + $0x124] ss:$24 sps:$4 sm:$0xff]   ;;  %v4331_v18 = vld [vmem:[#allocation8 + $0x128] ss:$24 sps:$4 sm:$0xff]  }
  0x56   :  { %732 = vmatprep.subr.bf16.mxu1 %v3468_v33  ;;  %v4178_v33 = vld [vmem:[%s5475_s5] sm:$0x3]  ;;  %v3570_v46 = vld [vmem:[#allocation6 + $0x1c4] ss:$24 sps:$4 sm:$0xff]   ;;  %v3600_v2 = vld [vmem:[#allocation6 + $0x2b4] ss:$24 sps:$4 sm:$0xff]  }
  0x57   :  { %5721 = vst [vmem:[#allocation15_spill] sm:$0xff] %v4178_v33  ;;  %5747 = vst [vmem:[#allocation41_spill] sm:$0xff] %v4331_v18 }
  0x58   :  { %692 = vmatpush1.bf16.msra.mxu0 %v3470_v34  ;;  %v910_v34 = vrot.slane %v4178_v33, %v4167_v28  ;;  %v4387_v28 = vld [vmem:[#allocation8 + $0x224] ss:$24 sps:$4 sm:$0xff]  }
  0x59   :  { %733 = vmatpush1.bf16.msra.mxu1 %v3471_v35  ;;  %693 = vmatprep.subr.bf16.mxu0 %v3472_v36  ;;  %v3550_v35 = vld [vmem:[#allocation6 + $0x130] ss:$24 sps:$4 sm:$0xff]   ;;  %v4183_v36 = vld [vmem:[#allocation8 + $0x120] ss:$24 sps:$4 sm:$0xff]   ;;  %5766 = vst [vmem:[#allocation60_spill] sm:$0xff] %v4387_v28 }
  0x5a   :  { %734 = vmatprep.subr.bf16.mxu1 %v3474_v37  ;;  %v3558_v37 = vld [vmem:[#allocation6 + $0x164] ss:$24 sps:$4 sm:$0xff]  }
  0x5c   :  { %694 = vmatpush1.bf16.msra.mxu0 %v3476_v38  ;;  %v4186_v38 = vld [vmem:[#allocation8 + $0x154] ss:$24 sps:$4 sm:$0xff]  }
  0x5d   :  { %735 = vmatpush1.bf16.msra.mxu1 %v3477_v39  ;;  %695 = vmatprep.subr.bf16.mxu0 %v3478_v40  ;;  %v4188_v39 = vpack.c.bf16 %v910_v34, %v910_v34  ;;  %v3556_v40 = vld [vmem:[#allocation6 + $0x160] ss:$24 sps:$4 sm:$0xff]   ;;  %v4257_v34 = vld [vmem:[#allocation8 + $0x10] ss:$24 sps:$4 sm:$0xff]  }
  0x5e   :  { %736 = vmatprep.subr.bf16.mxu1 %v3480_v41  ;;  %v4192_v41 = vld [vmem:[#allocation8 + $0x150] ss:$24 sps:$4 sm:$0xff]   ;;  %5729 = vst [vmem:[#allocation23_spill] sm:$0xff] %v4257_v34 }
  0x60   :  { %696 = vmatpush1.bf16.msra.mxu0 %v3482_v42  ;;  %v3564_v42 = vld [vmem:[#allocation6 + $0x194] ss:$24 sps:$4 sm:$0xff]  }
  0x61   :  { %737 = vmatpush1.bf16.msra.mxu1 %v3483_v43  ;;  %697 = vmatprep.subr.bf16.mxu0 %v3484_v44  ;;  %v4195_v43 = vld [vmem:[#allocation8 + $0x184] ss:$24 sps:$4 sm:$0xff]   ;;  %v3562_v44 = vld [vmem:[#allocation6 + $0x190] ss:$24 sps:$4 sm:$0xff]  }
  0x62   :  { %738 = vmatprep.subr.bf16.mxu1 %v3486_v45  ;;  %v4198_v45 = vld [vmem:[#allocation8 + $0x180] ss:$24 sps:$4 sm:$0xff]  }
  0x64   :  { %698 = vmatpush1.bf16.msra.mxu0 %v3488_v48  ;;  %v3568_v48 = vld [vmem:[#allocation6 + $0x1c0] ss:$24 sps:$4 sm:$0xff]  }
  0x65   :  { %739 = vmatpush1.bf16.msra.mxu1 %v3489_v49  ;;  %699 = vmatprep.subr.bf16.mxu0 %v3490_v50  ;;  %v4204_v49 = vld [vmem:[#allocation8 + $0x1b0] ss:$24 sps:$4 sm:$0xff]   ;;  %v3576_v50 = vld [vmem:[#allocation6 + $0x1f4] ss:$24 sps:$4 sm:$0xff]  }
  0x66   :  { %740 = vmatprep.subr.bf16.mxu1 %v3492_v51  ;;  %v4207_v51 = vld [vmem:[#allocation8 + $0x1e4] ss:$24 sps:$4 sm:$0xff]  }
  0x68   :  { %700 = vmatpush1.bf16.msra.mxu0 %v3494_v52  ;;  %v3574_v52 = vld [vmem:[#allocation6 + $0x1f0] ss:$24 sps:$4 sm:$0xff]  }
  0x69   :  { %741 = vmatpush1.bf16.msra.mxu1 %v3495_v53  ;;  %701 = vmatprep.subr.bf16.mxu0 %v3496_v54  ;;  %v4210_v53 = vld [vmem:[#allocation8 + $0x1e0] ss:$24 sps:$4 sm:$0xff]   ;;  %v3582_v54 = vld [vmem:[#allocation6 + $0x224] ss:$24 sps:$4 sm:$0xff]  }
  0x6a   :  { %742 = vmatprep.subr.bf16.mxu1 %v3498_v55  ;;  %v4213_v55 = vld [vmem:[#allocation8 + $0x214] ss:$24 sps:$4 sm:$0xff]  }
  0x6c   :  { %702 = vmatpush1.bf16.msra.mxu0 %v3500_v56  ;;  %v3580_v56 = vld [vmem:[#allocation6 + $0x220] ss:$24 sps:$4 sm:$0xff]  }
  0x6d   :  { %743 = vmatpush1.bf16.msra.mxu1 %v3501_v57  ;;  %703 = vmatprep.subr.bf16.mxu0 %v3502_v58  ;;  %v4216_v57 = vld [vmem:[#allocation8 + $0x210] ss:$24 sps:$4 sm:$0xff]   ;;  %v3588_v58 = vld [vmem:[#allocation6 + $0x254] ss:$24 sps:$4 sm:$0xff]  }
  0x6e   :  { %744 = vmatprep.subr.bf16.mxu1 %v3504_v59  ;;  %v4219_v59 = vld [vmem:[#allocation8 + $0x244] ss:$24 sps:$4 sm:$0xff]  }
  0x70   :  { %704 = vmatpush1.bf16.msra.mxu0 %v3506_v60  ;;  %v3586_v60 = vld [vmem:[#allocation6 + $0x250] ss:$24 sps:$4 sm:$0xff]  }
  0x71   :  { %745 = vmatpush1.bf16.msra.mxu1 %v3507_v61  ;;  %705 = vmatprep.subr.bf16.mxu0 %v3508_v62  ;;  %v4222_v61 = vld [vmem:[#allocation8 + $0x240] ss:$24 sps:$4 sm:$0xff]   ;;  %v3594_v62 = vld [vmem:[#allocation6 + $0x284] ss:$24 sps:$4 sm:$0xff]  }
  0x72   :  { %746 = vmatprep.subr.bf16.mxu1 %v3510_v63  ;;  %v4225_v63 = vld [vmem:[#allocation8 + $0x274] ss:$24 sps:$4 sm:$0xff]  }
  0x74   :  { %706 = vmatpush1.bf16.msra.mxu0 %v3512_v0  ;;  %v3592_v0 = vld [vmem:[#allocation6 + $0x280] ss:$24 sps:$4 sm:$0xff]  }
  0x75   :  { %747 = vmatpush1.bf16.msra.mxu1 %v3513_v1  ;;  %757 = vmatprep.subr.bf16.mxu0 %v3516_v3  ;;  %v4228_v1 = vld [vmem:[#allocation8 + $0x270] ss:$24 sps:$4 sm:$0xff]   ;;  %v4231_v3 = vld [vmem:[#allocation8 + $0x2a4] ss:$24 sps:$4 sm:$0xff]  }
  0x76   :  { %1395 = vmatprep.subr.bf16.mxu1 %v4128_v4  ;;  %5722 = vst [vmem:[#allocation16_spill] sm:$0xff] %v4228_v1  ;;  %5723 = vst [vmem:[#allocation17_spill] sm:$0xff] %v4231_v3 }
  0x77   :  { %708 = vmatmul.mubr.bf16.vlgmr.msra.gmra.mrb[0].mxu0 %v4130_v5 }
  0x78   :  { %749 = vmatmul.mubr.bf16.vlgmr.msra.gmra.mrb[0].mxu1 %v4130_v5  ;;  %758 = vmatpush1.bf16.msra.mxu0 %v3514_v6  ;;  %v4234_v6 = vsub.s32 0, %v4158_v23  ;;  %v4399_v23 = vld [vmem:[#allocation8 + $0x254] ss:$24 sps:$4 sm:$0xff]  }
  0x79   :  { %1396 = vmatpush1.bf16.msra.mxu1 %v4132_v7  ;;  %759 = vmatprep.subr.bf16.mxu0 %v3522_v8  ;;  %v3598_v8 = vld [vmem:[#allocation6 + $0x2b0] ss:$24 sps:$4 sm:$0xff]   ;;  %5770 = vst [vmem:[#allocation64_spill] sm:$0xff] %v4399_v23 }
  0x7a   :  { %1397 = vmatprep.subr.bf16.mxu1 %v4135_v9  ;;  %789 = vmatprep.mubr.bf16.mxu0 %v66_v47  ;;  %v4201_v47 = vld [vmem:[#allocation8 + $0x1b4] ss:$24 sps:$4 sm:$0xff]   ;;  %5724 = vst [vmem:[#allocation18_spill] sm:$0xff] %v4234_v6 }
  0x7b   :  { %1427 = vmatprep.mubr.bf16.mxu1 %v4188_v39 }
  0x7c   :  { %760 = vmatpush1.bf16.msra.mxu0 %v3520_v10  ;;  %v4237_v10 = vld [vmem:[#allocation8 + $0x2a0] ss:$24 sps:$4 sm:$0xff]  }
  0x7d   :  { %1398 = vmatpush1.bf16.msra.mxu1 %v4140_v11  ;;  %761 = vmatprep.subr.bf16.mxu0 %v3528_v12  ;;  %5725 = vst [vmem:[#allocation19_spill] sm:$0xff] %v4237_v10  ;;  %v3606_v12 = vld [vmem:[#allocation6 + $0x2e4] ss:$24 sps:$4 sm:$0xff]  }
  0x7e   :  { %1399 = vmatprep.subr.bf16.mxu1 %v4143_v13 }
  0x80   :  { %762 = vmatpush1.bf16.msra.mxu0 %v3526_v14  ;;  %v4240_v14 = vld [vmem:[#allocation8 + $0x2d4] ss:$24 sps:$4 sm:$0xff]  }
  0x81   :  { %1400 = vmatpush1.bf16.msra.mxu1 %v4146_v15  ;;  %763 = vmatprep.subr.bf16.mxu0 %v3534_v16  ;;  %5726 = vst [vmem:[#allocation20_spill] sm:$0xff] %v4240_v14  ;;  %v3604_v16 = vld [vmem:[#allocation6 + $0x2e0] ss:$24 sps:$4 sm:$0xff]  }
  0x82   :  { %1401 = vmatprep.subr.bf16.mxu1 %v4149_v17 }
  0x84   :  { %764 = vmatpush1.bf16.msra.mxu0 %v3532_v19  ;;  %v906_v19 = vrot.slane %v4178_v33, %v4234_v6  ;;  %v4381_v33 = vld [vmem:[#allocation8 + $0x1f0] ss:$24 sps:$4 sm:$0xff]   ;;  %v4393_v6 = vld [vmem:[#allocation8 + $0x220] ss:$24 sps:$4 sm:$0xff]  }
  0x85   :  { %1402 = vmatpush1.bf16.msra.mxu1 %v4152_v20  ;;  %765 = vmatprep.subr.bf16.mxu0 %v3540_v21  ;;  %v4245_v21 = vld [vmem:[#allocation8 + $0x2d0] ss:$24 sps:$4 sm:$0xff]   ;;  %5764 = vst [vmem:[#allocation58_spill] sm:$0xff] %v4381_v33  ;;  %5768 = vst [vmem:[#allocation62_spill] sm:$0xff] %v4393_v6 }
  0x86   :  { %1403 = vmatprep.subr.bf16.mxu1 %v4155_v22  ;;  %5727 = vst [vmem:[#allocation21_spill] sm:$0xff] %v4245_v21 }
  0x88   :  { %766 = vmatpush1.bf16.msra.mxu0 %v3538_v24  ;;  %v4248_v24 = vld [vmem:[#allocation8 + $0xc] ss:$24 sps:$4 sm:$0xff]  }
  0x89   :  { %1404 = vmatpush1.bf16.msra.mxu1 %v4161_v25  ;;  %767 = vmatprep.subr.bf16.mxu0 %v3546_v26  ;;  %v4250_v26 = vld [vmem:[#allocation8 + $0x14] ss:$24 sps:$4 sm:$0xff]  }
  0x8a   :  { %1405 = vmatprep.subr.bf16.mxu1 %v4164_v27  ;;  %5728 = vst [vmem:[#allocation22_spill] sm:$0xff] %v4250_v26 }
  0x8c   :  { %768 = vmatpush1.bf16.msra.mxu0 %v3544_v29  ;;  %v4252_v29 = vpack.c.bf16 %v906_v19, %v906_v19  ;;  %v4327_v19 = vld [vmem:[#allocation8 + $0x134] ss:$24 sps:$4 sm:$0xff]  }
  0x8d   :  { %1406 = vmatpush1.bf16.msra.mxu1 %v4170_v30  ;;  %769 = vmatprep.subr.bf16.mxu0 %v3552_v31  ;;  %v4255_v31 = vld [vmem:[#allocation8 + $0x8] ss:$24 sps:$4 sm:$0xff]   ;;  %5746 = vst [vmem:[#allocation40_spill] sm:$0xff] %v4327_v19 }
  0x8e   :  { %1407 = vmatprep.subr.bf16.mxu1 %v4173_v32 }
  0x90   :  { %770 = vmatpush1.bf16.msra.mxu0 %v3550_v35  ;;  %v4261_v35 = vld [vmem:[#allocation8 + $0x3c] ss:$24 sps:$4 sm:$0xff]  }
  0x91   :  { %1408 = vmatpush1.bf16.msra.mxu1 %v4183_v36  ;;  %771 = vmatprep.subr.bf16.mxu0 %v3558_v37  ;;  %v4263_v37 = vld [vmem:[#allocation8 + $0x44] ss:$24 sps:$4 sm:$0xff]  }
  0x92   :  { %1409 = vmatprep.subr.bf16.mxu1 %v4186_v38  ;;  %5730 = vst [vmem:[#allocation24_spill] sm:$0xff] %v4263_v37 }
  0x94   :  { %772 = vmatpush1.bf16.msra.mxu0 %v3556_v40  ;;  %v4269_v40 = vld [vmem:[#allocation8 + $0x38] ss:$24 sps:$4 sm:$0xff]  }
  0x95   :  { %1410 = vmatpush1.bf16.msra.mxu1 %v4192_v41  ;;  %773 = vmatprep.subr.bf16.mxu0 %v3564_v42  ;;  %v4271_v42 = vld [vmem:[#allocation8 + $0x40] ss:$24 sps:$4 sm:$0xff]  }
  0x96   :  { %1411 = vmatprep.subr.bf16.mxu1 %v4195_v43  ;;  %5731 = vst [vmem:[#allocation25_spill] sm:$0xff] %v4271_v42 }
  0x98   :  { %774 = vmatpush1.bf16.msra.mxu0 %v3562_v44  ;;  %v4275_v44 = vld [vmem:[#allocation8 + $0x6c] ss:$24 sps:$4 sm:$0xff]  }
  0x99   :  { %1412 = vmatpush1.bf16.msra.mxu1 %v4198_v45  ;;  %775 = vmatprep.subr.bf16.mxu0 %v3570_v46  ;;  %v4277_v46 = vld [vmem:[#allocation8 + $0x74] ss:$24 sps:$4 sm:$0xff]  }
  0x9a   :  { %1413 = vmatprep.subr.bf16.mxu1 %v4201_v47  ;;  %5732 = vst [vmem:[#allocation26_spill] sm:$0xff] %v4277_v46 }
  0x9c   :  { %776 = vmatpush1.bf16.msra.mxu0 %v3568_v48  ;;  %v4285_v48 = vld [vmem:[#allocation8 + $0x70] ss:$24 sps:$4 sm:$0xff]  }
  0x9d   :  { %1414 = vmatpush1.bf16.msra.mxu1 %v4204_v49  ;;  %777 = vmatprep.subr.bf16.mxu0 %v3576_v50  ;;  %5733 = vst [vmem:[#allocation27_spill] sm:$0xff] %v4285_v48  ;;  %v4289_v50 = vld [vmem:[#allocation8 + $0x9c] ss:$24 sps:$4 sm:$0xff]  }
  0x9e   :  { %1415 = vmatprep.subr.bf16.mxu1 %v4207_v51 }
  0xa0   :  { %778 = vmatpush1.bf16.msra.mxu0 %v3574_v52  ;;  %v4291_v52 = vld [vmem:[#allocation8 + $0xa4] ss:$24 sps:$4 sm:$0xff]  }
  0xa1   :  { %1416 = vmatpush1.bf16.msra.mxu1 %v4210_v53  ;;  %779 = vmatprep.subr.bf16.mxu0 %v3582_v54  ;;  %5734 = vst [vmem:[#allocation28_spill] sm:$0xff] %v4291_v52  ;;  %v4297_v54 = vld [vmem:[#allocation8 + $0xa0] ss:$24 sps:$4 sm:$0xff]  }
  0xa2   :  { %1417 = vmatprep.subr.bf16.mxu1 %v4213_v55  ;;  %5736 = vst [vmem:[#allocation30_spill] sm:$0xff] %v4297_v54 }
  0xa4   :  { %780 = vmatpush1.bf16.msra.mxu0 %v3580_v56  ;;  %v4301_v56 = vld [vmem:[#allocation8 + $0xcc] ss:$24 sps:$4 sm:$0xff]  }
  0xa5   :  { %1418 = vmatpush1.bf16.msra.mxu1 %v4216_v57  ;;  %781 = vmatprep.subr.bf16.mxu0 %v3588_v58  ;;  %5737 = vst [vmem:[#allocation31_spill] sm:$0xff] %v4301_v56  ;;  %v4303_v58 = vld [vmem:[#allocation8 + $0xd4] ss:$24 sps:$4 sm:$0xff]  }
  0xa6   :  { %1419 = vmatprep.subr.bf16.mxu1 %v4219_v59  ;;  %5738 = vst [vmem:[#allocation32_spill] sm:$0xff] %v4303_v58 }
  0xa8   :  { %782 = vmatpush1.bf16.msra.mxu0 %v3586_v60  ;;  %v4307_v60 = vld [vmem:[#allocation8 + $0xc8] ss:$24 sps:$4 sm:$0xff]  }
  0xa9   :  { %1420 = vmatpush1.bf16.msra.mxu1 %v4222_v61  ;;  %783 = vmatprep.subr.bf16.mxu0 %v3594_v62  ;;  %5739 = vst [vmem:[#allocation33_spill] sm:$0xff] %v4307_v60  ;;  %v4309_v62 = vld [vmem:[#allocation8 + $0xd0] ss:$24 sps:$4 sm:$0xff]  }
  0xaa   :  { %1421 = vmatprep.subr.bf16.mxu1 %v4225_v63  ;;  %5740 = vst [vmem:[#allocation34_spill] sm:$0xff] %v4309_v62 }
  0xac   :  { %784 = vmatpush1.bf16.msra.mxu0 %v3592_v0  ;;  %v4313_v0 = vld [vmem:[#allocation8 + $0xfc] ss:$24 sps:$4 sm:$0xff]  }
  0xad   :  { %1422 = vmatpush1.bf16.msra.mxu1 %v4228_v1  ;;  %785 = vmatprep.subr.bf16.mxu0 %v3600_v2  ;;  %5741 = vst [vmem:[#allocation35_spill] sm:$0xff] %v4313_v0  ;;  %v4315_v2 = vld [vmem:[#allocation8 + $0x104] ss:$24 sps:$4 sm:$0xff]  }
  0xae   :  { %1423 = vmatprep.subr.bf16.mxu1 %v4231_v3  ;;  %5742 = vst [vmem:[#allocation36_spill] sm:$0xff] %v4315_v2  ;;  %v4429_v3 = vld [vmem:[#allocation8 + $0x2b0] ss:$24 sps:$4 sm:$0xff]   ;;  %v4435_v1 = vld [vmem:[#allocation8 + $0x2e4] ss:$24 sps:$4 sm:$0xff]  }
  0xb0   :  { %786 = vmatpush1.bf16.msra.mxu0 %v3598_v8  ;;  %v4319_v8 = vld [vmem:[#allocation8 + $0xf8] ss:$24 sps:$4 sm:$0xff]  }
  0xb1   :  { %1424 = vmatpush1.bf16.msra.mxu1 %v4237_v10  ;;  %787 = vmatprep.subr.bf16.mxu0 %v3606_v12  ;;  %5743 = vst [vmem:[#allocation37_spill] sm:$0xff] %v4319_v8  ;;  %v4321_v12 = vld [vmem:[#allocation8 + $0x100] ss:$24 sps:$4 sm:$0xff]   ;;  %v4423_v10 = vld [vmem:[#allocation8 + $0x2b4] ss:$24 sps:$4 sm:$0xff]  }
  0xb2   :  { %1425 = vmatprep.subr.bf16.mxu1 %v4240_v14  ;;  %5744 = vst [vmem:[#allocation38_spill] sm:$0xff] %v4321_v12  ;;  %v4417_v14 = vld [vmem:[#allocation8 + $0x280] ss:$24 sps:$4 sm:$0xff]  }
  0xb4   :  { %788 = vmatpush1.bf16.msra.mxu0 %v3604_v16  ;;  %v4325_v16 = vld [vmem:[#allocation8 + $0x12c] ss:$24 sps:$4 sm:$0xff]  }
  0xb5   :  { %1426 = vmatpush1.bf16.msra.mxu1 %v4245_v21  ;;  %1436 = vmatprep.subr.bf16.mxu0 %v4248_v24  ;;  %5745 = vst [vmem:[#allocation39_spill] sm:$0xff] %v4325_v16  ;;  %v4411_v21 = vld [vmem:[#allocation8 + $0x284] ss:$24 sps:$4 sm:$0xff]  }
  0xb6   :  { %1477 = vmatprep.subr.bf16.mxu1 %v4250_v26  ;;  %v4405_v26 = vld [vmem:[#allocation8 + $0x250] ss:$24 sps:$4 sm:$0xff]   ;;  %5774 = vst [vmem:[#allocation68_spill] sm:$0xff] %v4411_v21 }
  0xb7   :  { %790 = vmatmul.mubr.bf16.vlgmr.msra.gmra.mrb[4].mxu0 %v4130_v5  ;;  %v4283_v5 = vld [vmem:[#allocation8 + $0x68] ss:$24 sps:$4 sm:$0xff]   ;;  %5772 = vst [vmem:[#allocation66_spill] sm:$0xff] %v4405_v26 }
  0xb8   :  { %1428 = vmatmul.mubr.bf16.vlgmr.msra.gmra.mrb[4].mxu1 %v4252_v29  ;;  %1437 = vmatpush1.bf16.msra.mxu0 %v4255_v31 }
  0xb9   :  { %1478 = vmatpush1.bf16.msra.mxu1 %v4257_v34  ;;  %1438 = vmatprep.subr.bf16.mxu0 %v4261_v35  ;;  %v4375_v34 = vld [vmem:[#allocation8 + $0x1f4] ss:$24 sps:$4 sm:$0xff]  }
  0xba   :  { %1479 = vmatprep.subr.bf16.mxu1 %v4263_v37  ;;  %1468 = vmatprep.mubr.bf16.mxu0 %v4188_v39  ;;  %v4369_v37 = vld [vmem:[#allocation8 + $0x1c0] ss:$24 sps:$4 sm:$0xff]   ;;  %5762 = vst [vmem:[#allocation56_spill] sm:$0xff] %v4375_v34 }
  0xbb   :  { %1509 = vmatprep.mubr.bf16.mxu1 %v4188_v39  ;;  %v4295_v39 = vld [vmem:[#allocation8 + $0x98] ss:$24 sps:$4 sm:$0xff]   ;;  %5760 = vst [vmem:[#allocation54_spill] sm:$0xff] %v4369_v37 }
  0xbc   :  { %1439 = vmatpush1.bf16.msra.mxu0 %v4269_v40  ;;  %5735 = vst [vmem:[#allocation29_spill] sm:$0xff] %v4295_v39 }
  0xbd   :  { %1480 = vmatpush1.bf16.msra.mxu1 %v4271_v42  ;;  %1440 = vmatprep.subr.bf16.mxu0 %v4275_v44  ;;  %v4363_v42 = vld [vmem:[#allocation8 + $0x1c4] ss:$24 sps:$4 sm:$0xff]  }
  0xbe   :  { %1481 = vmatprep.subr.bf16.mxu1 %v4277_v46  ;;  %v4357_v46 = vld [vmem:[#allocation8 + $0x190] ss:$24 sps:$4 sm:$0xff]   ;;  %5758 = vst [vmem:[#allocation52_spill] sm:$0xff] %v4363_v42 }
  0xbf   :  { %5756 = vst [vmem:[#allocation50_spill] sm:$0xff] %v4357_v46 }
  0xc0   :  { %1441 = vmatpush1.bf16.msra.mxu0 %v4283_v5 }
  0xc1   :  { %1482 = vmatpush1.bf16.msra.mxu1 %v4285_v48  ;;  %1442 = vmatprep.subr.bf16.mxu0 %v4289_v50  ;;  %v4351_v48 = vld [vmem:[#allocation8 + $0x194] ss:$24 sps:$4 sm:$0xff]  }
  0xc2   :  { %1483 = vmatprep.subr.bf16.mxu1 %v4291_v52  ;;  %v4345_v52 = vld [vmem:[#allocation8 + $0x160] ss:$24 sps:$4 sm:$0xff]   ;;  %5754 = vst [vmem:[#allocation48_spill] sm:$0xff] %v4351_v48 }
  0xc3   :  { %5752 = vst [vmem:[#allocation46_spill] sm:$0xff] %v4345_v52 }
  0xc4   :  { %1443 = vmatpush1.bf16.msra.mxu0 %v4295_v39 }
  0xc5   :  { %1484 = vmatpush1.bf16.msra.mxu1 %v4297_v54  ;;  %1444 = vmatprep.subr.bf16.mxu0 %v4301_v56  ;;  %v4339_v54 = vld [vmem:[#allocation8 + $0x164] ss:$24 sps:$4 sm:$0xff]  }
  0xc6   :  { %1485 = vmatprep.subr.bf16.mxu1 %v4303_v58  ;;  %v4333_v58 = vld [vmem:[#allocation8 + $0x130] ss:$24 sps:$4 sm:$0xff]   ;;  %5750 = vst [vmem:[#allocation44_spill] sm:$0xff] %v4339_v54 }
  0xc7   :  { %5748 = vst [vmem:[#allocation42_spill] sm:$0xff] %v4333_v58 }
  0xc8   :  { %1445 = vmatpush1.bf16.msra.mxu0 %v4307_v60 }
  0xc9   :  { %1486 = vmatpush1.bf16.msra.mxu1 %v4309_v62  ;;  %1446 = vmatprep.subr.bf16.mxu0 %v4313_v0  ;;  %v4337_v62 = vld [vmem:[#allocation8 + $0x15c] ss:$24 sps:$4 sm:$0xff]  }
  0xca   :  { %1487 = vmatprep.subr.bf16.mxu1 %v4315_v2  ;;  %5749 = vst [vmem:[#allocation43_spill] sm:$0xff] %v4337_v62  ;;  %v4343_v2 = vld [vmem:[#allocation8 + $0x158] ss:$24 sps:$4 sm:$0xff]  }
  0xcb   :  { %5751 = vst [vmem:[#allocation45_spill] sm:$0xff] %v4343_v2 }
  0xcc   :  { %1447 = vmatpush1.bf16.msra.mxu0 %v4319_v8 }
  0xcd   :  { %1488 = vmatpush1.bf16.msra.mxu1 %v4321_v12  ;;  %1448 = vmatprep.subr.bf16.mxu0 %v4325_v16  ;;  %v4349_v12 = vld [vmem:[#allocation8 + $0x18c] ss:$24 sps:$4 sm:$0xff]  }
  0xce   :  { %1489 = vmatprep.subr.bf16.mxu1 %v4327_v19  ;;  %5753 = vst [vmem:[#allocation47_spill] sm:$0xff] %v4349_v12  ;;  %v4355_v19 = vld [vmem:[#allocation8 + $0x188] ss:$24 sps:$4 sm:$0xff]  }
  0xcf   :  { %5755 = vst [vmem:[#allocation49_spill] sm:$0xff] %v4355_v19 }
  0xd0   :  { %1449 = vmatpush1.bf16.msra.mxu0 %v4331_v18 }
  0xd1   :  { %1490 = vmatpush1.bf16.msra.mxu1 %v4333_v58  ;;  %1450 = vmatprep.subr.bf16.mxu0 %v4337_v62  ;;  %v4361_v58 = vld [vmem:[#allocation8 + $0x1bc] ss:$24 sps:$4 sm:$0xff]  }
  0xd2   :  { %1491 = vmatprep.subr.bf16.mxu1 %v4339_v54  ;;  %5757 = vst [vmem:[#allocation51_spill] sm:$0xff] %v4361_v58  ;;  %v4367_v54 = vld [vmem:[#allocation8 + $0x1b8] ss:$24 sps:$4 sm:$0xff]  }
  0xd3   :  { %5759 = vst [vmem:[#allocation53_spill] sm:$0xff] %v4367_v54 }
  0xd4   :  { %1451 = vmatpush1.bf16.msra.mxu0 %v4343_v2 }
  0xd5   :  { %1492 = vmatpush1.bf16.msra.mxu1 %v4345_v52  ;;  %1452 = vmatprep.subr.bf16.mxu0 %v4349_v12  ;;  %v4373_v52 = vld [vmem:[#allocation8 + $0x1ec] ss:$24 sps:$4 sm:$0xff]  }
  0xd6   :  { %1493 = vmatprep.subr.bf16.mxu1 %v4351_v48  ;;  %5761 = vst [vmem:[#allocation55_spill] sm:$0xff] %v4373_v52  ;;  %v4379_v48 = vld [vmem:[#allocation8 + $0x1e8] ss:$24 sps:$4 sm:$0xff]  }
  0xd7   :  { %5763 = vst [vmem:[#allocation57_spill] sm:$0xff] %v4379_v48 }
  0xd8   :  { %1453 = vmatpush1.bf16.msra.mxu0 %v4355_v19 }
  0xd9   :  { %1494 = vmatpush1.bf16.msra.mxu1 %v4357_v46  ;;  %1454 = vmatprep.subr.bf16.mxu0 %v4361_v58  ;;  %v4385_v46 = vld [vmem:[#allocation8 + $0x21c] ss:$24 sps:$4 sm:$0xff]  }
  0xda   :  { %1495 = vmatprep.subr.bf16.mxu1 %v4363_v42  ;;  %5765 = vst [vmem:[#allocation59_spill] sm:$0xff] %v4385_v46  ;;  %v4391_v42 = vld [vmem:[#allocation8 + $0x218] ss:$24 sps:$4 sm:$0xff]  }
  0xdb   :  { %5767 = vst [vmem:[#allocation61_spill] sm:$0xff] %v4391_v42 }
  0xdc   :  { %1455 = vmatpush1.bf16.msra.mxu0 %v4367_v54 }
  0xdd   :  { %1496 = vmatpush1.bf16.msra.mxu1 %v4369_v37  ;;  %1456 = vmatprep.subr.bf16.mxu0 %v4373_v52  ;;  %v4397_v37 = vld [vmem:[#allocation8 + $0x24c] ss:$24 sps:$4 sm:$0xff]  }
  0xde   :  { %1497 = vmatprep.subr.bf16.mxu1 %v4375_v34  ;;  %5769 = vst [vmem:[#allocation63_spill] sm:$0xff] %v4397_v37  ;;  %v4403_v34 = vld [vmem:[#allocation8 + $0x248] ss:$24 sps:$4 sm:$0xff]  }
  0xdf   :  { %5771 = vst [vmem:[#allocation65_spill] sm:$0xff] %v4403_v34 }
  0xe0   :  { %1457 = vmatpush1.bf16.msra.mxu0 %v4379_v48 }
  0xe1   :  { %1498 = vmatpush1.bf16.msra.mxu1 %v4381_v33  ;;  %1458 = vmatprep.subr.bf16.mxu0 %v4385_v46  ;;  %v4409_v33 = vld [vmem:[#allocation8 + $0x27c] ss:$24 sps:$4 sm:$0xff]  }
  0xe2   :  { %1499 = vmatprep.subr.bf16.mxu1 %v4387_v28  ;;  %5773 = vst [vmem:[#allocation67_spill] sm:$0xff] %v4409_v33  ;;  %v4415_v28 = vld [vmem:[#allocation8 + $0x278] ss:$24 sps:$4 sm:$0xff]  }
  0xe3   :  { %5775 = vst [vmem:[#allocation69_spill] sm:$0xff] %v4415_v28 }
  0xe4   :  { %1459 = vmatpush1.bf16.msra.mxu0 %v4391_v42 }
  0xe5   :  { %1500 = vmatpush1.bf16.msra.mxu1 %v4393_v6  ;;  %1460 = vmatprep.subr.bf16.mxu0 %v4397_v37  ;;  %v4421_v6 = vld [vmem:[#allocation8 + $0x2ac] ss:$24 sps:$4 sm:$0xff]  }
  0xe6   :  { %1501 = vmatprep.subr.bf16.mxu1 %v4399_v23  ;;  %5776 = vst [vmem:[#allocation70_spill] sm:$0xff] %v4421_v6  ;;  %v4427_v23 = vld [vmem:[#allocation8 + $0x2a8] ss:$24 sps:$4 sm:$0xff]  }
  0xe7   :  { %5777 = vst [vmem:[#allocation71_spill] sm:$0xff] %v4427_v23 }
  0xe8   :  { %1461 = vmatpush1.bf16.msra.mxu0 %v4403_v34 }
  0xe9   :  { %1502 = vmatpush1.bf16.msra.mxu1 %v4405_v26  ;;  %1462 = vmatprep.subr.bf16.mxu0 %v4409_v33  ;;  %v4433_v26 = vld [vmem:[#allocation8 + $0x2dc] ss:$24 sps:$4 sm:$0xff]  }
  0xea   :  { %1503 = vmatprep.subr.bf16.mxu1 %v4411_v21  ;;  %5778 = vst [vmem:[#allocation72_spill] sm:$0xff] %v4433_v26  ;;  %v4439_v21 = vld [vmem:[#allocation8 + $0x2d8] ss:$24 sps:$4 sm:$0xff]  }
  0xeb   :  { %5779 = vst [vmem:[#allocation73_spill] sm:$0xff] %v4439_v21 }
  0xec   :  { %1463 = vmatpush1.bf16.msra.mxu0 %v4415_v28  ;;  %v4441_v28 = vld [vmem:[#allocation8 + $0x2e0] ss:$24 sps:$4 sm:$0xff]  }
  0xed   :  { %1504 = vmatpush1.bf16.msra.mxu1 %v4417_v14  ;;  %1464 = vmatprep.subr.bf16.mxu0 %v4421_v6 }
  0xee   :  { %1505 = vmatprep.subr.bf16.mxu1 %v4423_v10 }
  0xf0   :  { %1465 = vmatpush1.bf16.msra.mxu0 %v4427_v23 }
  0xf1   :  { %1506 = vmatpush1.bf16.msra.mxu1 %v4429_v3  ;;  %1466 = vmatprep.subr.bf16.mxu0 %v4433_v26 }
  0xf2   :  { %1507 = vmatprep.subr.bf16.mxu1 %v4435_v1 }
  0xf4   :  { %1467 = vmatpush1.bf16.msra.mxu0 %v4439_v21 }
  0xf5   :  { %1508 = vmatpush1.bf16.msra.mxu1 %v4441_v28  ;;  %1632 = vmatprep.subr.bf16.mxu0 %v4128_v4 }
  0xf6   :  { %1673 = vmatprep.subr.bf16.mxu1 %v4248_v24 }
  0xf7   :  { %1469 = vmatmul.mubr.bf16.vlgmr.msra.gmra.mrb[8].mxu0 %v4252_v29 }
  0xf8   :  { %1510 = vmatmul.mubr.bf16.vlgmr.msra.gmra.mrb[8].mxu1 %v4252_v29  ;;  %1633 = vmatpush1.bf16.msra.mxu0 %v4132_v7  ;;  %v5780_v7 = vld [vmem:[#allocation16_spill] sm:$0xff]  ;;  %v5785_v29 = vld [vmem:[#allocation21_spill] sm:$0xff] }
  0xf9   :  { %1674 = vmatpush1.bf16.msra.mxu1 %v4255_v31  ;;  %1634 = vmatprep.subr.bf16.mxu0 %v4135_v9  ;;  %v5781_v9 = vld [vmem:[#allocation69_spill] sm:$0xff] }
  0xfa   :  { %1675 = vmatprep.subr.bf16.mxu1 %v4261_v35 }
  0xfc   :  { %1635 = vmatpush1.bf16.msra.mxu0 %v4140_v11  ;;  %v5782_v11 = vld [vmem:[#allocation17_spill] sm:$0xff] }
  0xfd   :  { %1676 = vmatpush1.bf16.msra.mxu1 %v4269_v40  ;;  %1636 = vmatprep.subr.bf16.mxu0 %v4143_v13  ;;  %v5783_v13 = vld [vmem:[#allocation19_spill] sm:$0xff] }
  0xfe   :  { %1677 = vmatprep.subr.bf16.mxu1 %v4275_v44 }
 0x100   :  { %1637 = vmatpush1.bf16.msra.mxu0 %v4146_v15  ;;  %v5784_v15 = vld [vmem:[#allocation20_spill] sm:$0xff] }
 0x101   :  { %1678 = vmatpush1.bf16.msra.mxu1 %v4283_v5  ;;  %1638 = vmatprep.subr.bf16.mxu0 %v4149_v17 }
 0x102   :  { %1679 = vmatprep.subr.bf16.mxu1 %v4289_v50 }
 0x104   :  { %1639 = vmatpush1.bf16.msra.mxu0 %v4152_v20 }
 0x105   :  { %1680 = vmatpush1.bf16.msra.mxu1 %v4295_v39  ;;  %1640 = vmatprep.subr.bf16.mxu0 %v4155_v22 }
 0x106   :  { %1681 = vmatprep.subr.bf16.mxu1 %v4301_v56 }
 0x108   :  { %1641 = vmatpush1.bf16.msra.mxu0 %v4161_v25 }
 0x109   :  { %1682 = vmatpush1.bf16.msra.mxu1 %v4307_v60  ;;  %1642 = vmatprep.subr.bf16.mxu0 %v4164_v27 }
 0x10a   :  { %1683 = vmatprep.subr.bf16.mxu1 %v4313_v0 }
 0x10c   :  { %1643 = vmatpush1.bf16.msra.mxu0 %v4170_v30 }
 0x10d   :  { %1684 = vmatpush1.bf16.msra.mxu1 %v4319_v8  ;;  %1644 = vmatprep.subr.bf16.mxu0 %v4173_v32 }
 0x10e   :  { %1685 = vmatprep.subr.bf16.mxu1 %v4325_v16 }
 0x110   :  { %1645 = vmatpush1.bf16.msra.mxu0 %v4183_v36 }
 0x111   :  { %1686 = vmatpush1.bf16.msra.mxu1 %v4331_v18  ;;  %1646 = vmatprep.subr.bf16.mxu0 %v4186_v38 }
 0x112   :  { %1687 = vmatprep.subr.bf16.mxu1 %v4337_v62 }
 0x114   :  { %1647 = vmatpush1.bf16.msra.mxu0 %v4192_v41 }
 0x115   :  { %1688 = vmatpush1.bf16.msra.mxu1 %v4343_v2  ;;  %1648 = vmatprep.subr.bf16.mxu0 %v4195_v43 }
 0x116   :  { %1689 = vmatprep.subr.bf16.mxu1 %v4349_v12 }
 0x118   :  { %1649 = vmatpush1.bf16.msra.mxu0 %v4198_v45 }
 0x119   :  { %1690 = vmatpush1.bf16.msra.mxu1 %v4355_v19  ;;  %1650 = vmatprep.subr.bf16.mxu0 %v4201_v47 }
 0x11a   :  { %1691 = vmatprep.subr.bf16.mxu1 %v4361_v58 }
 0x11c   :  { %1651 = vmatpush1.bf16.msra.mxu0 %v4204_v49 }
 0x11d   :  { %1692 = vmatpush1.bf16.msra.mxu1 %v4367_v54  ;;  %1652 = vmatprep.subr.bf16.mxu0 %v4207_v51 }
 0x11e   :  { %1693 = vmatprep.subr.bf16.mxu1 %v4373_v52 }
 0x120   :  { %1653 = vmatpush1.bf16.msra.mxu0 %v4210_v53 }
 0x121   :  { %1694 = vmatpush1.bf16.msra.mxu1 %v4379_v48  ;;  %1654 = vmatprep.subr.bf16.mxu0 %v4213_v55 }
 0x122   :  { %1695 = vmatprep.subr.bf16.mxu1 %v4385_v46 }
 0x124   :  { %1655 = vmatpush1.bf16.msra.mxu0 %v4216_v57 }
 0x125   :  { %1696 = vmatpush1.bf16.msra.mxu1 %v4391_v42  ;;  %1656 = vmatprep.subr.bf16.mxu0 %v4219_v59 }
 0x126   :  { %1697 = vmatprep.subr.bf16.mxu1 %v4397_v37  ;;  %v5788_v37 = vld [vmem:[#allocation18_spill] sm:$0xff] }
 0x128   :  { %1657 = vmatpush1.bf16.msra.mxu0 %v4222_v61 }
 0x129   :  { %1698 = vmatpush1.bf16.msra.mxu1 %v4403_v34  ;;  %1658 = vmatprep.subr.bf16.mxu0 %v4225_v63 }
 0x12a   :  { %1699 = vmatprep.subr.bf16.mxu1 %v4409_v33  ;;  %v5786_v33 = vld [vmem:[#allocation22_spill] sm:$0xff] }
 0x12c   :  { %1659 = vmatpush1.bf16.msra.mxu0 %v5780_v7 }
 0x12d   :  { %1700 = vmatpush1.bf16.msra.mxu1 %v5781_v9  ;;  %1660 = vmatprep.subr.bf16.mxu0 %v5782_v11  ;;  %v5787_v9 = vld [vmem:[#allocation13_spill] sm:$0xff] }
 0x12e   :  { %1701 = vmatprep.subr.bf16.mxu1 %v4421_v6  ;;  %v175_v34 = vsub.s32 2, %v5787_v9  ;;  %v163_v6 = vld [vmem:[%s5473_s3] sm:$0x3f] }
 0x12f   :  { %v168_v42 = vrot.slane %v163_v6, %v5788_v37 }
 0x130   :  { %1661 = vmatpush1.bf16.msra.mxu0 %v5783_v13  ;;  %v176_v46 = vrot.slane %v163_v6, %v175_v34  ;;  %v183_v34 = vsub.s32 4, %v5787_v9 }
 0x131   :  { %1702 = vmatpush1.bf16.msra.mxu1 %v4427_v23  ;;  %1662 = vmatprep.subr.bf16.mxu0 %v5784_v15  ;;  %v179_v23 = vsub.s32 3, %v5787_v9 }
 0x132   :  { %1703 = vmatprep.subr.bf16.mxu1 %v4433_v26  ;;  %v5789_v26 = vld [vmem:[#allocation14_spill] sm:$0xff]  ;;  %v184_v60 = vrot.slane %v163_v6, %v183_v34 }
 0x133   :  { %v172_v48 = vrot.slane %v163_v6, %v5789_v26  ;;  %v180_v52 = vrot.slane %v163_v6, %v179_v23  ;;  %v187_v23 = vsub.s32 5, %v5787_v9 }
 0x134   :  { %1663 = vmatpush1.bf16.msra.mxu0 %v5785_v29 }
 0x135   :  { %1704 = vmatpush1.bf16.msra.mxu1 %v4439_v21  ;;  %1714 = vmatprep.subr.bf16.mxu0 %v5786_v33  ;;  %v188_v56 = vrot.slane %v163_v6, %v187_v23 }
 0x136   :  { %1856 = vmatprep.subr.bf16.mxu1 %v4128_v4 }
 0x14a   :  { %v709_v54 = vpop.f32.mrb[0].mxu0 }
 0x14b   :  { %v750_v21 = vpop.f32.mrb[0].mxu1  ;;  %v710_v58 = vadd.f32 %v709_v54, %v168_v42  ;;  %v711_v12 = vpop.f32.mrb[1].mxu0 }
 0x14c   :  { %v751_v19 = vadd.f32 %v750_v21, %v176_v46  ;;  %v752_v4 = vpop.f32.mrb[1].mxu1  ;;  %v712_v2 = vadd.f32 %v711_v12, %v172_v48  ;;  %v713_v18 = vpop.f32.mrb[2].mxu0 }
 0x14d   :  { %v753_v62 = vadd.f32 %v752_v4, %v180_v52  ;;  %v754_v16 = vpop.f32.mrb[2].mxu1  ;;  %798 = vst [vmem:[#allocation2] sm:$0xff] %v710_v58  ;;  %v714_v8 = vpop.f32.mrb[3].mxu0 }
 0x14e   :  { %800 = vst [vmem:[#allocation2 + $0x10] sm:$0xff] %v751_v19  ;;  %v755_v0 = vpop.f32.mrb[3].mxu1  ;;  %799 = vst [vmem:[#allocation2 + $0x8] sm:$0xff] %v712_v2 }
 0x14f   :  { %801 = vst [vmem:[#allocation2 + $0x18] sm:$0xff] %v753_v62  ;;  %v4049_v62 = vmov 1966171168  }
 0x150   :  { %v1525_v2 = vunpack.c.l.s4 %v4049_v62 }
 0x152   :  { %v1526_v16 = vunpack.c.0.s8 %v1525_v2 }
 0x154   :  { %v4525_v19 = vsub.s32 %v1526_v16, %v5787_v9 }
 0x18a   :  { %v791_v42 = vpop.f32.mrb[4].mxu0 }
 0x18b   :  { %v1429_v21 = vpop.f32.mrb[4].mxu1  ;;  %v792_v46 = vadd.f32 %v791_v42, %v184_v60  ;;  %v793_v54 = vpop.f32.mrb[5].mxu0  ;;  %v1518_v60 = vld [vmem:[#allocation2] ss:$8 sm:$0xf] }
 0x18c   :  { %v1431_v48 = vpop.f32.mrb[5].mxu1  ;;  %v794_v52 = vadd.f32 %v793_v54, %v188_v56  ;;  %v795_v18 = vpop.f32.mrb[6].mxu0 }
 0x18d   :  { %v1523_v12 = vcombine.low %v1429_v21, %v1431_v48  ;;  %v1433_v58 = vpop.f32.mrb[6].mxu1  ;;  %802 = vst [vmem:[#allocation2 + $0x20] sm:$0xff] %v792_v46  ;;  %v796_v8 = vpop.f32.mrb[7].mxu0  ;;  %v900_v46 = vld [vmem:[%s5474_s4] sm:$0x3]  ;;  %s4050_s4 = smov [#allocation9]  }
 0x18e   :  { %v1434_v0 = vpop.f32.mrb[7].mxu1  ;;  %803 = vst [vmem:[#allocation2 + $0x28] sm:$0xff] %v794_v52  ;;  %v4533_v48 = vrot.slane %v900_v46, %v5788_v37  ;;  %v4536_v9 = vrot.slane %v900_v46, %v5789_v26  ;;  %s3193_s12 = sshll.u32 %s4050_s4, 4  ;;  %s3194_s12 = int_to_ptr.vmem [resolvable:$true] %s3193_s12 }
 0x18f   :  { %v1530_v6 = vrot.slane %v1523_v12, %v4525_v19  ;;  %s4016_s13 = scalar_lea.vmem %s3194_s12, 256  ;;  %p4021_p11 = scmp.lt.s32.totalorder %s3194_s12, %s3194_s12 }
 0x190   :  { %5790 = vst [vmem:[#allocation16_spill] sm:$0xff] %v4533_v48  ;;  %p4017_p10 = scmp.ne.s32.totalorder %s3194_s12, %s4016_s13  ;;  %p4022_p12 = scmp.lt.s32.totalorder %s4016_s13, %s4016_s13 }
 0x191   :  { %v1537_v56 = vrot.slane %v1530_v6, %v4525_v19 }
 0x192   :  { %p4023_p13 = por %p4022_p12, %p4021_p11 }
 0x194   :  { %p4024_p0 = pnand %p4023_p13, %p4017_p10 }
 0x195   :  { %v1519_v4 = vld [vmem:[#allocation2] ss:$8 sm:$0x30] }
 0x196   :  { %v1520_v34 = vor.u32 %v1519_v4, %v1518_v60 }
 0x198   :  { %v1539_v23 = vadd.f32 %v1537_v56, %v1520_v34 }
 0x19a   :  { %v3395_v42 = vmul.f32 -1.442695, %v1539_v23  ;;  %v1547_v23 = vrot.slane %v1520_v34, 2 }
 0x19c   :  { %3706 = vpow2.f32 %v3395_v42 }
 0x1a6   :  { %v3707_v21 = vpop.eup %3706 }
 0x1a7   :  { %v1543_v54 = vadd.f32 1.0, %v3707_v21 }
 0x1a9   :  { %3708 = vrcp.f32 %v1543_v54 }
 0x1ca   :  { %v1470_v52 = vpop.f32.mrb[8].mxu0 }
 0x1cb   :  { %v1511_v18 = vpop.f32.mrb[8].mxu1  ;;  %v1472_v58 = vpop.f32.mrb[9].mxu0 }
 0x1cc   :  { %v1585_v12 = vadd.f32 %v4533_v48, %v1511_v18  ;;  %v1513_v8 = vpop.f32.mrb[9].mxu1  ;;  %v1551_v0 = vcombine.low %v1470_v52, %v1472_v58  ;;  %v1474_v2 = vpop.f32.mrb[10].mxu0  ;;  %v1606_v58 = vrot.slane %v1520_v34, 4 }
 0x1cd   :  { %v1586_v62 = vadd.f32 %v4536_v9, %v1513_v8  ;;  %v1515_v16 = vpop.f32.mrb[10].mxu1  ;;  %v1475_v6 = vpop.f32.mrb[11].mxu0 }
 0x1ce   :  { %v1516_v4 = vpop.f32.mrb[11].mxu1  ;;  %v1558_v60 = vrot.slane %v1551_v0, %v4525_v19  ;;  %v3709_v18 = vpop.eup %3708 }
 0x1cf   :  { %v1589_v56 = vcombine.low %v1585_v12, %v1586_v62  ;;  %v5791_v12 = vld [vmem:[#allocation15_spill] sm:$0xff] }
 0x1d0   :  { %v1565_v42 = vrot.slane %v1558_v60, %v4525_v19  ;;  %v5792_v60 = vlaneseq }
 0x1d1   :  { %v1596_v21 = vrot.slane %v1589_v56, %v4525_v19 }
 0x1d2   :  { %v1567_v46 = vadd.f32 %v1565_v42, %v1547_v23  ;;  %vm4546_vm0 = vcmp.lt.s32.totalorder %v5792_v60, 256  ;;  %v5803_v60 = vld [vmem:[#allocation34_spill] sm:$0xff] }
 0x1d3   :  { %v1603_v54 = vrot.slane %v1596_v21, %v4525_v19 }
 0x1d4   :  { %v3396_v48 = vmul.f32 -1.442695, %v1567_v46  ;;  %v5795_v46 = vld [vmem:[#allocation23_spill] sm:$0xff] }
 0x1d5   :  { %v1605_v52 = vmul.f32 %v3709_v18, %v1603_v54  ;;  %v5796_v54 = vld [vmem:[#allocation24_spill] sm:$0xff]  ;;  %v4565_v18 = vld [vmem:[#allocation8] ss:$24 sps:$4 sm:$0xff]  }
 0x1d6   :  { %3710 = vpow2.f32 %v3396_v48 }
 0x1d7   :  { %v1608_v8 = vadd.f32 %v1606_v58, %v1605_v52  ;;  %v4568_v52 = vld [vmem:[#allocation8 + $0x34] ss:$24 sps:$4 sm:$0xff]  }
 0x1d8   :  { %v5797_v58 = vld [vmem:[#allocation25_spill] sm:$0xff] }
 0x1d9   :  { %3712 = vtanh.f32 %v1608_v8  ;;  %v5798_v8 = vld [vmem:[#allocation26_spill] sm:$0xff] }
 0x1e0   :  { %v3711_v2 = vpop.eup %3710 }
 0x1e1   :  { %v1571_v16 = vadd.f32 1.0, %v3711_v2  ;;  %v4573_v2 = vld [vmem:[#allocation8 + $0x30] ss:$24 sps:$4 sm:$0xff]  }
 0x1e3   :  { %3714 = vrcp.f32 %v1571_v16  ;;  %v3713_v0 = vpop.eup %3712  ;;  %v4576_v16 = vld [vmem:[#allocation8 + $0x64] ss:$24 sps:$4 sm:$0xff]  }
 0x1e4   :  { %v1610_v62 = vsub.f32 %v5791_v12, %v3713_v0  ;;  %v5800_v12 = vld [vmem:[#allocation28_spill] sm:$0xff] }
 0x1ed   :  { %v3715_v6 = vpop.eup %3714 }
 0x1ee   :  { %v1611_v4 = vmul.f32 %v3715_v6, %v1610_v62  ;;  %v4581_v62 = vld [vmem:[#allocation8 + $0x60] ss:$24 sps:$4 sm:$0xff]  }
 0x1ef   :  { %v5801_v6 = vld [vmem:[#allocation30_spill] sm:$0xff] }
 0x1f0   :  { %v4550_v23 = vadd.f32 %v3713_v0, %v1611_v4  ;;  %v5799_v0 = vld [vmem:[#allocation27_spill] sm:$0xff]  ;;  %v5802_v4 = vld [vmem:[#allocation32_spill] sm:$0xff] }
 0x1f2   :  { %1617 = vst.msk [vmem:[#allocation9] ss:$8 sm:$0x3] %vm4546_vm0, %v4550_v23  ;;  %v1627_v34 = vrot.slane %v4550_v23, %v5789_v26  ;;  %v1623_v48 = vrot.slane %v4550_v23, %v5788_v37 }
 0x1f4   :  { %v1631_v42 = vpack.c.bf16 %v1627_v34, %v1627_v34  ;;  %v4559_v21 = vpack.c.bf16 %v1623_v48, %v1623_v48  ;;  %v5804_v34 = vld [vmem:[#allocation36_spill] sm:$0xff]  ;;  %v5805_v48 = vld [vmem:[#allocation38_spill] sm:$0xff] }
 0x1f6   :  { %1664 = vmatprep.mubr.bf16.mxu0 %v1631_v42  ;;  %1705 = vmatprep.mubr.bf16.mxu1 %v1631_v42 }
 0x1f7   :  { %1665 = vmatmul.mubr.bf16.vlgmr.msra.gmra.mrb[12].mxu0 %v4559_v21  ;;  %1706 = vmatmul.mubr.bf16.vlgmr.msra.gmra.mrb[12].mxu1 %v4559_v21 }
 0x1f8   :  { %1715 = vmatpush1.bf16.msra.mxu0 %v5795_v46  ;;  %1746 = vmatprep.mubr.bf16.mxu0 %v1631_v42  ;;  %v5806_v42 = vld [vmem:[#allocation40_spill] sm:$0xff] }
 0x1f9   :  { %1716 = vmatprep.subr.bf16.mxu0 %v5796_v54  ;;  %1857 = vmatpush1.bf16.msra.mxu1 %v4565_v18 }
 0x1fa   :  { %1858 = vmatprep.subr.bf16.mxu1 %v4568_v52 }
 0x1fc   :  { %1717 = vmatpush1.bf16.msra.mxu0 %v5797_v58 }
 0x1fd   :  { %1718 = vmatprep.subr.bf16.mxu0 %v5798_v8  ;;  %1859 = vmatpush1.bf16.msra.mxu1 %v4573_v2 }
 0x1fe   :  { %1860 = vmatprep.subr.bf16.mxu1 %v4576_v16 }
 0x200   :  { %1719 = vmatpush1.bf16.msra.mxu0 %v5799_v0 }
 0x201   :  { %1720 = vmatprep.subr.bf16.mxu0 %v5800_v12  ;;  %1861 = vmatpush1.bf16.msra.mxu1 %v4581_v62 }
 0x202   :  { %1862 = vmatprep.subr.bf16.mxu1 %v4149_v17  ;;  %v5807_v17 = vld [vmem:[#allocation42_spill] sm:$0xff] }
 0x204   :  { %1721 = vmatpush1.bf16.msra.mxu0 %v5801_v6 }
 0x205   :  { %1722 = vmatprep.subr.bf16.mxu0 %v5802_v4  ;;  %1863 = vmatpush1.bf16.msra.mxu1 %v4152_v20  ;;  %v5808_v20 = vld [vmem:[#allocation44_spill] sm:$0xff] }
 0x206   :  { %1864 = vmatprep.subr.bf16.mxu1 %v4155_v22  ;;  %v5809_v22 = vld [vmem:[#allocation46_spill] sm:$0xff] }
 0x208   :  { %1723 = vmatpush1.bf16.msra.mxu0 %v5803_v60 }
 0x209   :  { %1724 = vmatprep.subr.bf16.mxu0 %v5804_v34  ;;  %1865 = vmatpush1.bf16.msra.mxu1 %v4161_v25  ;;  %v5810_v25 = vld [vmem:[#allocation48_spill] sm:$0xff] }
 0x20a   :  { %1866 = vmatprep.subr.bf16.mxu1 %v4164_v27  ;;  %v5811_v27 = vld [vmem:[#allocation50_spill] sm:$0xff] }
 0x20c   :  { %1725 = vmatpush1.bf16.msra.mxu0 %v5805_v48 }
 0x20d   :  { %1726 = vmatprep.subr.bf16.mxu0 %v5806_v42  ;;  %1867 = vmatpush1.bf16.msra.mxu1 %v4170_v30  ;;  %v5812_v30 = vld [vmem:[#allocation52_spill] sm:$0xff] }
 0x20e   :  { %1868 = vmatprep.subr.bf16.mxu1 %v4173_v32  ;;  %v5813_v32 = vld [vmem:[#allocation54_spill] sm:$0xff] }
 0x210   :  { %1727 = vmatpush1.bf16.msra.mxu0 %v5807_v17 }
 0x211   :  { %1728 = vmatprep.subr.bf16.mxu0 %v5808_v20  ;;  %1869 = vmatpush1.bf16.msra.mxu1 %v4183_v36  ;;  %v5814_v36 = vld [vmem:[#allocation56_spill] sm:$0xff] }
 0x212   :  { %1870 = vmatprep.subr.bf16.mxu1 %v4186_v38  ;;  %v5815_v38 = vld [vmem:[#allocation58_spill] sm:$0xff] }
 0x214   :  { %1729 = vmatpush1.bf16.msra.mxu0 %v5809_v22 }
 0x215   :  { %1730 = vmatprep.subr.bf16.mxu0 %v5810_v25  ;;  %1871 = vmatpush1.bf16.msra.mxu1 %v4192_v41  ;;  %v5816_v41 = vld [vmem:[#allocation60_spill] sm:$0xff] }
 0x216   :  { %1872 = vmatprep.subr.bf16.mxu1 %v4195_v43  ;;  %v5817_v43 = vld [vmem:[#allocation62_spill] sm:$0xff] }
 0x218   :  { %1731 = vmatpush1.bf16.msra.mxu0 %v5811_v27 }
 0x219   :  { %1732 = vmatprep.subr.bf16.mxu0 %v5812_v30  ;;  %1873 = vmatpush1.bf16.msra.mxu1 %v4198_v45  ;;  %v5818_v45 = vld [vmem:[#allocation64_spill] sm:$0xff] }
 0x21a   :  { %1874 = vmatprep.subr.bf16.mxu1 %v4201_v47  ;;  %v5819_v47 = vld [vmem:[#allocation66_spill] sm:$0xff] }
 0x21c   :  { %1733 = vmatpush1.bf16.msra.mxu0 %v5813_v32 }
 0x21d   :  { %1734 = vmatprep.subr.bf16.mxu0 %v5814_v36  ;;  %1875 = vmatpush1.bf16.msra.mxu1 %v4204_v49  ;;  %v5820_v49 = vld [vmem:[#allocation68_spill] sm:$0xff] }
 0x21e   :  { %1876 = vmatprep.subr.bf16.mxu1 %v4207_v51  ;;  %v5821_v51 = vld [vmem:[#allocation31_spill] sm:$0xff] }
 0x220   :  { %1735 = vmatpush1.bf16.msra.mxu0 %v5815_v38 }
 0x221   :  { %1736 = vmatprep.subr.bf16.mxu0 %v5816_v41  ;;  %1877 = vmatpush1.bf16.msra.mxu1 %v4210_v53  ;;  %v5822_v53 = vld [vmem:[#allocation33_spill] sm:$0xff] }
 0x222   :  { %1878 = vmatprep.subr.bf16.mxu1 %v4213_v55  ;;  %v5824_v55 = vld [vmem:[#allocation37_spill] sm:$0xff] }
 0x224   :  { %1737 = vmatpush1.bf16.msra.mxu0 %v5817_v43 }
 0x225   :  { %1738 = vmatprep.subr.bf16.mxu0 %v5818_v45  ;;  %1879 = vmatpush1.bf16.msra.mxu1 %v4216_v57  ;;  %v5825_v57 = vld [vmem:[#allocation39_spill] sm:$0xff] }
 0x226   :  { %1880 = vmatprep.subr.bf16.mxu1 %v4219_v59  ;;  %v5826_v59 = vld [vmem:[#allocation41_spill] sm:$0xff] }
 0x228   :  { %1739 = vmatpush1.bf16.msra.mxu0 %v5819_v47 }
 0x229   :  { %1740 = vmatprep.subr.bf16.mxu0 %v5820_v49  ;;  %1881 = vmatpush1.bf16.msra.mxu1 %v4222_v61  ;;  %v5827_v61 = vld [vmem:[#allocation43_spill] sm:$0xff] }
 0x22a   :  { %1882 = vmatprep.subr.bf16.mxu1 %v4225_v63  ;;  %v5828_v63 = vld [vmem:[#allocation45_spill] sm:$0xff] }
 0x22c   :  { %1741 = vmatpush1.bf16.msra.mxu0 %v4417_v14 }
 0x22d   :  { %1742 = vmatprep.subr.bf16.mxu0 %v4423_v10  ;;  %1883 = vmatpush1.bf16.msra.mxu1 %v5780_v7  ;;  %v5833_v7 = vld [vmem:[#allocation55_spill] sm:$0xff] }
 0x22e   :  { %1884 = vmatprep.subr.bf16.mxu1 %v5782_v11  ;;  %v5834_v11 = vld [vmem:[#allocation57_spill] sm:$0xff] }
 0x230   :  { %1743 = vmatpush1.bf16.msra.mxu0 %v4429_v3 }
 0x231   :  { %1744 = vmatprep.subr.bf16.mxu0 %v4435_v1  ;;  %1885 = vmatpush1.bf16.msra.mxu1 %v5783_v13  ;;  %v5835_v13 = vld [vmem:[#allocation59_spill] sm:$0xff] }
 0x232   :  { %1886 = vmatprep.subr.bf16.mxu1 %v5784_v15  ;;  %v5836_v15 = vld [vmem:[#allocation61_spill] sm:$0xff] }
 0x234   :  { %1745 = vmatpush1.bf16.msra.mxu0 %v4441_v28 }
 0x235   :  { %1897 = vmatprep.subr.bf16.mxu0 %v4248_v24  ;;  %1887 = vmatpush1.bf16.msra.mxu1 %v5785_v29  ;;  %v5829_v24 = vld [vmem:[#allocation47_spill] sm:$0xff] }
 0x236   :  { %1938 = vmatprep.subr.bf16.mxu1 %v5786_v33  ;;  %v5823_v33 = vld [vmem:[#allocation35_spill] sm:$0xff] }
 0x237   :  { %1747 = vmatmul.mubr.bf16.vlgmr.msra.gmra.mrb[16].mxu0 %v4559_v21  ;;  %v5837_v29 = vld [vmem:[#allocation63_spill] sm:$0xff]  ;;  %v5838_v21 = vld [vmem:[#allocation65_spill] sm:$0xff] }
 0x238   :  { %1898 = vmatpush1.bf16.msra.mxu0 %v4255_v31  ;;  %v5830_v31 = vld [vmem:[#allocation49_spill] sm:$0xff] }
 0x239   :  { %1899 = vmatprep.subr.bf16.mxu0 %v4261_v35  ;;  %v5831_v35 = vld [vmem:[#allocation51_spill] sm:$0xff] }
 0x23c   :  { %1900 = vmatpush1.bf16.msra.mxu0 %v4269_v40  ;;  %v5832_v40 = vld [vmem:[#allocation53_spill] sm:$0xff] }
 0x23d   :  { %1901 = vmatprep.subr.bf16.mxu0 %v4275_v44 }
 0x240   :  { %1902 = vmatpush1.bf16.msra.mxu0 %v4283_v5 }
 0x241   :  { %1903 = vmatprep.subr.bf16.mxu0 %v4289_v50 }
 0x244   :  { %1904 = vmatpush1.bf16.msra.mxu0 %v4295_v39 }
 0x245   :  { %1905 = vmatprep.subr.bf16.mxu0 %v5821_v51 }
 0x248   :  { %1906 = vmatpush1.bf16.msra.mxu0 %v5822_v53 }
 0x249   :  { %1907 = vmatprep.subr.bf16.mxu0 %v5823_v33 }
 0x24c   :  { %1908 = vmatpush1.bf16.msra.mxu0 %v5824_v55  ;;  %v1757_v55 = vld [vmem:[#allocation2 + $0x1] ss:$8 sm:$0x30] }
 0x24d   :  { %1909 = vmatprep.subr.bf16.mxu0 %v5825_v57 }
 0x250   :  { %1910 = vmatpush1.bf16.msra.mxu0 %v5826_v59 }
 0x251   :  { %1911 = vmatprep.subr.bf16.mxu0 %v5827_v61 }
 0x254   :  { %1912 = vmatpush1.bf16.msra.mxu0 %v5828_v63  ;;  %v5839_v63 = vld [vmem:[#allocation67_spill] sm:$0xff] }
 0x255   :  { %1913 = vmatprep.subr.bf16.mxu0 %v5829_v24  ;;  %v5840_v24 = vld [vmem:[#allocation69_spill] sm:$0xff] }
 0x258   :  { %1914 = vmatpush1.bf16.msra.mxu0 %v5830_v31  ;;  %v5841_v31 = vld [vmem:[#allocation70_spill] sm:$0xff] }
 0x259   :  { %1915 = vmatprep.subr.bf16.mxu0 %v5831_v35  ;;  %v5842_v35 = vld [vmem:[#allocation71_spill] sm:$0xff] }
 0x25c   :  { %1916 = vmatpush1.bf16.msra.mxu0 %v5832_v40  ;;  %v5843_v40 = vld [vmem:[#allocation72_spill] sm:$0xff] }
 0x25d   :  { %1917 = vmatprep.subr.bf16.mxu0 %v5833_v7  ;;  %v5844_v7 = vld [vmem:[#allocation73_spill] sm:$0xff] }
 0x260   :  { %1918 = vmatpush1.bf16.msra.mxu0 %v5834_v11  ;;  %v4669_v11 = vld [vmem:[#allocation8 + $0x4] ss:$24 sps:$4 sm:$0xff]  }
 0x261   :  { %1919 = vmatprep.subr.bf16.mxu0 %v5835_v13  ;;  %5845 = vst [vmem:[#allocation17_spill] sm:$0xff] %v4669_v11 }
 0x264   :  { %1920 = vmatpush1.bf16.msra.mxu0 %v5836_v15 }
 0x265   :  { %1921 = vmatprep.subr.bf16.mxu0 %v5837_v29 }
 0x268   :  { %1922 = vmatpush1.bf16.msra.mxu0 %v5838_v21 }
 0x269   :  { %1923 = vmatprep.subr.bf16.mxu0 %v5839_v63 }
 0x26c   :  { %1924 = vmatpush1.bf16.msra.mxu0 %v5840_v24 }
 0x26d   :  { %1925 = vmatprep.subr.bf16.mxu0 %v5841_v31 }
 0x270   :  { %1926 = vmatpush1.bf16.msra.mxu0 %v5842_v35 }
 0x271   :  { %1927 = vmatprep.subr.bf16.mxu0 %v5843_v40 }
 0x274   :  { %1928 = vmatpush1.bf16.msra.mxu0 %v5844_v7  ;;  %v1756_v7 = vld [vmem:[#allocation2 + $0x1] ss:$8 sm:$0xf] }
 0x275   :  { %2080 = vmatprep.subr.bf16.mxu0 %v4669_v11  ;;  %v1758_v33 = vor.u32 %v1757_v55, %v1756_v7 }
 0x2ca   :  { %v1666_v15 = vpop.f32.mrb[12].mxu0  ;;  %v1707_v29 = vpop.f32.mrb[12].mxu1 }
 0x2cb   :  { %v1668_v13 = vpop.f32.mrb[13].mxu0  ;;  %v1709_v21 = vpop.f32.mrb[13].mxu1 }
 0x2cc   :  { %v1761_v61 = vcombine.low %v1666_v15, %v1668_v13  ;;  %v1789_v63 = vcombine.low %v1707_v29, %v1709_v21  ;;  %v1670_v59 = vpop.f32.mrb[14].mxu0  ;;  %v1711_v24 = vpop.f32.mrb[14].mxu1  ;;  %v1785_v13 = vrot.slane %v1758_v33, 2 }
 0x2cd   :  { %v1671_v57 = vpop.f32.mrb[15].mxu0  ;;  %v1712_v31 = vpop.f32.mrb[15].mxu1 }
 0x2ce   :  { %v1768_v35 = vrot.slane %v1761_v61, %v4525_v19  ;;  %v1796_v11 = vrot.slane %v1789_v63, %v4525_v19  ;;  %v5846_v31 = vld [vmem:[#allocation16_spill] sm:$0xff] }
 0x2d0   :  { %v1775_v40 = vrot.slane %v1768_v35, %v4525_v19  ;;  %v1803_v39 = vrot.slane %v1796_v11, %v4525_v19 }
 0x2d2   :  { %v1777_v53 = vadd.f32 %v1775_v40, %v1758_v33  ;;  %v1805_v15 = vadd.f32 %v1803_v39, %v1785_v13  ;;  %v1833_v13 = vrot.slane %v1758_v33, 4 }
 0x2d4   :  { %v3397_v51 = vmul.f32 -1.442695, %v1777_v53  ;;  %v3398_v24 = vmul.f32 -1.442695, %v1805_v15 }
 0x2d6   :  { %3716 = vpow2.f32 %v3397_v51 }
 0x2d7   :  { %3718 = vpow2.f32 %v3398_v24 }
 0x2e0   :  { %v3717_v59 = vpop.eup %3716 }
 0x2e1   :  { %v1781_v57 = vadd.f32 1.0, %v3717_v59  ;;  %v3719_v7 = vpop.eup %3718 }
 0x2e2   :  { %v1809_v15 = vadd.f32 1.0, %v3719_v7  ;;  %v5865_v7 = vld [vmem:[#allocation35_spill] sm:$0xff] }
 0x2e3   :  { %3720 = vrcp.f32 %v1781_v57 }
 0x2ed   :  { %v3721_v39 = vpop.eup %3720 }
 0x30a   :  { %v1748_v61 = vpop.f32.mrb[16].mxu0 }
 0x30b   :  { %v1812_v29 = vadd.f32 %v1748_v61, %v5846_v31  ;;  %v1750_v35 = vpop.f32.mrb[17].mxu0 }
 0x30c   :  { %v1813_v55 = vadd.f32 %v1750_v35, %v4536_v9  ;;  %v1752_v40 = vpop.f32.mrb[18].mxu0 }
 0x30d   :  { %v1753_v53 = vpop.f32.mrb[19].mxu0 }
 0x30e   :  { %v1816_v51 = vcombine.low %v1812_v29, %v1813_v55 }
 0x310   :  { %v1823_v63 = vrot.slane %v1816_v51, %v4525_v19  ;;  %v5863_v51 = vld [vmem:[#allocation31_spill] sm:$0xff] }
 0x312   :  { %v1830_v11 = vrot.slane %v1823_v63, %v4525_v19  ;;  %v5864_v63 = vld [vmem:[#allocation33_spill] sm:$0xff] }
 0x314   :  { %v1832_v21 = vmul.f32 %v3721_v39, %v1830_v11  ;;  %v5866_v11 = vld [vmem:[#allocation37_spill] sm:$0xff]  ;;  %v5867_v39 = vld [vmem:[#allocation39_spill] sm:$0xff] }
 0x316   :  { %v1835_v59 = vadd.f32 %v1833_v13, %v1832_v21  ;;  %v5868_v21 = vld [vmem:[#allocation41_spill] sm:$0xff]  ;;  %v5869_v13 = vld [vmem:[#allocation43_spill] sm:$0xff] }
 0x318   :  { %3722 = vtanh.f32 %v1835_v59  ;;  %v5874_v59 = vld [vmem:[#allocation53_spill] sm:$0xff] }
 0x319   :  { %3724 = vrcp.f32 %v1809_v15  ;;  %v5873_v15 = vld [vmem:[#allocation51_spill] sm:$0xff] }
 0x322   :  { %v3723_v24 = vpop.eup %3722 }
 0x323   :  { %v1837_v57 = vsub.f32 %v4550_v23, %v3723_v24  ;;  %v3725_v61 = vpop.eup %3724  ;;  %v4705_v23 = vld [vmem:[#allocation8 + $0x94] ss:$24 sps:$4 sm:$0xff]  }
 0x325   :  { %v1838_v35 = vmul.f32 %v3725_v61, %v1837_v57  ;;  %v5876_v57 = vld [vmem:[#allocation57_spill] sm:$0xff]  ;;  %v5877_v61 = vld [vmem:[#allocation59_spill] sm:$0xff] }
 0x327   :  { %v4681_v40 = vadd.f32 %v3723_v24, %v1838_v35  ;;  %v5875_v24 = vld [vmem:[#allocation55_spill] sm:$0xff]  ;;  %v5878_v35 = vld [vmem:[#allocation61_spill] sm:$0xff] }
 0x329   :  { %1841 = vst.msk [vmem:[#allocation9 + $0x1] ss:$8 sm:$0x3] %vm4546_vm0, %v4681_v40  ;;  %v1851_v29 = vrot.slane %v4681_v40, %v5789_v26  ;;  %v1847_v33 = vrot.slane %v4681_v40, %v5788_v37 }
 0x32b   :  { %v1855_v55 = vpack.c.bf16 %v1851_v29, %v1851_v29  ;;  %v4690_v53 = vpack.c.bf16 %v1847_v33, %v1847_v33  ;;  %v5879_v29 = vld [vmem:[#allocation63_spill] sm:$0xff]  ;;  %v5880_v33 = vld [vmem:[#allocation65_spill] sm:$0xff] }
 0x32d   :  { %1888 = vmatprep.mubr.bf16.mxu1 %v1855_v55  ;;  %1929 = vmatprep.mubr.bf16.mxu0 %v1855_v55 }
 0x32e   :  { %1889 = vmatmul.mubr.bf16.vlgmr.msra.gmra.mrb[16].mxu1 %v4690_v53  ;;  %1930 = vmatmul.mubr.bf16.vlgmr.msra.gmra.mrb[20].mxu0 %v4690_v53 }
 0x32f   :  { %1939 = vmatpush1.bf16.msra.mxu1 %v5795_v46  ;;  %1970 = vmatprep.mubr.bf16.mxu1 %v1855_v55  ;;  %v4710_v46 = vld [vmem:[#allocation8 + $0x90] ss:$24 sps:$4 sm:$0xff]   ;;  %v5881_v55 = vld [vmem:[#allocation67_spill] sm:$0xff] }
 0x330   :  { %1940 = vmatprep.subr.bf16.mxu1 %v5796_v54  ;;  %2081 = vmatpush1.bf16.msra.mxu0 %v4565_v18  ;;  %v4713_v54 = vld [vmem:[#allocation8 + $0xc4] ss:$24 sps:$4 sm:$0xff]  }
 0x331   :  { %2082 = vmatprep.subr.bf16.mxu0 %v4568_v52 }
 0x333   :  { %1941 = vmatpush1.bf16.msra.mxu1 %v5797_v58  ;;  %v4718_v58 = vld [vmem:[#allocation8 + $0xc0] ss:$24 sps:$4 sm:$0xff]  }
 0x334   :  { %1942 = vmatprep.subr.bf16.mxu1 %v5798_v8  ;;  %2083 = vmatpush1.bf16.msra.mxu0 %v4573_v2  ;;  %v4721_v8 = vld [vmem:[#allocation8 + $0xf4] ss:$24 sps:$4 sm:$0xff]  }
 0x335   :  { %2084 = vmatprep.subr.bf16.mxu0 %v4576_v16 }
 0x337   :  { %1943 = vmatpush1.bf16.msra.mxu1 %v5799_v0  ;;  %v4726_v0 = vld [vmem:[#allocation8 + $0xf0] ss:$24 sps:$4 sm:$0xff]  }
 0x338   :  { %1944 = vmatprep.subr.bf16.mxu1 %v5800_v12  ;;  %2085 = vmatpush1.bf16.msra.mxu0 %v4581_v62  ;;  %v4729_v12 = vld [vmem:[#allocation8 + $0x124] ss:$24 sps:$4 sm:$0xff]  }
 0x339   :  { %2086 = vmatprep.subr.bf16.mxu0 %v4705_v23 }
 0x33b   :  { %1945 = vmatpush1.bf16.msra.mxu1 %v5801_v6  ;;  %v4734_v6 = vld [vmem:[#allocation8 + $0x120] ss:$24 sps:$4 sm:$0xff]  }
 0x33c   :  { %1946 = vmatprep.subr.bf16.mxu1 %v5802_v4  ;;  %2087 = vmatpush1.bf16.msra.mxu0 %v4710_v46  ;;  %v4737_v4 = vld [vmem:[#allocation8 + $0x154] ss:$24 sps:$4 sm:$0xff]  }
 0x33d   :  { %2088 = vmatprep.subr.bf16.mxu0 %v4713_v54 }
 0x33f   :  { %1947 = vmatpush1.bf16.msra.mxu1 %v5803_v60  ;;  %v4742_v60 = vld [vmem:[#allocation8 + $0x150] ss:$24 sps:$4 sm:$0xff]  }
 0x340   :  { %1948 = vmatprep.subr.bf16.mxu1 %v5804_v34  ;;  %2089 = vmatpush1.bf16.msra.mxu0 %v4718_v58  ;;  %v4745_v34 = vld [vmem:[#allocation8 + $0x184] ss:$24 sps:$4 sm:$0xff]  }
 0x341   :  { %2090 = vmatprep.subr.bf16.mxu0 %v4721_v8 }
 0x343   :  { %1949 = vmatpush1.bf16.msra.mxu1 %v5805_v48  ;;  %v4750_v48 = vld [vmem:[#allocation8 + $0x180] ss:$24 sps:$4 sm:$0xff]  }
 0x344   :  { %1950 = vmatprep.subr.bf16.mxu1 %v5806_v42  ;;  %2091 = vmatpush1.bf16.msra.mxu0 %v4726_v0  ;;  %v4753_v42 = vld [vmem:[#allocation8 + $0x1b4] ss:$24 sps:$4 sm:$0xff]  }
 0x345   :  { %2092 = vmatprep.subr.bf16.mxu0 %v4729_v12 }
 0x347   :  { %1951 = vmatpush1.bf16.msra.mxu1 %v5807_v17  ;;  %v4758_v17 = vld [vmem:[#allocation8 + $0x1b0] ss:$24 sps:$4 sm:$0xff]  }
 0x348   :  { %1952 = vmatprep.subr.bf16.mxu1 %v5808_v20  ;;  %2093 = vmatpush1.bf16.msra.mxu0 %v4734_v6  ;;  %v4761_v20 = vld [vmem:[#allocation8 + $0x1e4] ss:$24 sps:$4 sm:$0xff]  }
 0x349   :  { %2094 = vmatprep.subr.bf16.mxu0 %v4737_v4 }
 0x34b   :  { %1953 = vmatpush1.bf16.msra.mxu1 %v5809_v22  ;;  %v4766_v22 = vld [vmem:[#allocation8 + $0x1e0] ss:$24 sps:$4 sm:$0xff]  }
 0x34c   :  { %1954 = vmatprep.subr.bf16.mxu1 %v5810_v25  ;;  %2095 = vmatpush1.bf16.msra.mxu0 %v4742_v60  ;;  %v4769_v25 = vld [vmem:[#allocation8 + $0x214] ss:$24 sps:$4 sm:$0xff]  }
 0x34d   :  { %2096 = vmatprep.subr.bf16.mxu0 %v4745_v34  ;;  %5847 = vst [vmem:[#allocation19_spill] sm:$0xff] %v4769_v25 }
 0x34f   :  { %1955 = vmatpush1.bf16.msra.mxu1 %v5811_v27  ;;  %v4774_v27 = vld [vmem:[#allocation8 + $0x210] ss:$24 sps:$4 sm:$0xff]  }
 0x350   :  { %1956 = vmatprep.subr.bf16.mxu1 %v5812_v30  ;;  %2097 = vmatpush1.bf16.msra.mxu0 %v4750_v48  ;;  %5848 = vst [vmem:[#allocation20_spill] sm:$0xff] %v4774_v27  ;;  %v4777_v30 = vld [vmem:[#allocation8 + $0x244] ss:$24 sps:$4 sm:$0xff]  }
 0x351   :  { %2098 = vmatprep.subr.bf16.mxu0 %v4753_v42  ;;  %5849 = vst [vmem:[#allocation21_spill] sm:$0xff] %v4777_v30 }
 0x353   :  { %1957 = vmatpush1.bf16.msra.mxu1 %v5813_v32  ;;  %v4782_v32 = vld [vmem:[#allocation8 + $0x240] ss:$24 sps:$4 sm:$0xff]  }
 0x354   :  { %1958 = vmatprep.subr.bf16.mxu1 %v5814_v36  ;;  %2099 = vmatpush1.bf16.msra.mxu0 %v4758_v17  ;;  %5850 = vst [vmem:[#allocation22_spill] sm:$0xff] %v4782_v32  ;;  %v4785_v36 = vld [vmem:[#allocation8 + $0x274] ss:$24 sps:$4 sm:$0xff]  }
 0x355   :  { %2100 = vmatprep.subr.bf16.mxu0 %v4761_v20  ;;  %5851 = vst [vmem:[#allocation13_spill] sm:$0xff] %v4785_v36 }
 0x357   :  { %1959 = vmatpush1.bf16.msra.mxu1 %v5815_v38  ;;  %v4790_v38 = vld [vmem:[#allocation8 + $0x270] ss:$24 sps:$4 sm:$0xff]  }
 0x358   :  { %1960 = vmatprep.subr.bf16.mxu1 %v5816_v41  ;;  %2101 = vmatpush1.bf16.msra.mxu0 %v4766_v22  ;;  %5852 = vst [vmem:[#allocation18_spill] sm:$0xff] %v4790_v38  ;;  %v4793_v41 = vld [vmem:[#allocation8 + $0x2a4] ss:$24 sps:$4 sm:$0xff]  }
 0x359   :  { %2102 = vmatprep.subr.bf16.mxu0 %v4769_v25  ;;  %5853 = vst [vmem:[#allocation14_spill] sm:$0xff] %v4793_v41 }
 0x35b   :  { %1961 = vmatpush1.bf16.msra.mxu1 %v5817_v43  ;;  %v4798_v43 = vld [vmem:[#allocation8 + $0x2a0] ss:$24 sps:$4 sm:$0xff]  }
 0x35c   :  { %1962 = vmatprep.subr.bf16.mxu1 %v5818_v45  ;;  %2103 = vmatpush1.bf16.msra.mxu0 %v4774_v27  ;;  %5854 = vst [vmem:[#allocation15_spill] sm:$0xff] %v4798_v43  ;;  %v4801_v45 = vld [vmem:[#allocation8 + $0x2d4] ss:$24 sps:$4 sm:$0xff]  }
 0x35d   :  { %2104 = vmatprep.subr.bf16.mxu0 %v4777_v30  ;;  %5855 = vst [vmem:[#allocation23_spill] sm:$0xff] %v4801_v45 }
 0x35f   :  { %1963 = vmatpush1.bf16.msra.mxu1 %v5819_v47  ;;  %v4818_v47 = vld [vmem:[#allocation8 + $0x3c] ss:$24 sps:$4 sm:$0xff]  }
 0x360   :  { %1964 = vmatprep.subr.bf16.mxu1 %v5820_v49  ;;  %2105 = vmatpush1.bf16.msra.mxu0 %v4782_v32  ;;  %5860 = vst [vmem:[#allocation28_spill] sm:$0xff] %v4818_v47  ;;  %v5862_v49 = vld [vmem:[#allocation29_spill] sm:$0xff] }
 0x361   :  { %2106 = vmatprep.subr.bf16.mxu0 %v4785_v36 }
 0x363   :  { %1965 = vmatpush1.bf16.msra.mxu1 %v4417_v14  ;;  %v4808_v14 = vld [vmem:[#allocation8 + $0x2d0] ss:$24 sps:$4 sm:$0xff]  }
 0x364   :  { %1966 = vmatprep.subr.bf16.mxu1 %v4423_v10  ;;  %2107 = vmatpush1.bf16.msra.mxu0 %v4790_v38  ;;  %v4805_v10 = vld [vmem:[#allocation8 + $0xc] ss:$24 sps:$4 sm:$0xff]   ;;  %5857 = vst [vmem:[#allocation25_spill] sm:$0xff] %v4808_v14 }
 0x365   :  { %2108 = vmatprep.subr.bf16.mxu0 %v4793_v41  ;;  %5856 = vst [vmem:[#allocation24_spill] sm:$0xff] %v4805_v10 }
 0x367   :  { %1967 = vmatpush1.bf16.msra.mxu1 %v4429_v3  ;;  %v4811_v3 = vld [vmem:[#allocation8 + $0x14] ss:$24 sps:$4 sm:$0xff]  }
 0x368   :  { %1968 = vmatprep.subr.bf16.mxu1 %v4435_v1  ;;  %2109 = vmatpush1.bf16.msra.mxu0 %v4798_v43  ;;  %5858 = vst [vmem:[#allocation26_spill] sm:$0xff] %v4811_v3  ;;  %v4815_v1 = vld [vmem:[#allocation8 + $0x8] ss:$24 sps:$4 sm:$0xff]  }
 0x369   :  { %2110 = vmatprep.subr.bf16.mxu0 %v4801_v45  ;;  %5859 = vst [vmem:[#allocation27_spill] sm:$0xff] %v4815_v1 }
 0x36b   :  { %1969 = vmatpush1.bf16.msra.mxu1 %v4441_v28  ;;  %v4821_v28 = vld [vmem:[#allocation8 + $0x38] ss:$24 sps:$4 sm:$0xff]  }
 0x36c   :  { %2121 = vmatprep.subr.bf16.mxu1 %v4805_v10  ;;  %2111 = vmatpush1.bf16.msra.mxu0 %v4808_v14  ;;  %5861 = vst [vmem:[#allocation30_spill] sm:$0xff] %v4821_v28 }
 0x36d   :  { %2162 = vmatprep.subr.bf16.mxu0 %v4811_v3 }
 0x36e   :  { %1971 = vmatmul.mubr.bf16.vlgmr.msra.gmra.mrb[20].mxu1 %v4690_v53  ;;  %v5882_v53 = vld [vmem:[#allocation69_spill] sm:$0xff] }
 0x36f   :  { %2122 = vmatpush1.bf16.msra.mxu1 %v4815_v1 }
 0x370   :  { %2123 = vmatprep.subr.bf16.mxu1 %v4818_v47 }
 0x373   :  { %2124 = vmatpush1.bf16.msra.mxu1 %v4821_v28 }
 0x374   :  { %2125 = vmatprep.subr.bf16.mxu1 %v4275_v44  ;;  %v5870_v44 = vld [vmem:[#allocation45_spill] sm:$0xff] }
 0x377   :  { %2126 = vmatpush1.bf16.msra.mxu1 %v4283_v5  ;;  %v5871_v5 = vld [vmem:[#allocation47_spill] sm:$0xff] }
 0x378   :  { %2127 = vmatprep.subr.bf16.mxu1 %v4289_v50  ;;  %v5872_v50 = vld [vmem:[#allocation49_spill] sm:$0xff] }
 0x37b   :  { %2128 = vmatpush1.bf16.msra.mxu1 %v5862_v49  ;;  %v5883_v49 = vld [vmem:[#allocation70_spill] sm:$0xff] }
 0x37c   :  { %2129 = vmatprep.subr.bf16.mxu1 %v5863_v51  ;;  %v5884_v51 = vld [vmem:[#allocation71_spill] sm:$0xff] }
 0x37f   :  { %2130 = vmatpush1.bf16.msra.mxu1 %v5864_v63  ;;  %v5885_v63 = vld [vmem:[#allocation72_spill] sm:$0xff] }
 0x380   :  { %2131 = vmatprep.subr.bf16.mxu1 %v5865_v7  ;;  %v5886_v7 = vld [vmem:[#allocation73_spill] sm:$0xff] }
 0x383   :  { %2132 = vmatpush1.bf16.msra.mxu1 %v5866_v11  ;;  %v5887_v11 = vld [vmem:[#allocation17_spill] sm:$0xff] }
 0x384   :  { %2133 = vmatprep.subr.bf16.mxu1 %v5867_v39 }
 0x387   :  { %2134 = vmatpush1.bf16.msra.mxu1 %v5868_v21 }
 0x388   :  { %2135 = vmatprep.subr.bf16.mxu1 %v5869_v13 }
 0x38b   :  { %2136 = vmatpush1.bf16.msra.mxu1 %v5870_v44 }
 0x38c   :  { %2137 = vmatprep.subr.bf16.mxu1 %v5871_v5 }
 0x38f   :  { %2138 = vmatpush1.bf16.msra.mxu1 %v5872_v50 }
 0x390   :  { %2139 = vmatprep.subr.bf16.mxu1 %v5873_v15 }
 0x393   :  { %2140 = vmatpush1.bf16.msra.mxu1 %v5874_v59 }
 0x394   :  { %2141 = vmatprep.subr.bf16.mxu1 %v5875_v24 }
 0x397   :  { %2142 = vmatpush1.bf16.msra.mxu1 %v5876_v57 }
 0x398   :  { %2143 = vmatprep.subr.bf16.mxu1 %v5877_v61 }
 0x39b   :  { %2144 = vmatpush1.bf16.msra.mxu1 %v5878_v35  ;;  %v1981_v35 = vld [vmem:[#allocation2 + $0x2] ss:$8 sm:$0x30] }
 0x39c   :  { %2145 = vmatprep.subr.bf16.mxu1 %v5879_v29 }
 0x39f   :  { %2146 = vmatpush1.bf16.msra.mxu1 %v5880_v33  ;;  %v1980_v33 = vld [vmem:[#allocation2 + $0x2] ss:$8 sm:$0xf] }
 0x3a0   :  { %2147 = vmatprep.subr.bf16.mxu1 %v5881_v55  ;;  %v1982_v55 = vor.u32 %v1981_v35, %v1980_v33 }
 0x3a3   :  { %2148 = vmatpush1.bf16.msra.mxu1 %v5882_v53 }
 0x3a4   :  { %2149 = vmatprep.subr.bf16.mxu1 %v5883_v49 }
 0x3a7   :  { %2150 = vmatpush1.bf16.msra.mxu1 %v5884_v51 }
 0x3a8   :  { %2151 = vmatprep.subr.bf16.mxu1 %v5885_v63 }
 0x3ab   :  { %2152 = vmatpush1.bf16.msra.mxu1 %v5886_v7  ;;  %v2009_v7 = vrot.slane %v1982_v55, 2 }
 0x3ac   :  { %2304 = vmatprep.subr.bf16.mxu1 %v5887_v11 }
 0x401   :  { %v1890_v39 = vpop.f32.mrb[16].mxu1  ;;  %v1931_v21 = vpop.f32.mrb[20].mxu0 }
 0x402   :  { %v1892_v13 = vpop.f32.mrb[17].mxu1  ;;  %v1933_v44 = vpop.f32.mrb[21].mxu0 }
 0x403   :  { %v1985_v5 = vcombine.low %v1890_v39, %v1892_v13  ;;  %v2013_v50 = vcombine.low %v1931_v21, %v1933_v44  ;;  %v1894_v15 = vpop.f32.mrb[18].mxu1  ;;  %v1935_v59 = vpop.f32.mrb[22].mxu0 }
 0x404   :  { %v1895_v24 = vpop.f32.mrb[19].mxu1  ;;  %v1936_v57 = vpop.f32.mrb[23].mxu0 }
 0x405   :  { %v1992_v61 = vrot.slane %v1985_v5, %v4525_v19  ;;  %v2020_v51 = vrot.slane %v2013_v50, %v4525_v19 }
 0x407   :  { %v1999_v29 = vrot.slane %v1992_v61, %v4525_v19  ;;  %v2027_v63 = vrot.slane %v2020_v51, %v4525_v19  ;;  %v2057_v51 = vrot.slane %v1982_v55, 4 }
 0x409   :  { %v2001_v53 = vadd.f32 %v1999_v29, %v1982_v55  ;;  %v2029_v39 = vadd.f32 %v2027_v63, %v2009_v7 }
 0x40b   :  { %v3399_v49 = vmul.f32 -1.442695, %v2001_v53  ;;  %v3400_v13 = vmul.f32 -1.442695, %v2029_v39 }
 0x40d   :  { %3726 = vpow2.f32 %v3399_v49 }
 0x40e   :  { %3728 = vpow2.f32 %v3400_v13 }
 0x417   :  { %v3727_v21 = vpop.eup %3726 }
 0x418   :  { %v2005_v44 = vadd.f32 1.0, %v3727_v21  ;;  %v3729_v29 = vpop.eup %3728 }
 0x419   :  { %v2033_v63 = vadd.f32 1.0, %v3729_v29  ;;  %v4894_v29 = vld [vmem:[#allocation8 + $0xa4] ss:$24 sps:$4 sm:$0xff]  }
 0x41a   :  { %3730 = vrcp.f32 %v2005_v44 }
 0x424   :  { %v3731_v53 = vpop.eup %3730 }
 0x441   :  { %v1972_v5 = vpop.f32.mrb[20].mxu1 }
 0x442   :  { %v2036_v15 = vadd.f32 %v1972_v5, %v5846_v31  ;;  %v1974_v59 = vpop.f32.mrb[21].mxu1 }
 0x443   :  { %v2037_v24 = vadd.f32 %v1974_v59, %v4536_v9  ;;  %v1976_v57 = vpop.f32.mrb[22].mxu1 }
 0x444   :  { %v1977_v61 = vpop.f32.mrb[23].mxu1  ;;  %v4878_v57 = vld [vmem:[#allocation8 + $0x44] ss:$24 sps:$4 sm:$0xff]  }
 0x445   :  { %v2040_v35 = vcombine.low %v2036_v15, %v2037_v24  ;;  %v4883_v61 = vld [vmem:[#allocation8 + $0x40] ss:$24 sps:$4 sm:$0xff]  }
 0x447   :  { %v2047_v50 = vrot.slane %v2040_v35, %v4525_v19  ;;  %v4886_v35 = vld [vmem:[#allocation8 + $0x74] ss:$24 sps:$4 sm:$0xff]  }
 0x449   :  { %v2054_v33 = vrot.slane %v2047_v50, %v4525_v19  ;;  %v4891_v50 = vld [vmem:[#allocation8 + $0x70] ss:$24 sps:$4 sm:$0xff]  }
 0x44b   :  { %v2056_v49 = vmul.f32 %v3731_v53, %v2054_v33  ;;  %v4899_v33 = vld [vmem:[#allocation8 + $0xa0] ss:$24 sps:$4 sm:$0xff]   ;;  %v4902_v53 = vld [vmem:[#allocation8 + $0xd4] ss:$24 sps:$4 sm:$0xff]  }
 0x44d   :  { %v2059_v7 = vadd.f32 %v2057_v51, %v2056_v49  ;;  %v4907_v49 = vld [vmem:[#allocation8 + $0xd0] ss:$24 sps:$4 sm:$0xff]   ;;  %v4910_v51 = vld [vmem:[#allocation8 + $0x104] ss:$24 sps:$4 sm:$0xff]  }
 0x44f   :  { %3732 = vtanh.f32 %v2059_v7  ;;  %v4918_v7 = vld [vmem:[#allocation8 + $0x134] ss:$24 sps:$4 sm:$0xff]  }
 0x450   :  { %3734 = vrcp.f32 %v2033_v63  ;;  %v4915_v63 = vld [vmem:[#allocation8 + $0x100] ss:$24 sps:$4 sm:$0xff]  }
 0x459   :  { %v3733_v39 = vpop.eup %3732 }
 0x45a   :  { %v2061_v21 = vsub.f32 %v4681_v40, %v3733_v39  ;;  %v3735_v13 = vpop.eup %3734  ;;  %v4875_v40 = vld [vmem:[#allocation8 + $0x10] ss:$24 sps:$4 sm:$0xff]  }
 0x45c   :  { %v2062_v44 = vmul.f32 %v3735_v13, %v2061_v21  ;;  %v4926_v21 = vld [vmem:[#allocation8 + $0x164] ss:$24 sps:$4 sm:$0xff]   ;;  %v4931_v13 = vld [vmem:[#allocation8 + $0x160] ss:$24 sps:$4 sm:$0xff]  }
 0x45e   :  { %v4862_v5 = vadd.f32 %v3733_v39, %v2062_v44  ;;  %v4923_v39 = vld [vmem:[#allocation8 + $0x130] ss:$24 sps:$4 sm:$0xff]   ;;  %v4934_v44 = vld [vmem:[#allocation8 + $0x194] ss:$24 sps:$4 sm:$0xff]  }
 0x45f   :  { %5888 = vst [vmem:[#allocation32_spill] sm:$0xff] %v4934_v44 }
 0x460   :  { %2065 = vst.msk [vmem:[#allocation9 + $0x2] ss:$8 sm:$0x3] %vm4546_vm0, %v4862_v5  ;;  %v2075_v15 = vrot.slane %v4862_v5, %v5789_v26  ;;  %v2071_v55 = vrot.slane %v4862_v5, %v5788_v37 }
 0x462   :  { %v2079_v59 = vpack.c.bf16 %v2075_v15, %v2075_v15  ;;  %v4871_v24 = vpack.c.bf16 %v2071_v55, %v2071_v55  ;;  %v4939_v15 = vld [vmem:[#allocation8 + $0x190] ss:$24 sps:$4 sm:$0xff]   ;;  %v4942_v55 = vld [vmem:[#allocation8 + $0x1c4] ss:$24 sps:$4 sm:$0xff]  }
 0x463   :  { %5889 = vst [vmem:[#allocation34_spill] sm:$0xff] %v4939_v15  ;;  %5890 = vst [vmem:[#allocation36_spill] sm:$0xff] %v4942_v55 }
 0x464   :  { %2112 = vmatprep.mubr.bf16.mxu0 %v2079_v59  ;;  %2153 = vmatprep.mubr.bf16.mxu1 %v2079_v59 }
 0x465   :  { %2113 = vmatmul.mubr.bf16.vlgmr.msra.gmra.mrb[24].mxu0 %v4871_v24  ;;  %2154 = vmatmul.mubr.bf16.vlgmr.msra.gmra.mrb[24].mxu1 %v4871_v24 }
 0x466   :  { %2163 = vmatpush1.bf16.msra.mxu0 %v4875_v40  ;;  %2194 = vmatprep.mubr.bf16.mxu0 %v2079_v59  ;;  %v4947_v59 = vld [vmem:[#allocation8 + $0x1c0] ss:$24 sps:$4 sm:$0xff]  }
 0x467   :  { %2164 = vmatprep.subr.bf16.mxu0 %v4878_v57  ;;  %2305 = vmatpush1.bf16.msra.mxu1 %v4565_v18  ;;  %5891 = vst [vmem:[#allocation38_spill] sm:$0xff] %v4947_v59 }
 0x468   :  { %2306 = vmatprep.subr.bf16.mxu1 %v4568_v52 }
 0x46a   :  { %2165 = vmatpush1.bf16.msra.mxu0 %v4883_v61 }
 0x46b   :  { %2166 = vmatprep.subr.bf16.mxu0 %v4886_v35  ;;  %2307 = vmatpush1.bf16.msra.mxu1 %v4573_v2 }
 0x46c   :  { %2308 = vmatprep.subr.bf16.mxu1 %v4576_v16 }
 0x46e   :  { %2167 = vmatpush1.bf16.msra.mxu0 %v4891_v50 }
 0x46f   :  { %2168 = vmatprep.subr.bf16.mxu0 %v4894_v29  ;;  %2309 = vmatpush1.bf16.msra.mxu1 %v4581_v62 }
 0x470   :  { %2310 = vmatprep.subr.bf16.mxu1 %v4705_v23 }
 0x472   :  { %2169 = vmatpush1.bf16.msra.mxu0 %v4899_v33 }
 0x473   :  { %2170 = vmatprep.subr.bf16.mxu0 %v4902_v53  ;;  %2311 = vmatpush1.bf16.msra.mxu1 %v4710_v46 }
 0x474   :  { %2312 = vmatprep.subr.bf16.mxu1 %v4713_v54 }
 0x476   :  { %2171 = vmatpush1.bf16.msra.mxu0 %v4907_v49 }
 0x477   :  { %2172 = vmatprep.subr.bf16.mxu0 %v4910_v51  ;;  %2313 = vmatpush1.bf16.msra.mxu1 %v4718_v58 }
 0x478   :  { %2314 = vmatprep.subr.bf16.mxu1 %v4721_v8 }
 0x47a   :  { %2173 = vmatpush1.bf16.msra.mxu0 %v4915_v63 }
 0x47b   :  { %2174 = vmatprep.subr.bf16.mxu0 %v4918_v7  ;;  %2315 = vmatpush1.bf16.msra.mxu1 %v4726_v0 }
 0x47c   :  { %2316 = vmatprep.subr.bf16.mxu1 %v4729_v12 }
 0x47e   :  { %2175 = vmatpush1.bf16.msra.mxu0 %v4923_v39 }
 0x47f   :  { %2176 = vmatprep.subr.bf16.mxu0 %v4926_v21  ;;  %2317 = vmatpush1.bf16.msra.mxu1 %v4734_v6 }
 0x480   :  { %2318 = vmatprep.subr.bf16.mxu1 %v4737_v4 }
 0x482   :  { %2177 = vmatpush1.bf16.msra.mxu0 %v4931_v13 }
 0x483   :  { %2178 = vmatprep.subr.bf16.mxu0 %v4934_v44  ;;  %2319 = vmatpush1.bf16.msra.mxu1 %v4742_v60  ;;  %v4950_v44 = vld [vmem:[#allocation8 + $0x1f4] ss:$24 sps:$4 sm:$0xff]  }
 0x484   :  { %2320 = vmatprep.subr.bf16.mxu1 %v4745_v34  ;;  %5892 = vst [vmem:[#allocation40_spill] sm:$0xff] %v4950_v44 }
 0x486   :  { %2179 = vmatpush1.bf16.msra.mxu0 %v4939_v15  ;;  %v4955_v15 = vld [vmem:[#allocation8 + $0x1f0] ss:$24 sps:$4 sm:$0xff]  }
 0x487   :  { %2180 = vmatprep.subr.bf16.mxu0 %v4942_v55  ;;  %2321 = vmatpush1.bf16.msra.mxu1 %v4750_v48  ;;  %5893 = vst [vmem:[#allocation42_spill] sm:$0xff] %v4955_v15  ;;  %v4958_v55 = vld [vmem:[#allocation8 + $0x224] ss:$24 sps:$4 sm:$0xff]  }
 0x488   :  { %2322 = vmatprep.subr.bf16.mxu1 %v4753_v42  ;;  %5894 = vst [vmem:[#allocation44_spill] sm:$0xff] %v4958_v55 }
 0x48a   :  { %2181 = vmatpush1.bf16.msra.mxu0 %v4947_v59  ;;  %v4963_v59 = vld [vmem:[#allocation8 + $0x220] ss:$24 sps:$4 sm:$0xff]  }
 0x48b   :  { %2182 = vmatprep.subr.bf16.mxu0 %v4950_v44  ;;  %2323 = vmatpush1.bf16.msra.mxu1 %v4758_v17  ;;  %5895 = vst [vmem:[#allocation46_spill] sm:$0xff] %v4963_v59  ;;  %v4966_v44 = vld [vmem:[#allocation8 + $0x254] ss:$24 sps:$4 sm:$0xff]  }
 0x48c   :  { %2324 = vmatprep.subr.bf16.mxu1 %v4761_v20  ;;  %5896 = vst [vmem:[#allocation48_spill] sm:$0xff] %v4966_v44 }
 0x48e   :  { %2183 = vmatpush1.bf16.msra.mxu0 %v4955_v15  ;;  %v4971_v15 = vld [vmem:[#allocation8 + $0x250] ss:$24 sps:$4 sm:$0xff]  }
 0x48f   :  { %2184 = vmatprep.subr.bf16.mxu0 %v4958_v55  ;;  %2325 = vmatpush1.bf16.msra.mxu1 %v4766_v22  ;;  %5897 = vst [vmem:[#allocation50_spill] sm:$0xff] %v4971_v15  ;;  %v4974_v55 = vld [vmem:[#allocation8 + $0x284] ss:$24 sps:$4 sm:$0xff]  }
 0x490   :  { %2326 = vmatprep.subr.bf16.mxu1 %v4769_v25  ;;  %5898 = vst [vmem:[#allocation52_spill] sm:$0xff] %v4974_v55 }
 0x492   :  { %2185 = vmatpush1.bf16.msra.mxu0 %v4963_v59  ;;  %v4979_v59 = vld [vmem:[#allocation8 + $0x280] ss:$24 sps:$4 sm:$0xff]  }
 0x493   :  { %2186 = vmatprep.subr.bf16.mxu0 %v4966_v44  ;;  %2327 = vmatpush1.bf16.msra.mxu1 %v4774_v27  ;;  %5899 = vst [vmem:[#allocation54_spill] sm:$0xff] %v4979_v59  ;;  %v4982_v44 = vld [vmem:[#allocation8 + $0x2b4] ss:$24 sps:$4 sm:$0xff]  }
 0x494   :  { %2328 = vmatprep.subr.bf16.mxu1 %v4777_v30  ;;  %5900 = vst [vmem:[#allocation56_spill] sm:$0xff] %v4982_v44 }
 0x496   :  { %2187 = vmatpush1.bf16.msra.mxu0 %v4971_v15  ;;  %v4987_v15 = vld [vmem:[#allocation8 + $0x2b0] ss:$24 sps:$4 sm:$0xff]  }
 0x497   :  { %2188 = vmatprep.subr.bf16.mxu0 %v4974_v55  ;;  %2329 = vmatpush1.bf16.msra.mxu1 %v4782_v32  ;;  %5901 = vst [vmem:[#allocation58_spill] sm:$0xff] %v4987_v15  ;;  %v4990_v55 = vld [vmem:[#allocation8 + $0x2e4] ss:$24 sps:$4 sm:$0xff]  }
 0x498   :  { %2330 = vmatprep.subr.bf16.mxu1 %v4785_v36  ;;  %5902 = vst [vmem:[#allocation60_spill] sm:$0xff] %v4990_v55 }
 0x49a   :  { %2189 = vmatpush1.bf16.msra.mxu0 %v4979_v59  ;;  %v4995_v59 = vld [vmem:[#allocation8 + $0x2e0] ss:$24 sps:$4 sm:$0xff]  }
 0x49b   :  { %2190 = vmatprep.subr.bf16.mxu0 %v4982_v44  ;;  %2331 = vmatpush1.bf16.msra.mxu1 %v4790_v38  ;;  %5903 = vst [vmem:[#allocation62_spill] sm:$0xff] %v4995_v59  ;;  %v2205_v38 = vld [vmem:[#allocation2 + $0x3] ss:$8 sm:$0x30] }
 0x49c   :  { %2332 = vmatprep.subr.bf16.mxu1 %v4793_v41  ;;  %v2204_v44 = vld [vmem:[#allocation2 + $0x3] ss:$8 sm:$0xf] }
 0x49d   :  { %v2206_v36 = vor.u32 %v2205_v38, %v2204_v44 }
 0x49e   :  { %2191 = vmatpush1.bf16.msra.mxu0 %v4987_v15 }
 0x49f   :  { %2192 = vmatprep.subr.bf16.mxu0 %v4990_v55  ;;  %2333 = vmatpush1.bf16.msra.mxu1 %v4798_v43  ;;  %v5005_v43 = vld [vmem:[#allocation8 + $0x6c] ss:$24 sps:$4 sm:$0xff]  }
 0x4a0   :  { %2334 = vmatprep.subr.bf16.mxu1 %v4801_v45  ;;  %5904 = vst [vmem:[#allocation64_spill] sm:$0xff] %v5005_v43  ;;  %v5008_v45 = vld [vmem:[#allocation8 + $0x68] ss:$24 sps:$4 sm:$0xff]  }
 0x4a1   :  { %5905 = vst [vmem:[#allocation66_spill] sm:$0xff] %v5008_v45 }
 0x4a2   :  { %2193 = vmatpush1.bf16.msra.mxu0 %v4995_v59 }
 0x4a3   :  { %2345 = vmatprep.subr.bf16.mxu0 %v4805_v10  ;;  %2335 = vmatpush1.bf16.msra.mxu1 %v4808_v14  ;;  %v5011_v10 = vld [vmem:[#allocation8 + $0x9c] ss:$24 sps:$4 sm:$0xff]  }
 0x4a4   :  { %2386 = vmatprep.subr.bf16.mxu1 %v4811_v3  ;;  %5906 = vst [vmem:[#allocation68_spill] sm:$0xff] %v5011_v10  ;;  %v5014_v3 = vld [vmem:[#allocation8 + $0x98] ss:$24 sps:$4 sm:$0xff]  }
 0x4a5   :  { %2195 = vmatmul.mubr.bf16.vlgmr.msra.gmra.mrb[28].mxu0 %v4871_v24  ;;  %5907 = vst [vmem:[#allocation16_spill] sm:$0xff] %v5014_v3  ;;  %v5017_v24 = vld [vmem:[#allocation8 + $0xcc] ss:$24 sps:$4 sm:$0xff]  }
 0x4a6   :  { %2346 = vmatpush1.bf16.msra.mxu0 %v4815_v1  ;;  %5908 = vst [vmem:[#allocation29_spill] sm:$0xff] %v5017_v24 }
 0x4a7   :  { %2347 = vmatprep.subr.bf16.mxu0 %v4818_v47 }
 0x4aa   :  { %2348 = vmatpush1.bf16.msra.mxu0 %v4821_v28  ;;  %v5020_v28 = vld [vmem:[#allocation8 + $0xc8] ss:$24 sps:$4 sm:$0xff]  }
 0x4ab   :  { %2349 = vmatprep.subr.bf16.mxu0 %v5005_v43  ;;  %5909 = vst [vmem:[#allocation31_spill] sm:$0xff] %v5020_v28  ;;  %v5023_v43 = vld [vmem:[#allocation8 + $0xfc] ss:$24 sps:$4 sm:$0xff]  }
 0x4ac   :  { %5910 = vst [vmem:[#allocation33_spill] sm:$0xff] %v5023_v43 }
 0x4ae   :  { %2350 = vmatpush1.bf16.msra.mxu0 %v5008_v45  ;;  %v5026_v45 = vld [vmem:[#allocation8 + $0xf8] ss:$24 sps:$4 sm:$0xff]  }
 0x4af   :  { %2351 = vmatprep.subr.bf16.mxu0 %v5011_v10  ;;  %5911 = vst [vmem:[#allocation35_spill] sm:$0xff] %v5026_v45  ;;  %v5029_v10 = vld [vmem:[#allocation8 + $0x12c] ss:$24 sps:$4 sm:$0xff]  }
 0x4b0   :  { %5912 = vst [vmem:[#allocation37_spill] sm:$0xff] %v5029_v10 }
 0x4b2   :  { %2352 = vmatpush1.bf16.msra.mxu0 %v5014_v3  ;;  %v5032_v3 = vld [vmem:[#allocation8 + $0x128] ss:$24 sps:$4 sm:$0xff]  }
 0x4b3   :  { %2353 = vmatprep.subr.bf16.mxu0 %v5017_v24  ;;  %5913 = vst [vmem:[#allocation39_spill] sm:$0xff] %v5032_v3  ;;  %v5035_v24 = vld [vmem:[#allocation8 + $0x15c] ss:$24 sps:$4 sm:$0xff]  }
 0x4b4   :  { %5914 = vst [vmem:[#allocation41_spill] sm:$0xff] %v5035_v24 }
 0x4b6   :  { %2354 = vmatpush1.bf16.msra.mxu0 %v5020_v28  ;;  %v5038_v28 = vld [vmem:[#allocation8 + $0x158] ss:$24 sps:$4 sm:$0xff]  }
 0x4b7   :  { %2355 = vmatprep.subr.bf16.mxu0 %v5023_v43  ;;  %5915 = vst [vmem:[#allocation43_spill] sm:$0xff] %v5038_v28  ;;  %v5041_v43 = vld [vmem:[#allocation8 + $0x18c] ss:$24 sps:$4 sm:$0xff]  }
 0x4b8   :  { %5916 = vst [vmem:[#allocation45_spill] sm:$0xff] %v5041_v43 }
 0x4ba   :  { %2356 = vmatpush1.bf16.msra.mxu0 %v5026_v45  ;;  %v5044_v45 = vld [vmem:[#allocation8 + $0x188] ss:$24 sps:$4 sm:$0xff]  }
 0x4bb   :  { %2357 = vmatprep.subr.bf16.mxu0 %v5029_v10  ;;  %5917 = vst [vmem:[#allocation47_spill] sm:$0xff] %v5044_v45  ;;  %v5047_v10 = vld [vmem:[#allocation8 + $0x1bc] ss:$24 sps:$4 sm:$0xff]  }
 0x4bc   :  { %5918 = vst [vmem:[#allocation49_spill] sm:$0xff] %v5047_v10 }
 0x4be   :  { %2358 = vmatpush1.bf16.msra.mxu0 %v5032_v3  ;;  %v5050_v3 = vld [vmem:[#allocation8 + $0x1b8] ss:$24 sps:$4 sm:$0xff]  }
 0x4bf   :  { %2359 = vmatprep.subr.bf16.mxu0 %v5035_v24  ;;  %5919 = vst [vmem:[#allocation51_spill] sm:$0xff] %v5050_v3  ;;  %v5053_v24 = vld [vmem:[#allocation8 + $0x1ec] ss:$24 sps:$4 sm:$0xff]  }
 0x4c0   :  { %5920 = vst [vmem:[#allocation53_spill] sm:$0xff] %v5053_v24 }
 0x4c2   :  { %2360 = vmatpush1.bf16.msra.mxu0 %v5038_v28  ;;  %v5056_v28 = vld [vmem:[#allocation8 + $0x1e8] ss:$24 sps:$4 sm:$0xff]  }
 0x4c3   :  { %2361 = vmatprep.subr.bf16.mxu0 %v5041_v43  ;;  %5921 = vst [vmem:[#allocation55_spill] sm:$0xff] %v5056_v28  ;;  %v5059_v43 = vld [vmem:[#allocation8 + $0x21c] ss:$24 sps:$4 sm:$0xff]  }
 0x4c4   :  { %5922 = vst [vmem:[#allocation57_spill] sm:$0xff] %v5059_v43 }
 0x4c6   :  { %2362 = vmatpush1.bf16.msra.mxu0 %v5044_v45  ;;  %v5062_v45 = vld [vmem:[#allocation8 + $0x218] ss:$24 sps:$4 sm:$0xff]  }
 0x4c7   :  { %2363 = vmatprep.subr.bf16.mxu0 %v5047_v10  ;;  %5923 = vst [vmem:[#allocation59_spill] sm:$0xff] %v5062_v45  ;;  %v5065_v10 = vld [vmem:[#allocation8 + $0x24c] ss:$24 sps:$4 sm:$0xff]  }
 0x4c8   :  { %5924 = vst [vmem:[#allocation61_spill] sm:$0xff] %v5065_v10 }
 0x4ca   :  { %2364 = vmatpush1.bf16.msra.mxu0 %v5050_v3  ;;  %v5068_v3 = vld [vmem:[#allocation8 + $0x248] ss:$24 sps:$4 sm:$0xff]  }
 0x4cb   :  { %2365 = vmatprep.subr.bf16.mxu0 %v5053_v24  ;;  %5925 = vst [vmem:[#allocation63_spill] sm:$0xff] %v5068_v3  ;;  %v5071_v24 = vld [vmem:[#allocation8 + $0x27c] ss:$24 sps:$4 sm:$0xff]  }
 0x4cc   :  { %5926 = vst [vmem:[#allocation65_spill] sm:$0xff] %v5071_v24 }
 0x4ce   :  { %2366 = vmatpush1.bf16.msra.mxu0 %v5056_v28  ;;  %v5074_v28 = vld [vmem:[#allocation8 + $0x278] ss:$24 sps:$4 sm:$0xff]  }
 0x4cf   :  { %2367 = vmatprep.subr.bf16.mxu0 %v5059_v43  ;;  %5927 = vst [vmem:[#allocation67_spill] sm:$0xff] %v5074_v28  ;;  %v5077_v43 = vld [vmem:[#allocation8 + $0x2ac] ss:$24 sps:$4 sm:$0xff]  }
 0x4d0   :  { %5928 = vst [vmem:[#allocation69_spill] sm:$0xff] %v5077_v43 }
 0x4d2   :  { %2368 = vmatpush1.bf16.msra.mxu0 %v5062_v45  ;;  %v5080_v45 = vld [vmem:[#allocation8 + $0x2a8] ss:$24 sps:$4 sm:$0xff]  }
 0x4d3   :  { %2369 = vmatprep.subr.bf16.mxu0 %v5065_v10  ;;  %5929 = vst [vmem:[#allocation70_spill] sm:$0xff] %v5080_v45  ;;  %v5083_v10 = vld [vmem:[#allocation8 + $0x2dc] ss:$24 sps:$4 sm:$0xff]  }
 0x4d4   :  { %5930 = vst [vmem:[#allocation71_spill] sm:$0xff] %v5083_v10 }
 0x4d6   :  { %2370 = vmatpush1.bf16.msra.mxu0 %v5068_v3  ;;  %v5086_v3 = vld [vmem:[#allocation8 + $0x2d8] ss:$24 sps:$4 sm:$0xff]  }
 0x4d7   :  { %2371 = vmatprep.subr.bf16.mxu0 %v5071_v24  ;;  %5931 = vst [vmem:[#allocation72_spill] sm:$0xff] %v5086_v3 }
 0x4da   :  { %2372 = vmatpush1.bf16.msra.mxu0 %v5074_v28 }
 0x4db   :  { %2373 = vmatprep.subr.bf16.mxu0 %v5077_v43 }
 0x4de   :  { %2374 = vmatpush1.bf16.msra.mxu0 %v5080_v45 }
 0x4df   :  { %2375 = vmatprep.subr.bf16.mxu0 %v5083_v10 }
 0x4e2   :  { %2376 = vmatpush1.bf16.msra.mxu0 %v5086_v3 }
 0x4e3   :  { %2528 = vmatprep.subr.bf16.mxu0 %v5887_v11 }
 0x538   :  { %v2114_v24 = vpop.f32.mrb[24].mxu0  ;;  %v2155_v28 = vpop.f32.mrb[24].mxu1 }
 0x539   :  { %v2116_v47 = vpop.f32.mrb[25].mxu0  ;;  %v2157_v1 = vpop.f32.mrb[25].mxu1 }
 0x53a   :  { %v2209_v14 = vcombine.low %v2114_v24, %v2116_v47  ;;  %v2237_v43 = vcombine.low %v2155_v28, %v2157_v1  ;;  %v2118_v59 = vpop.f32.mrb[26].mxu0  ;;  %v2159_v55 = vpop.f32.mrb[26].mxu1  ;;  %v2233_v47 = vrot.slane %v2206_v36, 2  ;;  %v2281_v24 = vrot.slane %v2206_v36, 4 }
 0x53b   :  { %v2119_v15 = vpop.f32.mrb[27].mxu0  ;;  %v2160_v45 = vpop.f32.mrb[27].mxu1 }
 0x53c   :  { %v2216_v41 = vrot.slane %v2209_v14, %v4525_v19  ;;  %v2244_v11 = vrot.slane %v2237_v43, %v4525_v19 }
 0x53e   :  { %v2223_v10 = vrot.slane %v2216_v41, %v4525_v19  ;;  %v2251_v30 = vrot.slane %v2244_v11, %v4525_v19 }
 0x540   :  { %v2225_v3 = vadd.f32 %v2223_v10, %v2206_v36  ;;  %v2253_v1 = vadd.f32 %v2251_v30, %v2233_v47 }
 0x542   :  { %v3401_v32 = vmul.f32 -1.442695, %v2225_v3  ;;  %v3402_v55 = vmul.f32 -1.442695, %v2253_v1 }
 0x544   :  { %3736 = vpow2.f32 %v3401_v32 }
 0x545   :  { %3738 = vpow2.f32 %v3402_v55 }
 0x54e   :  { %v3737_v28 = vpop.eup %3736 }
 0x54f   :  { %v2229_v15 = vadd.f32 1.0, %v3737_v28  ;;  %v3739_v44 = vpop.eup %3738 }
 0x550   :  { %v2257_v47 = vadd.f32 1.0, %v3739_v44  ;;  %v5941_v44 = vld [vmem:[#allocation21_spill] sm:$0xff] }
 0x551   :  { %3740 = vrcp.f32 %v2229_v15 }
 0x55b   :  { %v3741_v30 = vpop.eup %3740 }
 0x578   :  { %v2196_v45 = vpop.f32.mrb[28].mxu0 }
 0x579   :  { %v2260_v14 = vadd.f32 %v2196_v45, %v5846_v31  ;;  %v2198_v41 = vpop.f32.mrb[29].mxu0 }
 0x57a   :  { %v2261_v38 = vadd.f32 %v2198_v41, %v4536_v9  ;;  %v2200_v10 = vpop.f32.mrb[30].mxu0 }
 0x57b   :  { %v2201_v3 = vpop.f32.mrb[31].mxu0 }
 0x57c   :  { %v2264_v32 = vcombine.low %v2260_v14, %v2261_v38  ;;  %v5938_v3 = vld [vmem:[#allocation44_spill] sm:$0xff] }
 0x57e   :  { %v2271_v43 = vrot.slane %v2264_v32, %v4525_v19  ;;  %v5939_v32 = vld [vmem:[#allocation46_spill] sm:$0xff] }
 0x580   :  { %v2278_v11 = vrot.slane %v2271_v43, %v4525_v19  ;;  %v5940_v43 = vld [vmem:[#allocation48_spill] sm:$0xff] }
 0x582   :  { %v2280_v59 = vmul.f32 %v3741_v30, %v2278_v11  ;;  %v5942_v11 = vld [vmem:[#allocation50_spill] sm:$0xff]  ;;  %v5943_v30 = vld [vmem:[#allocation52_spill] sm:$0xff] }
 0x584   :  { %v2283_v1 = vadd.f32 %v2281_v24, %v2280_v59  ;;  %v5944_v59 = vld [vmem:[#allocation22_spill] sm:$0xff]  ;;  %v5945_v24 = vld [vmem:[#allocation13_spill] sm:$0xff] }
 0x586   :  { %3742 = vtanh.f32 %v2283_v1  ;;  %v5947_v1 = vld [vmem:[#allocation56_spill] sm:$0xff] }
 0x587   :  { %3744 = vrcp.f32 %v2257_v47  ;;  %v5946_v47 = vld [vmem:[#allocation54_spill] sm:$0xff] }
 0x590   :  { %v3743_v28 = vpop.eup %3742 }
 0x591   :  { %v2285_v55 = vsub.f32 %v4862_v5, %v3743_v28  ;;  %v3745_v15 = vpop.eup %3744  ;;  %v5937_v5 = vld [vmem:[#allocation42_spill] sm:$0xff] }
 0x593   :  { %v2286_v45 = vmul.f32 %v3745_v15, %v2285_v55  ;;  %v5949_v55 = vld [vmem:[#allocation14_spill] sm:$0xff] }
 0x594   :  { %v5950_v15 = vld [vmem:[#allocation58_spill] sm:$0xff] }
 0x595   :  { %v5099_v41 = vadd.f32 %v3743_v28, %v2286_v45  ;;  %v5948_v28 = vld [vmem:[#allocation18_spill] sm:$0xff]  ;;  %v5951_v45 = vld [vmem:[#allocation60_spill] sm:$0xff] }
 0x597   :  { %2289 = vst.msk [vmem:[#allocation9 + $0x3] ss:$8 sm:$0x3] %vm4546_vm0, %v5099_v41  ;;  %v2299_v14 = vrot.slane %v5099_v41, %v5789_v26  ;;  %v2295_v36 = vrot.slane %v5099_v41, %v5788_v37 }
 0x599   :  { %v2303_v38 = vpack.c.bf16 %v2299_v14, %v2299_v14  ;;  %v5108_v10 = vpack.c.bf16 %v2295_v36, %v2295_v36  ;;  %v5952_v14 = vld [vmem:[#allocation15_spill] sm:$0xff] }
 0x59a   :  { %v5953_v36 = vld [vmem:[#allocation23_spill] sm:$0xff] }
 0x59b   :  { %2336 = vmatprep.mubr.bf16.mxu1 %v2303_v38  ;;  %2377 = vmatprep.mubr.bf16.mxu0 %v2303_v38 }
 0x59c   :  { %2337 = vmatmul.mubr.bf16.vlgmr.msra.gmra.mrb[28].mxu1 %v5108_v10  ;;  %2378 = vmatmul.mubr.bf16.vlgmr.msra.gmra.mrb[32].mxu0 %v5108_v10 }
 0x59d   :  { %2387 = vmatpush1.bf16.msra.mxu1 %v4875_v40  ;;  %2418 = vmatprep.mubr.bf16.mxu1 %v2303_v38  ;;  %v5954_v38 = vld [vmem:[#allocation62_spill] sm:$0xff] }
 0x59e   :  { %2388 = vmatprep.subr.bf16.mxu1 %v4878_v57  ;;  %2529 = vmatpush1.bf16.msra.mxu0 %v4565_v18  ;;  %v5932_v18 = vld [vmem:[#allocation32_spill] sm:$0xff] }
 0x59f   :  { %2530 = vmatprep.subr.bf16.mxu0 %v4568_v52  ;;  %v5933_v52 = vld [vmem:[#allocation34_spill] sm:$0xff] }
 0x5a1   :  { %2389 = vmatpush1.bf16.msra.mxu1 %v4883_v61 }
 0x5a2   :  { %2390 = vmatprep.subr.bf16.mxu1 %v4886_v35  ;;  %2531 = vmatpush1.bf16.msra.mxu0 %v4573_v2  ;;  %v5934_v2 = vld [vmem:[#allocation36_spill] sm:$0xff] }
 0x5a3   :  { %2532 = vmatprep.subr.bf16.mxu0 %v4576_v16  ;;  %v5935_v16 = vld [vmem:[#allocation38_spill] sm:$0xff] }
 0x5a5   :  { %2391 = vmatpush1.bf16.msra.mxu1 %v4891_v50 }
 0x5a6   :  { %2392 = vmatprep.subr.bf16.mxu1 %v4894_v29  ;;  %2533 = vmatpush1.bf16.msra.mxu0 %v4581_v62  ;;  %v5936_v62 = vld [vmem:[#allocation40_spill] sm:$0xff] }
 0x5a7   :  { %2534 = vmatprep.subr.bf16.mxu0 %v4705_v23 }
 0x5a9   :  { %2393 = vmatpush1.bf16.msra.mxu1 %v4899_v33 }
 0x5aa   :  { %2394 = vmatprep.subr.bf16.mxu1 %v4902_v53  ;;  %2535 = vmatpush1.bf16.msra.mxu0 %v4710_v46 }
 0x5ab   :  { %2536 = vmatprep.subr.bf16.mxu0 %v4713_v54 }
 0x5ad   :  { %2395 = vmatpush1.bf16.msra.mxu1 %v4907_v49 }
 0x5ae   :  { %2396 = vmatprep.subr.bf16.mxu1 %v4910_v51  ;;  %2537 = vmatpush1.bf16.msra.mxu0 %v4718_v58 }
 0x5af   :  { %2538 = vmatprep.subr.bf16.mxu0 %v4721_v8 }
 0x5b1   :  { %2397 = vmatpush1.bf16.msra.mxu1 %v4915_v63 }
 0x5b2   :  { %2398 = vmatprep.subr.bf16.mxu1 %v4918_v7  ;;  %2539 = vmatpush1.bf16.msra.mxu0 %v4726_v0 }
 0x5b3   :  { %2540 = vmatprep.subr.bf16.mxu0 %v4729_v12 }
 0x5b5   :  { %2399 = vmatpush1.bf16.msra.mxu1 %v4923_v39 }
 0x5b6   :  { %2400 = vmatprep.subr.bf16.mxu1 %v4926_v21  ;;  %2541 = vmatpush1.bf16.msra.mxu0 %v4734_v6 }
 0x5b7   :  { %2542 = vmatprep.subr.bf16.mxu0 %v4737_v4 }
 0x5b9   :  { %2401 = vmatpush1.bf16.msra.mxu1 %v4931_v13 }
 0x5ba   :  { %2402 = vmatprep.subr.bf16.mxu1 %v5932_v18  ;;  %2543 = vmatpush1.bf16.msra.mxu0 %v4742_v60 }
 0x5bb   :  { %2544 = vmatprep.subr.bf16.mxu0 %v4745_v34 }
 0x5bd   :  { %2403 = vmatpush1.bf16.msra.mxu1 %v5933_v52 }
 0x5be   :  { %2404 = vmatprep.subr.bf16.mxu1 %v5934_v2  ;;  %2545 = vmatpush1.bf16.msra.mxu0 %v4750_v48 }
 0x5bf   :  { %2546 = vmatprep.subr.bf16.mxu0 %v4753_v42 }
 0x5c1   :  { %2405 = vmatpush1.bf16.msra.mxu1 %v5935_v16 }
 0x5c2   :  { %2406 = vmatprep.subr.bf16.mxu1 %v5936_v62  ;;  %2547 = vmatpush1.bf16.msra.mxu0 %v4758_v17 }
 0x5c3   :  { %2548 = vmatprep.subr.bf16.mxu0 %v4761_v20 }
 0x5c5   :  { %2407 = vmatpush1.bf16.msra.mxu1 %v5937_v5 }
 0x5c6   :  { %2408 = vmatprep.subr.bf16.mxu1 %v5938_v3  ;;  %2549 = vmatpush1.bf16.msra.mxu0 %v4766_v22 }
 0x5c7   :  { %2550 = vmatprep.subr.bf16.mxu0 %v4769_v25 }
 0x5c9   :  { %2409 = vmatpush1.bf16.msra.mxu1 %v5939_v32 }
 0x5ca   :  { %2410 = vmatprep.subr.bf16.mxu1 %v5940_v43  ;;  %2551 = vmatpush1.bf16.msra.mxu0 %v4774_v27  ;;  %v2429_v27 = vld [vmem:[#allocation2 + $0x4] ss:$8 sm:$0x30] }
 0x5cb   :  { %2552 = vmatprep.subr.bf16.mxu0 %v5941_v44 }
 0x5cd   :  { %2411 = vmatpush1.bf16.msra.mxu1 %v5942_v11 }
 0x5ce   :  { %2412 = vmatprep.subr.bf16.mxu1 %v5943_v30  ;;  %2553 = vmatpush1.bf16.msra.mxu0 %v5944_v59  ;;  %v5955_v59 = vld [vmem:[#allocation24_spill] sm:$0xff] }
 0x5cf   :  { %2554 = vmatprep.subr.bf16.mxu0 %v5945_v24  ;;  %v5956_v24 = vld [vmem:[#allocation25_spill] sm:$0xff] }
 0x5d1   :  { %2413 = vmatpush1.bf16.msra.mxu1 %v5946_v47  ;;  %v5957_v47 = vld [vmem:[#allocation26_spill] sm:$0xff] }
 0x5d2   :  { %2414 = vmatprep.subr.bf16.mxu1 %v5947_v1  ;;  %2555 = vmatpush1.bf16.msra.mxu0 %v5948_v28  ;;  %v5958_v28 = vld [vmem:[#allocation27_spill] sm:$0xff] }
 0x5d3   :  { %2556 = vmatprep.subr.bf16.mxu0 %v5949_v55  ;;  %v5959_v55 = vld [vmem:[#allocation28_spill] sm:$0xff] }
 0x5d5   :  { %2415 = vmatpush1.bf16.msra.mxu1 %v5950_v15  ;;  %v5960_v15 = vld [vmem:[#allocation30_spill] sm:$0xff] }
 0x5d6   :  { %2416 = vmatprep.subr.bf16.mxu1 %v5951_v45  ;;  %2557 = vmatpush1.bf16.msra.mxu0 %v5952_v14  ;;  %v5961_v45 = vld [vmem:[#allocation64_spill] sm:$0xff]  ;;  %v5962_v14 = vld [vmem:[#allocation66_spill] sm:$0xff] }
 0x5d7   :  { %2558 = vmatprep.subr.bf16.mxu0 %v5953_v36  ;;  %v5963_v36 = vld [vmem:[#allocation68_spill] sm:$0xff] }
 0x5d9   :  { %2417 = vmatpush1.bf16.msra.mxu1 %v5954_v38  ;;  %v5964_v38 = vld [vmem:[#allocation16_spill] sm:$0xff] }
 0x5da   :  { %2569 = vmatprep.subr.bf16.mxu1 %v5955_v59  ;;  %2559 = vmatpush1.bf16.msra.mxu0 %v5956_v24  ;;  %v5965_v59 = vld [vmem:[#allocation29_spill] sm:$0xff]  ;;  %v5966_v24 = vld [vmem:[#allocation31_spill] sm:$0xff] }
 0x5db   :  { %2610 = vmatprep.subr.bf16.mxu0 %v5957_v47  ;;  %v5967_v47 = vld [vmem:[#allocation33_spill] sm:$0xff] }
 0x5dc   :  { %2419 = vmatmul.mubr.bf16.vlgmr.msra.gmra.mrb[32].mxu1 %v5108_v10  ;;  %v5968_v10 = vld [vmem:[#allocation35_spill] sm:$0xff] }
 0x5dd   :  { %2570 = vmatpush1.bf16.msra.mxu1 %v5958_v28  ;;  %v5969_v28 = vld [vmem:[#allocation37_spill] sm:$0xff] }
 0x5de   :  { %2571 = vmatprep.subr.bf16.mxu1 %v5959_v55  ;;  %v5970_v55 = vld [vmem:[#allocation39_spill] sm:$0xff] }
 0x5e1   :  { %2572 = vmatpush1.bf16.msra.mxu1 %v5960_v15  ;;  %v5971_v15 = vld [vmem:[#allocation41_spill] sm:$0xff] }
 0x5e2   :  { %2573 = vmatprep.subr.bf16.mxu1 %v5961_v45  ;;  %v5972_v45 = vld [vmem:[#allocation43_spill] sm:$0xff] }
 0x5e5   :  { %2574 = vmatpush1.bf16.msra.mxu1 %v5962_v14  ;;  %v5973_v14 = vld [vmem:[#allocation45_spill] sm:$0xff] }
 0x5e6   :  { %2575 = vmatprep.subr.bf16.mxu1 %v5963_v36  ;;  %v5974_v36 = vld [vmem:[#allocation47_spill] sm:$0xff] }
 0x5e9   :  { %2576 = vmatpush1.bf16.msra.mxu1 %v5964_v38  ;;  %v5975_v38 = vld [vmem:[#allocation49_spill] sm:$0xff] }
 0x5ea   :  { %2577 = vmatprep.subr.bf16.mxu1 %v5965_v59  ;;  %v5976_v59 = vld [vmem:[#allocation51_spill] sm:$0xff] }
 0x5ed   :  { %2578 = vmatpush1.bf16.msra.mxu1 %v5966_v24  ;;  %v5977_v24 = vld [vmem:[#allocation53_spill] sm:$0xff] }
 0x5ee   :  { %2579 = vmatprep.subr.bf16.mxu1 %v5967_v47  ;;  %v5978_v47 = vld [vmem:[#allocation55_spill] sm:$0xff] }
 0x5f1   :  { %2580 = vmatpush1.bf16.msra.mxu1 %v5968_v10  ;;  %v5979_v10 = vld [vmem:[#allocation57_spill] sm:$0xff] }
 0x5f2   :  { %2581 = vmatprep.subr.bf16.mxu1 %v5969_v28  ;;  %v5980_v28 = vld [vmem:[#allocation59_spill] sm:$0xff] }
 0x5f5   :  { %2582 = vmatpush1.bf16.msra.mxu1 %v5970_v55  ;;  %v5981_v55 = vld [vmem:[#allocation61_spill] sm:$0xff] }
 0x5f6   :  { %2583 = vmatprep.subr.bf16.mxu1 %v5971_v15  ;;  %v5982_v15 = vld [vmem:[#allocation63_spill] sm:$0xff] }
 0x5f9   :  { %2584 = vmatpush1.bf16.msra.mxu1 %v5972_v45  ;;  %v5983_v45 = vld [vmem:[#allocation65_spill] sm:$0xff] }
 0x5fa   :  { %2585 = vmatprep.subr.bf16.mxu1 %v5973_v14  ;;  %v5984_v14 = vld [vmem:[#allocation67_spill] sm:$0xff] }
 0x5fd   :  { %2586 = vmatpush1.bf16.msra.mxu1 %v5974_v36  ;;  %v5985_v36 = vld [vmem:[#allocation69_spill] sm:$0xff] }
 0x5fe   :  { %2587 = vmatprep.subr.bf16.mxu1 %v5975_v38  ;;  %v5986_v38 = vld [vmem:[#allocation70_spill] sm:$0xff] }
 0x601   :  { %2588 = vmatpush1.bf16.msra.mxu1 %v5976_v59  ;;  %v5987_v59 = vld [vmem:[#allocation71_spill] sm:$0xff] }
 0x602   :  { %2589 = vmatprep.subr.bf16.mxu1 %v5977_v24  ;;  %v5988_v24 = vld [vmem:[#allocation72_spill] sm:$0xff] }
 0x605   :  { %2590 = vmatpush1.bf16.msra.mxu1 %v5978_v47  ;;  %v5989_v47 = vld [vmem:[#allocation17_spill] sm:$0xff] }
 0x606   :  { %2591 = vmatprep.subr.bf16.mxu1 %v5979_v10 }
 0x609   :  { %2592 = vmatpush1.bf16.msra.mxu1 %v5980_v28 }
 0x60a   :  { %2593 = vmatprep.subr.bf16.mxu1 %v5981_v55 }
 0x60d   :  { %2594 = vmatpush1.bf16.msra.mxu1 %v5982_v15 }
 0x60e   :  { %2595 = vmatprep.subr.bf16.mxu1 %v5983_v45 }
 0x611   :  { %2596 = vmatpush1.bf16.msra.mxu1 %v5984_v14 }
 0x612   :  { %2597 = vmatprep.subr.bf16.mxu1 %v5985_v36 }
 0x615   :  { %2598 = vmatpush1.bf16.msra.mxu1 %v5986_v38 }
 0x616   :  { %2599 = vmatprep.subr.bf16.mxu1 %v5987_v59  ;;  %v2428_v59 = vld [vmem:[#allocation2 + $0x4] ss:$8 sm:$0xf] }
 0x617   :  { %v2430_v43 = vor.u32 %v2429_v27, %v2428_v59 }
 0x619   :  { %2600 = vmatpush1.bf16.msra.mxu1 %v5988_v24 }
 0x61a   :  { %2752 = vmatprep.subr.bf16.mxu1 %v5989_v47 }
 0x66f   :  { %v2338_v10 = vpop.f32.mrb[28].mxu1  ;;  %v2379_v28 = vpop.f32.mrb[32].mxu0 }
 0x670   :  { %v2340_v1 = vpop.f32.mrb[29].mxu1  ;;  %v2381_v55 = vpop.f32.mrb[33].mxu0 }
 0x671   :  { %v2433_v30 = vcombine.low %v2338_v10, %v2340_v1  ;;  %v2461_v15 = vcombine.low %v2379_v28, %v2381_v55  ;;  %v2342_v11 = vpop.f32.mrb[30].mxu1  ;;  %v2383_v45 = vpop.f32.mrb[34].mxu0  ;;  %v2457_v1 = vrot.slane %v2430_v43, 2 }
 0x672   :  { %v2343_v44 = vpop.f32.mrb[31].mxu1  ;;  %v2384_v14 = vpop.f32.mrb[35].mxu0 }
 0x673   :  { %v2440_v36 = vrot.slane %v2433_v30, %v4525_v19  ;;  %v2468_v47 = vrot.slane %v2461_v15, %v4525_v19 }
 0x675   :  { %v2447_v38 = vrot.slane %v2440_v36, %v4525_v19  ;;  %v2475_v25 = vrot.slane %v2468_v47, %v4525_v19  ;;  %v2505_v47 = vrot.slane %v2430_v43, 4 }
 0x677   :  { %v2449_v24 = vadd.f32 %v2447_v38, %v2430_v43  ;;  %v2477_v28 = vadd.f32 %v2475_v25, %v2457_v1 }
 0x679   :  { %v3403_v32 = vmul.f32 -1.442695, %v2449_v24  ;;  %v3404_v55 = vmul.f32 -1.442695, %v2477_v28 }
 0x67b   :  { %3746 = vpow2.f32 %v3403_v32 }
 0x67c   :  { %3748 = vpow2.f32 %v3404_v55 }
 0x685   :  { %v3747_v11 = vpop.eup %3746 }
 0x686   :  { %v2453_v44 = vadd.f32 1.0, %v3747_v11  ;;  %v3749_v36 = vpop.eup %3748 }
 0x687   :  { %v2481_v1 = vadd.f32 1.0, %v3749_v36  ;;  %v5249_v36 = vld [vmem:[#allocation8 + $0x60] ss:$24 sps:$4 sm:$0xff]  }
 0x688   :  { %3750 = vrcp.f32 %v2453_v44 }
 0x692   :  { %v3751_v25 = vpop.eup %3750 }
 0x6af   :  { %v2420_v30 = vpop.f32.mrb[32].mxu1 }
 0x6b0   :  { %v2484_v45 = vadd.f32 %v2420_v30, %v5846_v31  ;;  %v2422_v14 = vpop.f32.mrb[33].mxu1 }
 0x6b1   :  { %v2485_v27 = vadd.f32 %v2422_v14, %v4536_v9  ;;  %v2424_v59 = vpop.f32.mrb[34].mxu1 }
 0x6b2   :  { %v2425_v24 = vpop.f32.mrb[35].mxu1 }
 0x6b3   :  { %v2488_v32 = vcombine.low %v2484_v45, %v2485_v27  ;;  %v5236_v24 = vld [vmem:[#allocation8 + $0x34] ss:$24 sps:$4 sm:$0xff]  }
 0x6b5   :  { %v2495_v15 = vrot.slane %v2488_v32, %v4525_v19  ;;  %v5241_v32 = vld [vmem:[#allocation8 + $0x30] ss:$24 sps:$4 sm:$0xff]  }
 0x6b7   :  { %v2502_v38 = vrot.slane %v2495_v15, %v4525_v19  ;;  %v5244_v15 = vld [vmem:[#allocation8 + $0x64] ss:$24 sps:$4 sm:$0xff]  }
 0x6b9   :  { %v2504_v10 = vmul.f32 %v3751_v25, %v2502_v38  ;;  %v6006_v38 = vld [vmem:[#allocation23_spill] sm:$0xff]  ;;  %v6007_v25 = vld [vmem:[#allocation62_spill] sm:$0xff] }
 0x6bb   :  { %v2507_v28 = vadd.f32 %v2505_v47, %v2504_v10  ;;  %v6008_v10 = vld [vmem:[#allocation24_spill] sm:$0xff]  ;;  %v6009_v47 = vld [vmem:[#allocation25_spill] sm:$0xff] }
 0x6bd   :  { %3752 = vtanh.f32 %v2507_v28  ;;  %v6011_v28 = vld [vmem:[#allocation27_spill] sm:$0xff] }
 0x6be   :  { %3754 = vrcp.f32 %v2481_v1  ;;  %v6010_v1 = vld [vmem:[#allocation26_spill] sm:$0xff] }
 0x6c7   :  { %v3753_v11 = vpop.eup %3752 }
 0x6c8   :  { %v2509_v55 = vsub.f32 %v5099_v41, %v3753_v11  ;;  %v3755_v44 = vpop.eup %3754  ;;  %v5233_v41 = vld [vmem:[#allocation8] ss:$24 sps:$4 sm:$0xff]  }
 0x6ca   :  { %v2510_v30 = vmul.f32 %v3755_v44, %v2509_v55  ;;  %v6013_v55 = vld [vmem:[#allocation30_spill] sm:$0xff]  ;;  %v6014_v44 = vld [vmem:[#allocation64_spill] sm:$0xff] }
 0x6cc   :  { %v5218_v14 = vadd.f32 %v3753_v11, %v2510_v30  ;;  %v6012_v11 = vld [vmem:[#allocation28_spill] sm:$0xff]  ;;  %v6015_v30 = vld [vmem:[#allocation66_spill] sm:$0xff] }
 0x6ce   :  { %2513 = vst.msk [vmem:[#allocation9 + $0x4] ss:$8 sm:$0x3] %vm4546_vm0, %v5218_v14  ;;  %v2523_v45 = vrot.slane %v5218_v14, %v5789_v26  ;;  %v2519_v43 = vrot.slane %v5218_v14, %v5788_v37 }
 0x6d0   :  { %v2527_v27 = vpack.c.bf16 %v2523_v45, %v2523_v45  ;;  %v5227_v59 = vpack.c.bf16 %v2519_v43, %v2519_v43  ;;  %v6016_v45 = vld [vmem:[#allocation68_spill] sm:$0xff] }
 0x6d1   :  { %v6017_v43 = vld [vmem:[#allocation16_spill] sm:$0xff] }
 0x6d2   :  { %2560 = vmatprep.mubr.bf16.mxu0 %v2527_v27  ;;  %2601 = vmatprep.mubr.bf16.mxu1 %v2527_v27 }
 0x6d3   :  { %2561 = vmatmul.mubr.bf16.vlgmr.msra.gmra.mrb[36].mxu0 %v5227_v59  ;;  %2602 = vmatmul.mubr.bf16.vlgmr.msra.gmra.mrb[36].mxu1 %v5227_v59 }
 0x6d4   :  { %2611 = vmatpush1.bf16.msra.mxu0 %v4875_v40  ;;  %2642 = vmatprep.mubr.bf16.mxu0 %v2527_v27  ;;  %v6018_v27 = vld [vmem:[#allocation29_spill] sm:$0xff] }
 0x6d5   :  { %2612 = vmatprep.subr.bf16.mxu0 %v4878_v57  ;;  %2753 = vmatpush1.bf16.msra.mxu1 %v5233_v41 }
 0x6d6   :  { %2754 = vmatprep.subr.bf16.mxu1 %v5236_v24 }
 0x6d8   :  { %2613 = vmatpush1.bf16.msra.mxu0 %v4883_v61 }
 0x6d9   :  { %2614 = vmatprep.subr.bf16.mxu0 %v4886_v35  ;;  %2755 = vmatpush1.bf16.msra.mxu1 %v5241_v32 }
 0x6da   :  { %2756 = vmatprep.subr.bf16.mxu1 %v5244_v15 }
 0x6dc   :  { %2615 = vmatpush1.bf16.msra.mxu0 %v4891_v50 }
 0x6dd   :  { %2616 = vmatprep.subr.bf16.mxu0 %v4894_v29  ;;  %2757 = vmatpush1.bf16.msra.mxu1 %v5249_v36 }
 0x6de   :  { %2758 = vmatprep.subr.bf16.mxu1 %v4705_v23  ;;  %v5990_v23 = vld [vmem:[#allocation19_spill] sm:$0xff] }
 0x6e0   :  { %2617 = vmatpush1.bf16.msra.mxu0 %v4899_v33 }
 0x6e1   :  { %2618 = vmatprep.subr.bf16.mxu0 %v4902_v53  ;;  %2759 = vmatpush1.bf16.msra.mxu1 %v4710_v46  ;;  %v5991_v46 = vld [vmem:[#allocation46_spill] sm:$0xff] }
 0x6e2   :  { %2760 = vmatprep.subr.bf16.mxu1 %v4713_v54  ;;  %v5992_v54 = vld [vmem:[#allocation48_spill] sm:$0xff] }
 0x6e4   :  { %2619 = vmatpush1.bf16.msra.mxu0 %v4907_v49 }
 0x6e5   :  { %2620 = vmatprep.subr.bf16.mxu0 %v4910_v51  ;;  %2761 = vmatpush1.bf16.msra.mxu1 %v4718_v58  ;;  %v5993_v58 = vld [vmem:[#allocation20_spill] sm:$0xff] }
 0x6e6   :  { %2762 = vmatprep.subr.bf16.mxu1 %v4721_v8  ;;  %v5994_v8 = vld [vmem:[#allocation21_spill] sm:$0xff] }
 0x6e8   :  { %2621 = vmatpush1.bf16.msra.mxu0 %v4915_v63 }
 0x6e9   :  { %2622 = vmatprep.subr.bf16.mxu0 %v4918_v7  ;;  %2763 = vmatpush1.bf16.msra.mxu1 %v4726_v0  ;;  %v5995_v0 = vld [vmem:[#allocation50_spill] sm:$0xff] }
 0x6ea   :  { %2764 = vmatprep.subr.bf16.mxu1 %v4729_v12  ;;  %v5996_v12 = vld [vmem:[#allocation52_spill] sm:$0xff] }
 0x6ec   :  { %2623 = vmatpush1.bf16.msra.mxu0 %v4923_v39 }
 0x6ed   :  { %2624 = vmatprep.subr.bf16.mxu0 %v4926_v21  ;;  %2765 = vmatpush1.bf16.msra.mxu1 %v4734_v6  ;;  %v5997_v6 = vld [vmem:[#allocation22_spill] sm:$0xff] }
 0x6ee   :  { %2766 = vmatprep.subr.bf16.mxu1 %v4737_v4  ;;  %v5998_v4 = vld [vmem:[#allocation13_spill] sm:$0xff] }
 0x6f0   :  { %2625 = vmatpush1.bf16.msra.mxu0 %v4931_v13 }
 0x6f1   :  { %2626 = vmatprep.subr.bf16.mxu0 %v5932_v18  ;;  %2767 = vmatpush1.bf16.msra.mxu1 %v4742_v60  ;;  %v5999_v60 = vld [vmem:[#allocation54_spill] sm:$0xff] }
 0x6f2   :  { %2768 = vmatprep.subr.bf16.mxu1 %v4745_v34  ;;  %v6000_v34 = vld [vmem:[#allocation56_spill] sm:$0xff] }
 0x6f4   :  { %2627 = vmatpush1.bf16.msra.mxu0 %v5933_v52 }
 0x6f5   :  { %2628 = vmatprep.subr.bf16.mxu0 %v5934_v2  ;;  %2769 = vmatpush1.bf16.msra.mxu1 %v4750_v48  ;;  %v6001_v48 = vld [vmem:[#allocation18_spill] sm:$0xff] }
 0x6f6   :  { %2770 = vmatprep.subr.bf16.mxu1 %v4753_v42  ;;  %v6002_v42 = vld [vmem:[#allocation14_spill] sm:$0xff] }
 0x6f8   :  { %2629 = vmatpush1.bf16.msra.mxu0 %v5935_v16 }
 0x6f9   :  { %2630 = vmatprep.subr.bf16.mxu0 %v5936_v62  ;;  %2771 = vmatpush1.bf16.msra.mxu1 %v4758_v17  ;;  %v6003_v17 = vld [vmem:[#allocation58_spill] sm:$0xff] }
 0x6fa   :  { %2772 = vmatprep.subr.bf16.mxu1 %v4761_v20  ;;  %v6004_v20 = vld [vmem:[#allocation60_spill] sm:$0xff] }
 0x6fc   :  { %2631 = vmatpush1.bf16.msra.mxu0 %v5937_v5 }
 0x6fd   :  { %2632 = vmatprep.subr.bf16.mxu0 %v5938_v3  ;;  %2773 = vmatpush1.bf16.msra.mxu1 %v4766_v22  ;;  %v6005_v22 = vld [vmem:[#allocation15_spill] sm:$0xff] }
 0x6fe   :  { %2774 = vmatprep.subr.bf16.mxu1 %v5990_v23  ;;  %v6019_v23 = vld [vmem:[#allocation31_spill] sm:$0xff] }
 0x700   :  { %2633 = vmatpush1.bf16.msra.mxu0 %v5991_v46 }
 0x701   :  { %2634 = vmatprep.subr.bf16.mxu0 %v5992_v54  ;;  %2775 = vmatpush1.bf16.msra.mxu1 %v5993_v58  ;;  %v6020_v58 = vld [vmem:[#allocation33_spill] sm:$0xff] }
 0x702   :  { %2776 = vmatprep.subr.bf16.mxu1 %v5994_v8  ;;  %v6022_v8 = vld [vmem:[#allocation37_spill] sm:$0xff] }
 0x704   :  { %2635 = vmatpush1.bf16.msra.mxu0 %v5995_v0 }
 0x705   :  { %2636 = vmatprep.subr.bf16.mxu0 %v5996_v12  ;;  %2777 = vmatpush1.bf16.msra.mxu1 %v5997_v6  ;;  %v6023_v6 = vld [vmem:[#allocation39_spill] sm:$0xff] }
 0x706   :  { %2778 = vmatprep.subr.bf16.mxu1 %v5998_v4  ;;  %v6024_v4 = vld [vmem:[#allocation41_spill] sm:$0xff] }
 0x708   :  { %2637 = vmatpush1.bf16.msra.mxu0 %v5999_v60 }
 0x709   :  { %2638 = vmatprep.subr.bf16.mxu0 %v6000_v34  ;;  %2779 = vmatpush1.bf16.msra.mxu1 %v6001_v48  ;;  %v6025_v48 = vld [vmem:[#allocation43_spill] sm:$0xff] }
 0x70a   :  { %2780 = vmatprep.subr.bf16.mxu1 %v6002_v42  ;;  %v6026_v42 = vld [vmem:[#allocation45_spill] sm:$0xff] }
 0x70c   :  { %2639 = vmatpush1.bf16.msra.mxu0 %v6003_v17 }
 0x70d   :  { %2640 = vmatprep.subr.bf16.mxu0 %v6004_v20  ;;  %2781 = vmatpush1.bf16.msra.mxu1 %v6005_v22  ;;  %v6027_v22 = vld [vmem:[#allocation47_spill] sm:$0xff] }
 0x70e   :  { %2782 = vmatprep.subr.bf16.mxu1 %v6006_v38  ;;  %v6028_v38 = vld [vmem:[#allocation49_spill] sm:$0xff] }
 0x710   :  { %2641 = vmatpush1.bf16.msra.mxu0 %v6007_v25 }
 0x711   :  { %2793 = vmatprep.subr.bf16.mxu0 %v6008_v10  ;;  %2783 = vmatpush1.bf16.msra.mxu1 %v6009_v47  ;;  %v6029_v10 = vld [vmem:[#allocation51_spill] sm:$0xff]  ;;  %v6030_v47 = vld [vmem:[#allocation53_spill] sm:$0xff] }
 0x712   :  { %2834 = vmatprep.subr.bf16.mxu1 %v6010_v1  ;;  %v6031_v1 = vld [vmem:[#allocation55_spill] sm:$0xff] }
 0x713   :  { %2643 = vmatmul.mubr.bf16.vlgmr.msra.gmra.mrb[40].mxu0 %v5227_v59  ;;  %v6021_v59 = vld [vmem:[#allocation35_spill] sm:$0xff] }
 0x714   :  { %2794 = vmatpush1.bf16.msra.mxu0 %v6011_v28  ;;  %v6032_v28 = vld [vmem:[#allocation57_spill] sm:$0xff] }
 0x715   :  { %2795 = vmatprep.subr.bf16.mxu0 %v6012_v11  ;;  %v6033_v11 = vld [vmem:[#allocation59_spill] sm:$0xff] }
 0x718   :  { %2796 = vmatpush1.bf16.msra.mxu0 %v6013_v55  ;;  %v6034_v55 = vld [vmem:[#allocation61_spill] sm:$0xff] }
 0x719   :  { %2797 = vmatprep.subr.bf16.mxu0 %v6014_v44 }
 0x71c   :  { %2798 = vmatpush1.bf16.msra.mxu0 %v6015_v30 }
 0x71d   :  { %2799 = vmatprep.subr.bf16.mxu0 %v6016_v45 }
 0x720   :  { %2800 = vmatpush1.bf16.msra.mxu0 %v6017_v43 }
 0x721   :  { %2801 = vmatprep.subr.bf16.mxu0 %v6018_v27 }
 0x724   :  { %2802 = vmatpush1.bf16.msra.mxu0 %v6019_v23  ;;  %v2653_v23 = vld [vmem:[#allocation2 + $0x5] ss:$8 sm:$0x30] }
 0x725   :  { %2803 = vmatprep.subr.bf16.mxu0 %v6020_v58 }
 0x728   :  { %2804 = vmatpush1.bf16.msra.mxu0 %v6021_v59 }
 0x729   :  { %2805 = vmatprep.subr.bf16.mxu0 %v6022_v8 }
 0x72c   :  { %2806 = vmatpush1.bf16.msra.mxu0 %v6023_v6 }
 0x72d   :  { %2807 = vmatprep.subr.bf16.mxu0 %v6024_v4  ;;  %v6035_v4 = vld [vmem:[#allocation63_spill] sm:$0xff] }
 0x730   :  { %2808 = vmatpush1.bf16.msra.mxu0 %v6025_v48  ;;  %v6036_v48 = vld [vmem:[#allocation65_spill] sm:$0xff] }
 0x731   :  { %2809 = vmatprep.subr.bf16.mxu0 %v6026_v42  ;;  %v6037_v42 = vld [vmem:[#allocation67_spill] sm:$0xff] }
 0x734   :  { %2810 = vmatpush1.bf16.msra.mxu0 %v6027_v22  ;;  %v6038_v22 = vld [vmem:[#allocation69_spill] sm:$0xff] }
 0x735   :  { %2811 = vmatprep.subr.bf16.mxu0 %v6028_v38  ;;  %v6039_v38 = vld [vmem:[#allocation70_spill] sm:$0xff] }
 0x738   :  { %2812 = vmatpush1.bf16.msra.mxu0 %v6029_v10  ;;  %v6040_v10 = vld [vmem:[#allocation71_spill] sm:$0xff] }
 0x739   :  { %2813 = vmatprep.subr.bf16.mxu0 %v6030_v47  ;;  %v6041_v47 = vld [vmem:[#allocation72_spill] sm:$0xff] }
 0x73c   :  { %2814 = vmatpush1.bf16.msra.mxu0 %v6031_v1  ;;  %v3887_v1 = vld [vmem:[#allocation8 + $0x4] ss:$24 sps:$4 sm:$0xff]  }
 0x73d   :  { %2815 = vmatprep.subr.bf16.mxu0 %v6032_v28 }
 0x740   :  { %2816 = vmatpush1.bf16.msra.mxu0 %v6033_v11 }
 0x741   :  { %2817 = vmatprep.subr.bf16.mxu0 %v6034_v55 }
 0x744   :  { %2818 = vmatpush1.bf16.msra.mxu0 %v6035_v4 }
 0x745   :  { %2819 = vmatprep.subr.bf16.mxu0 %v6036_v48 }
 0x748   :  { %2820 = vmatpush1.bf16.msra.mxu0 %v6037_v42 }
 0x749   :  { %2821 = vmatprep.subr.bf16.mxu0 %v6038_v22 }
 0x74c   :  { %2822 = vmatpush1.bf16.msra.mxu0 %v6039_v38 }
 0x74d   :  { %2823 = vmatprep.subr.bf16.mxu0 %v6040_v10  ;;  %v2652_v10 = vld [vmem:[#allocation2 + $0x5] ss:$8 sm:$0xf] }
 0x74e   :  { %v2654_v27 = vor.u32 %v2653_v23, %v2652_v10 }
 0x750   :  { %2824 = vmatpush1.bf16.msra.mxu0 %v6041_v47 }
 0x751   :  { %2976 = vmatprep.subr.bf16.mxu0 %v3887_v1 }
 0x7a6   :  { %v2562_v28 = vpop.f32.mrb[36].mxu0  ;;  %v2603_v11 = vpop.f32.mrb[36].mxu1 }
 0x7a7   :  { %v2564_v6 = vpop.f32.mrb[37].mxu0  ;;  %v2605_v55 = vpop.f32.mrb[37].mxu1 }
 0x7a8   :  { %v2657_v8 = vcombine.low %v2562_v28, %v2564_v6  ;;  %v2685_v4 = vcombine.low %v2603_v11, %v2605_v55  ;;  %v2566_v59 = vpop.f32.mrb[38].mxu0  ;;  %v2607_v48 = vpop.f32.mrb[38].mxu1  ;;  %v2681_v6 = vrot.slane %v2654_v27, 2 }
 0x7a9   :  { %v2567_v58 = vpop.f32.mrb[39].mxu0  ;;  %v2608_v42 = vpop.f32.mrb[39].mxu1 }
 0x7aa   :  { %v2664_v22 = vrot.slane %v2657_v8, %v4525_v19  ;;  %v2692_v1 = vrot.slane %v2685_v4, %v4525_v19 }
 0x7ac   :  { %v2671_v38 = vrot.slane %v2664_v22, %v4525_v19  ;;  %v2699_v45 = vrot.slane %v2692_v1, %v4525_v19  ;;  %v2729_v1 = vrot.slane %v2654_v27, 4 }
 0x7ae   :  { %v2673_v47 = vadd.f32 %v2671_v38, %v2654_v27  ;;  %v2701_v28 = vadd.f32 %v2699_v45, %v2681_v6 }
 0x7b0   :  { %v3405_v43 = vmul.f32 -1.442695, %v2673_v47  ;;  %v3406_v48 = vmul.f32 -1.442695, %v2701_v28 }
 0x7b2   :  { %3756 = vpow2.f32 %v3405_v43 }
 0x7b3   :  { %3758 = vpow2.f32 %v3406_v48 }
 0x7bc   :  { %v3757_v59 = vpop.eup %3756 }
 0x7bd   :  { %v2677_v58 = vadd.f32 1.0, %v3757_v59  ;;  %v3759_v47 = vpop.eup %3758 }
 0x7be   :  { %v2705_v6 = vadd.f32 1.0, %v3759_v47  ;;  %v6053_v47 = vld [vmem:[#allocation47_spill] sm:$0xff] }
 0x7bf   :  { %3760 = vrcp.f32 %v2677_v58 }
 0x7c9   :  { %v3761_v45 = vpop.eup %3760 }
 0x7e6   :  { %v2644_v8 = vpop.f32.mrb[40].mxu0 }
 0x7e7   :  { %v2708_v42 = vadd.f32 %v2644_v8, %v5846_v31  ;;  %v2646_v22 = vpop.f32.mrb[41].mxu0 }
 0x7e8   :  { %v2709_v23 = vadd.f32 %v2646_v22, %v4536_v9  ;;  %v2648_v38 = vpop.f32.mrb[42].mxu0 }
 0x7e9   :  { %v2649_v10 = vpop.f32.mrb[43].mxu0 }
 0x7ea   :  { %v2712_v43 = vcombine.low %v2708_v42, %v2709_v23  ;;  %v6048_v10 = vld [vmem:[#allocation37_spill] sm:$0xff] }
 0x7ec   :  { %v2719_v4 = vrot.slane %v2712_v43, %v4525_v19  ;;  %v6049_v43 = vld [vmem:[#allocation39_spill] sm:$0xff] }
 0x7ee   :  { %v2726_v11 = vrot.slane %v2719_v4, %v4525_v19  ;;  %v6050_v4 = vld [vmem:[#allocation41_spill] sm:$0xff] }
 0x7f0   :  { %v2728_v55 = vmul.f32 %v3761_v45, %v2726_v11  ;;  %v6054_v11 = vld [vmem:[#allocation49_spill] sm:$0xff]  ;;  %v6055_v45 = vld [vmem:[#allocation51_spill] sm:$0xff] }
 0x7f2   :  { %v2731_v28 = vadd.f32 %v2729_v1, %v2728_v55  ;;  %v6056_v55 = vld [vmem:[#allocation53_spill] sm:$0xff]  ;;  %v6057_v1 = vld [vmem:[#allocation55_spill] sm:$0xff] }
 0x7f4   :  { %3762 = vtanh.f32 %v2731_v28  ;;  %v6059_v28 = vld [vmem:[#allocation59_spill] sm:$0xff] }
 0x7f5   :  { %3764 = vrcp.f32 %v2705_v6  ;;  %v6058_v6 = vld [vmem:[#allocation57_spill] sm:$0xff] }
 0x7fe   :  { %v3763_v59 = vpop.eup %3762 }
 0x7ff   :  { %v2733_v48 = vsub.f32 %v5218_v14, %v3763_v59  ;;  %v3765_v58 = vpop.eup %3764  ;;  %v3910_v14 = vld [vmem:[#allocation8 + $0x2a4] ss:$24 sps:$4 sm:$0xff]  }
 0x801   :  { %v2734_v8 = vmul.f32 %v3765_v58, %v2733_v48  ;;  %v6061_v48 = vld [vmem:[#allocation63_spill] sm:$0xff]  ;;  %v6062_v58 = vld [vmem:[#allocation65_spill] sm:$0xff] }
 0x803   :  { %v5346_v22 = vadd.f32 %v3763_v59, %v2734_v8  ;;  %v6060_v59 = vld [vmem:[#allocation61_spill] sm:$0xff]  ;;  %v6063_v8 = vld [vmem:[#allocation67_spill] sm:$0xff] }
 0x805   :  { %2737 = vst.msk [vmem:[#allocation9 + $0x5] ss:$8 sm:$0x3] %vm4546_vm0, %v5346_v22  ;;  %v2747_v42 = vrot.slane %v5346_v22, %v5789_v26  ;;  %v2743_v27 = vrot.slane %v5346_v22, %v5788_v37 }
 0x807   :  { %v2751_v23 = vpack.c.bf16 %v2747_v42, %v2747_v42  ;;  %v5355_v38 = vpack.c.bf16 %v2743_v27, %v2743_v27  ;;  %v6064_v42 = vld [vmem:[#allocation69_spill] sm:$0xff]  ;;  %v6065_v27 = vld [vmem:[#allocation70_spill] sm:$0xff] }
 0x809   :  { %2784 = vmatprep.mubr.bf16.mxu1 %v2751_v23  ;;  %2825 = vmatprep.mubr.bf16.mxu0 %v2751_v23 }
 0x80a   :  { %2785 = vmatmul.mubr.bf16.vlgmr.msra.gmra.mrb[40].mxu1 %v5355_v38  ;;  %2826 = vmatmul.mubr.bf16.vlgmr.msra.gmra.mrb[44].mxu0 %v5355_v38 }
 0x80b   :  { %2835 = vmatpush1.bf16.msra.mxu1 %v4875_v40  ;;  %2866 = vmatprep.mubr.bf16.mxu1 %v2751_v23  ;;  %v3888_v40 = vld [vmem:[#allocation8 + $0x94] ss:$24 sps:$4 sm:$0xff]   ;;  %v6066_v23 = vld [vmem:[#allocation71_spill] sm:$0xff] }
 0x80c   :  { %2836 = vmatprep.subr.bf16.mxu1 %v4878_v57  ;;  %2977 = vmatpush1.bf16.msra.mxu0 %v5233_v41  ;;  %v3889_v57 = vld [vmem:[#allocation8 + $0x90] ss:$24 sps:$4 sm:$0xff]   ;;  %v3911_v41 = vld [vmem:[#allocation8 + $0x2a0] ss:$24 sps:$4 sm:$0xff]  }
 0x80d   :  { %2978 = vmatprep.subr.bf16.mxu0 %v5236_v24  ;;  %v3912_v24 = vld [vmem:[#allocation8 + $0x2d4] ss:$24 sps:$4 sm:$0xff]  }
 0x80f   :  { %2837 = vmatpush1.bf16.msra.mxu1 %v4883_v61  ;;  %v3890_v61 = vld [vmem:[#allocation8 + $0xc4] ss:$24 sps:$4 sm:$0xff]  }
 0x810   :  { %2838 = vmatprep.subr.bf16.mxu1 %v4886_v35  ;;  %2979 = vmatpush1.bf16.msra.mxu0 %v5241_v32  ;;  %v3891_v35 = vld [vmem:[#allocation8 + $0xc0] ss:$24 sps:$4 sm:$0xff]   ;;  %v3913_v32 = vld [vmem:[#allocation8 + $0xc] ss:$24 sps:$4 sm:$0xff]  }
 0x811   :  { %2980 = vmatprep.subr.bf16.mxu0 %v5244_v15  ;;  %v3914_v15 = vld [vmem:[#allocation8 + $0x2d0] ss:$24 sps:$4 sm:$0xff]  }
 0x813   :  { %2839 = vmatpush1.bf16.msra.mxu1 %v4891_v50  ;;  %v3892_v50 = vld [vmem:[#allocation8 + $0xf4] ss:$24 sps:$4 sm:$0xff]  }
 0x814   :  { %2840 = vmatprep.subr.bf16.mxu1 %v4894_v29  ;;  %2981 = vmatpush1.bf16.msra.mxu0 %v5249_v36  ;;  %v3893_v29 = vld [vmem:[#allocation8 + $0xf0] ss:$24 sps:$4 sm:$0xff]   ;;  %v3915_v36 = vld [vmem:[#allocation8 + $0x14] ss:$24 sps:$4 sm:$0xff]  }
 0x815   :  { %2982 = vmatprep.subr.bf16.mxu0 %v3888_v40 }
 0x817   :  { %2841 = vmatpush1.bf16.msra.mxu1 %v4899_v33  ;;  %v3894_v33 = vld [vmem:[#allocation8 + $0x124] ss:$24 sps:$4 sm:$0xff]  }
 0x818   :  { %2842 = vmatprep.subr.bf16.mxu1 %v4902_v53  ;;  %2983 = vmatpush1.bf16.msra.mxu0 %v3889_v57  ;;  %v3895_v53 = vld [vmem:[#allocation8 + $0x120] ss:$24 sps:$4 sm:$0xff]  }
 0x819   :  { %2984 = vmatprep.subr.bf16.mxu0 %v3890_v61 }
 0x81b   :  { %2843 = vmatpush1.bf16.msra.mxu1 %v4907_v49  ;;  %v3896_v49 = vld [vmem:[#allocation8 + $0x154] ss:$24 sps:$4 sm:$0xff]  }
 0x81c   :  { %2844 = vmatprep.subr.bf16.mxu1 %v4910_v51  ;;  %2985 = vmatpush1.bf16.msra.mxu0 %v3891_v35  ;;  %v3897_v51 = vld [vmem:[#allocation8 + $0x150] ss:$24 sps:$4 sm:$0xff]  }
 0x81d   :  { %2986 = vmatprep.subr.bf16.mxu0 %v3892_v50 }
 0x81f   :  { %2845 = vmatpush1.bf16.msra.mxu1 %v4915_v63  ;;  %v3898_v63 = vld [vmem:[#allocation8 + $0x184] ss:$24 sps:$4 sm:$0xff]  }
 0x820   :  { %2846 = vmatprep.subr.bf16.mxu1 %v4918_v7  ;;  %2987 = vmatpush1.bf16.msra.mxu0 %v3893_v29  ;;  %v3899_v7 = vld [vmem:[#allocation8 + $0x180] ss:$24 sps:$4 sm:$0xff]  }
 0x821   :  { %2988 = vmatprep.subr.bf16.mxu0 %v3894_v33 }
 0x823   :  { %2847 = vmatpush1.bf16.msra.mxu1 %v4923_v39  ;;  %v3900_v39 = vld [vmem:[#allocation8 + $0x1b4] ss:$24 sps:$4 sm:$0xff]  }
 0x824   :  { %2848 = vmatprep.subr.bf16.mxu1 %v4926_v21  ;;  %2989 = vmatpush1.bf16.msra.mxu0 %v3895_v53  ;;  %v3901_v21 = vld [vmem:[#allocation8 + $0x1b0] ss:$24 sps:$4 sm:$0xff]  }
 0x825   :  { %2990 = vmatprep.subr.bf16.mxu0 %v3896_v49 }
 0x827   :  { %2849 = vmatpush1.bf16.msra.mxu1 %v4931_v13  ;;  %v3902_v13 = vld [vmem:[#allocation8 + $0x1e4] ss:$24 sps:$4 sm:$0xff]  }
 0x828   :  { %2850 = vmatprep.subr.bf16.mxu1 %v5932_v18  ;;  %2991 = vmatpush1.bf16.msra.mxu0 %v3897_v51  ;;  %v3903_v18 = vld [vmem:[#allocation8 + $0x1e0] ss:$24 sps:$4 sm:$0xff]  }
 0x829   :  { %2992 = vmatprep.subr.bf16.mxu0 %v3898_v63 }
 0x82b   :  { %2851 = vmatpush1.bf16.msra.mxu1 %v5933_v52  ;;  %v3904_v52 = vld [vmem:[#allocation8 + $0x214] ss:$24 sps:$4 sm:$0xff]  }
 0x82c   :  { %2852 = vmatprep.subr.bf16.mxu1 %v5934_v2  ;;  %2993 = vmatpush1.bf16.msra.mxu0 %v3899_v7  ;;  %v3905_v2 = vld [vmem:[#allocation8 + $0x210] ss:$24 sps:$4 sm:$0xff]   ;;  %v2877_v7 = vld [vmem:[#allocation2 + $0x6] ss:$8 sm:$0x30] }
 0x82d   :  { %2994 = vmatprep.subr.bf16.mxu0 %v3900_v39 }
 0x82f   :  { %2853 = vmatpush1.bf16.msra.mxu1 %v5935_v16  ;;  %v3906_v16 = vld [vmem:[#allocation8 + $0x244] ss:$24 sps:$4 sm:$0xff]  }
 0x830   :  { %2854 = vmatprep.subr.bf16.mxu1 %v5936_v62  ;;  %2995 = vmatpush1.bf16.msra.mxu0 %v3901_v21  ;;  %v3907_v62 = vld [vmem:[#allocation8 + $0x240] ss:$24 sps:$4 sm:$0xff]   ;;  %v2876_v21 = vld [vmem:[#allocation2 + $0x6] ss:$8 sm:$0xf] }
 0x831   :  { %2996 = vmatprep.subr.bf16.mxu0 %v3902_v13  ;;  %v2878_v13 = vor.u32 %v2877_v7, %v2876_v21  ;;  %v3942_v7 = vld [vmem:[#allocation8 + $0x254] ss:$24 sps:$4 sm:$0xff]   ;;  %v3944_v21 = vld [vmem:[#allocation8 + $0x284] ss:$24 sps:$4 sm:$0xff]  }
 0x833   :  { %2855 = vmatpush1.bf16.msra.mxu1 %v5937_v5  ;;  %v3908_v5 = vld [vmem:[#allocation8 + $0x274] ss:$24 sps:$4 sm:$0xff]  }
 0x834   :  { %2856 = vmatprep.subr.bf16.mxu1 %v5938_v3  ;;  %2997 = vmatpush1.bf16.msra.mxu0 %v3903_v18  ;;  %v3909_v3 = vld [vmem:[#allocation8 + $0x270] ss:$24 sps:$4 sm:$0xff]  }
 0x835   :  { %2998 = vmatprep.subr.bf16.mxu0 %v3904_v52 }
 0x837   :  { %2857 = vmatpush1.bf16.msra.mxu1 %v5991_v46  ;;  %v3916_v46 = vld [vmem:[#allocation8 + $0x8] ss:$24 sps:$4 sm:$0xff]  }
 0x838   :  { %2858 = vmatprep.subr.bf16.mxu1 %v5992_v54  ;;  %2999 = vmatpush1.bf16.msra.mxu0 %v3905_v2  ;;  %v3917_v54 = vld [vmem:[#allocation8 + $0x3c] ss:$24 sps:$4 sm:$0xff]  }
 0x839   :  { %3000 = vmatprep.subr.bf16.mxu0 %v3906_v16 }
 0x83b   :  { %2859 = vmatpush1.bf16.msra.mxu1 %v5995_v0  ;;  %v3918_v0 = vld [vmem:[#allocation8 + $0x38] ss:$24 sps:$4 sm:$0xff]  }
 0x83c   :  { %2860 = vmatprep.subr.bf16.mxu1 %v5996_v12  ;;  %3001 = vmatpush1.bf16.msra.mxu0 %v3907_v62  ;;  %v6042_v12 = vld [vmem:[#allocation68_spill] sm:$0xff]  ;;  %v2905_v62 = vrot.slane %v2878_v13, 2 }
 0x83d   :  { %3002 = vmatprep.subr.bf16.mxu0 %v3908_v5 }
 0x83f   :  { %2861 = vmatpush1.bf16.msra.mxu1 %v5999_v60  ;;  %v6043_v60 = vld [vmem:[#allocation16_spill] sm:$0xff] }
 0x840   :  { %2862 = vmatprep.subr.bf16.mxu1 %v6000_v34  ;;  %3003 = vmatpush1.bf16.msra.mxu0 %v3909_v3  ;;  %v6044_v34 = vld [vmem:[#allocation29_spill] sm:$0xff] }
 0x841   :  { %3004 = vmatprep.subr.bf16.mxu0 %v3910_v14 }
 0x843   :  { %2863 = vmatpush1.bf16.msra.mxu1 %v6003_v17  ;;  %v6045_v17 = vld [vmem:[#allocation31_spill] sm:$0xff] }
 0x844   :  { %2864 = vmatprep.subr.bf16.mxu1 %v6004_v20  ;;  %3005 = vmatpush1.bf16.msra.mxu0 %v3911_v41  ;;  %v6046_v20 = vld [vmem:[#allocation33_spill] sm:$0xff] }
 0x845   :  { %3006 = vmatprep.subr.bf16.mxu0 %v3912_v24 }
 0x847   :  { %2865 = vmatpush1.bf16.msra.mxu1 %v6007_v25  ;;  %v6047_v25 = vld [vmem:[#allocation35_spill] sm:$0xff] }
 0x848   :  { %3017 = vmatprep.subr.bf16.mxu1 %v3913_v32  ;;  %3007 = vmatpush1.bf16.msra.mxu0 %v3914_v15 }
 0x849   :  { %3058 = vmatprep.subr.bf16.mxu0 %v3915_v36 }
 0x84a   :  { %2867 = vmatmul.mubr.bf16.vlgmr.msra.gmra.mrb[44].mxu1 %v5355_v38  ;;  %v6067_v38 = vld [vmem:[#allocation72_spill] sm:$0xff] }
 0x84b   :  { %3018 = vmatpush1.bf16.msra.mxu1 %v3916_v46 }
 0x84c   :  { %3019 = vmatprep.subr.bf16.mxu1 %v3917_v54 }
 0x84f   :  { %3020 = vmatpush1.bf16.msra.mxu1 %v3918_v0 }
 0x850   :  { %3021 = vmatprep.subr.bf16.mxu1 %v6014_v44  ;;  %v6051_v44 = vld [vmem:[#allocation43_spill] sm:$0xff] }
 0x853   :  { %3022 = vmatpush1.bf16.msra.mxu1 %v6015_v30  ;;  %v6052_v30 = vld [vmem:[#allocation45_spill] sm:$0xff] }
 0x854   :  { %3023 = vmatprep.subr.bf16.mxu1 %v6042_v12 }
 0x857   :  { %3024 = vmatpush1.bf16.msra.mxu1 %v6043_v60 }
 0x858   :  { %3025 = vmatprep.subr.bf16.mxu1 %v6044_v34 }
 0x85b   :  { %3026 = vmatpush1.bf16.msra.mxu1 %v6045_v17 }
 0x85c   :  { %3027 = vmatprep.subr.bf16.mxu1 %v6046_v20 }
 0x85f   :  { %3028 = vmatpush1.bf16.msra.mxu1 %v6047_v25  ;;  %v2953_v25 = vrot.slane %v2878_v13, 4 }
 0x860   :  { %3029 = vmatprep.subr.bf16.mxu1 %v6048_v10 }
 0x863   :  { %3030 = vmatpush1.bf16.msra.mxu1 %v6049_v43 }
 0x864   :  { %3031 = vmatprep.subr.bf16.mxu1 %v6050_v4 }
 0x867   :  { %3032 = vmatpush1.bf16.msra.mxu1 %v6051_v44 }
 0x868   :  { %3033 = vmatprep.subr.bf16.mxu1 %v6052_v30 }
 0x86b   :  { %3034 = vmatpush1.bf16.msra.mxu1 %v6053_v47 }
 0x86c   :  { %3035 = vmatprep.subr.bf16.mxu1 %v6054_v11 }
 0x86f   :  { %3036 = vmatpush1.bf16.msra.mxu1 %v6055_v45 }
 0x870   :  { %3037 = vmatprep.subr.bf16.mxu1 %v6056_v55 }
 0x873   :  { %3038 = vmatpush1.bf16.msra.mxu1 %v6057_v1 }
 0x874   :  { %3039 = vmatprep.subr.bf16.mxu1 %v6058_v6 }
 0x877   :  { %3040 = vmatpush1.bf16.msra.mxu1 %v6059_v28  ;;  %v3920_v28 = vld [vmem:[#allocation8 + $0x44] ss:$24 sps:$4 sm:$0xff]  }
 0x878   :  { %3041 = vmatprep.subr.bf16.mxu1 %v6060_v59  ;;  %v3921_v59 = vld [vmem:[#allocation8 + $0x40] ss:$24 sps:$4 sm:$0xff]  }
 0x87b   :  { %3042 = vmatpush1.bf16.msra.mxu1 %v6061_v48  ;;  %v3923_v48 = vld [vmem:[#allocation8 + $0x70] ss:$24 sps:$4 sm:$0xff]  }
 0x87c   :  { %3043 = vmatprep.subr.bf16.mxu1 %v6062_v58  ;;  %v3925_v58 = vld [vmem:[#allocation8 + $0xa0] ss:$24 sps:$4 sm:$0xff]  }
 0x87f   :  { %3044 = vmatpush1.bf16.msra.mxu1 %v6063_v8  ;;  %v3926_v8 = vld [vmem:[#allocation8 + $0xd4] ss:$24 sps:$4 sm:$0xff]  }
 0x880   :  { %3045 = vmatprep.subr.bf16.mxu1 %v6064_v42  ;;  %v3927_v42 = vld [vmem:[#allocation8 + $0xd0] ss:$24 sps:$4 sm:$0xff]  }
 0x883   :  { %3046 = vmatpush1.bf16.msra.mxu1 %v6065_v27  ;;  %v3928_v27 = vld [vmem:[#allocation8 + $0x104] ss:$24 sps:$4 sm:$0xff]  }
 0x884   :  { %3047 = vmatprep.subr.bf16.mxu1 %v6066_v23  ;;  %v3929_v23 = vld [vmem:[#allocation8 + $0x100] ss:$24 sps:$4 sm:$0xff]  }
 0x887   :  { %3048 = vmatpush1.bf16.msra.mxu1 %v6067_v38  ;;  %v3930_v38 = vld [vmem:[#allocation8 + $0x134] ss:$24 sps:$4 sm:$0xff]  }
 0x8dd   :  { %v2786_v40 = vpop.f32.mrb[40].mxu1  ;;  %v2827_v57 = vpop.f32.mrb[44].mxu0 }
 0x8de   :  { %v2788_v61 = vpop.f32.mrb[41].mxu1  ;;  %v2829_v35 = vpop.f32.mrb[45].mxu0 }
 0x8df   :  { %v2881_v50 = vcombine.low %v2786_v40, %v2788_v61  ;;  %v2909_v29 = vcombine.low %v2827_v57, %v2829_v35  ;;  %v2790_v33 = vpop.f32.mrb[42].mxu1  ;;  %v2831_v53 = vpop.f32.mrb[46].mxu0  ;;  %v3931_v40 = vld [vmem:[#allocation8 + $0x130] ss:$24 sps:$4 sm:$0xff]   ;;  %v3932_v57 = vld [vmem:[#allocation8 + $0x164] ss:$24 sps:$4 sm:$0xff]  }
 0x8e0   :  { %v2791_v49 = vpop.f32.mrb[43].mxu1  ;;  %v2832_v51 = vpop.f32.mrb[47].mxu0  ;;  %v3933_v61 = vld [vmem:[#allocation8 + $0x160] ss:$24 sps:$4 sm:$0xff]   ;;  %v3934_v35 = vld [vmem:[#allocation8 + $0x194] ss:$24 sps:$4 sm:$0xff]  }
 0x8e1   :  { %v2888_v63 = vrot.slane %v2881_v50, %v4525_v19  ;;  %v2916_v2 = vrot.slane %v2909_v29, %v4525_v19  ;;  %v3935_v50 = vld [vmem:[#allocation8 + $0x190] ss:$24 sps:$4 sm:$0xff]   ;;  %v3936_v29 = vld [vmem:[#allocation8 + $0x1c4] ss:$24 sps:$4 sm:$0xff]   ;;  %v3937_v33 = vld [vmem:[#allocation8 + $0x1c0] ss:$24 sps:$4 sm:$0xff]  }
 0x8e2   :  { %v3938_v53 = vld [vmem:[#allocation8 + $0x1f4] ss:$24 sps:$4 sm:$0xff]   ;;  %v3939_v49 = vld [vmem:[#allocation8 + $0x1f0] ss:$24 sps:$4 sm:$0xff]   ;;  %v3940_v51 = vld [vmem:[#allocation8 + $0x224] ss:$24 sps:$4 sm:$0xff]  }
 0x8e3   :  { %v2895_v39 = vrot.slane %v2888_v63, %v4525_v19  ;;  %v2923_v16 = vrot.slane %v2916_v2, %v4525_v19  ;;  %v3941_v63 = vld [vmem:[#allocation8 + $0x220] ss:$24 sps:$4 sm:$0xff]   ;;  %v3948_v2 = vld [vmem:[#allocation8 + $0x2e4] ss:$24 sps:$4 sm:$0xff]  }
 0x8e5   :  { %v2897_v18 = vadd.f32 %v2895_v39, %v2878_v13  ;;  %v2925_v5 = vadd.f32 %v2923_v16, %v2905_v62  ;;  %v3943_v39 = vld [vmem:[#allocation8 + $0x250] ss:$24 sps:$4 sm:$0xff]   ;;  %v3945_v13 = vld [vmem:[#allocation8 + $0x280] ss:$24 sps:$4 sm:$0xff]  }
 0x8e6   :  { %v3949_v16 = vld [vmem:[#allocation8 + $0x2e0] ss:$24 sps:$4 sm:$0xff]  }
 0x8e7   :  { %v3407_v52 = vmul.f32 -1.442695, %v2897_v18  ;;  %v3408_v14 = vmul.f32 -1.442695, %v2925_v5  ;;  %v3946_v18 = vld [vmem:[#allocation8 + $0x2b4] ss:$24 sps:$4 sm:$0xff]  }
 0x8e9   :  { %3766 = vpow2.f32 %v3407_v52  ;;  %v3947_v52 = vld [vmem:[#allocation8 + $0x2b0] ss:$24 sps:$4 sm:$0xff]  }
 0x8ea   :  { %3768 = vpow2.f32 %v3408_v14 }
 0x8f3   :  { %v3767_v3 = vpop.eup %3766 }
 0x8f4   :  { %v2901_v41 = vadd.f32 1.0, %v3767_v3  ;;  %v3769_v60 = vpop.eup %3768 }
 0x8f5   :  { %v2929_v10 = vadd.f32 1.0, %v3769_v60  ;;  %v3100_v60 = vld [vmem:[#allocation2 + $0x7] ss:$8 sm:$0xf] }
 0x8f6   :  { %3770 = vrcp.f32 %v2901_v41 }
 0x900   :  { %v3771_v17 = vpop.eup %3770 }
 0x91d   :  { %v2868_v24 = vpop.f32.mrb[44].mxu1 }
 0x91e   :  { %v2932_v32 = vadd.f32 %v2868_v24, %v5846_v31  ;;  %v2870_v15 = vpop.f32.mrb[45].mxu1 }
 0x91f   :  { %v2933_v36 = vadd.f32 %v2870_v15, %v4536_v9  ;;  %v2872_v46 = vpop.f32.mrb[46].mxu1 }
 0x920   :  { %v2873_v54 = vpop.f32.mrb[47].mxu1 }
 0x921   :  { %v2936_v0 = vcombine.low %v2932_v32, %v2933_v36 }
 0x923   :  { %v2943_v12 = vrot.slane %v2936_v0, %v4525_v19  ;;  %v3101_v0 = vld [vmem:[#allocation2 + $0x7] ss:$8 sm:$0x30] }
 0x925   :  { %v2950_v34 = vrot.slane %v2943_v12, %v4525_v19 }
 0x927   :  { %v2952_v20 = vmul.f32 %v3771_v17, %v2950_v34  ;;  %v3102_v34 = vor.u32 %v3101_v0, %v3100_v60 }
 0x929   :  { %v2955_v43 = vadd.f32 %v2953_v25, %v2952_v20 }
 0x92b   :  { %3772 = vtanh.f32 %v2955_v43  ;;  %v3129_v43 = vrot.slane %v3102_v34, 2 }
 0x92c   :  { %3774 = vrcp.f32 %v2929_v10 }
 0x935   :  { %v3773_v4 = vpop.eup %3772 }
 0x936   :  { %v2957_v44 = vsub.f32 %v5346_v22, %v3773_v4  ;;  %v3775_v30 = vpop.eup %3774  ;;  %v3919_v22 = vld [vmem:[#allocation8 + $0x10] ss:$24 sps:$4 sm:$0xff]  }
 0x938   :  { %v2958_v47 = vmul.f32 %v3775_v30, %v2957_v44 }
 0x93a   :  { %v5433_v11 = vadd.f32 %v3773_v4, %v2958_v47 }
 0x93c   :  { %2961 = vst.msk [vmem:[#allocation9 + $0x6] ss:$8 sm:$0x3] %vm4546_vm0, %v5433_v11  ;;  %v2971_v45 = vrot.slane %v5433_v11, %v5789_v26  ;;  %v2967_v55 = vrot.slane %v5433_v11, %v5788_v37  ;;  %v3922_v26 = vld [vmem:[#allocation8 + $0x74] ss:$24 sps:$4 sm:$0xff]  }
 0x93d   :  { %v3924_v37 = vld [vmem:[#allocation8 + $0xa4] ss:$24 sps:$4 sm:$0xff]  }
 0x93e   :  { %v2975_v1 = vpack.c.bf16 %v2971_v45, %v2971_v45  ;;  %v5442_v6 = vpack.c.bf16 %v2967_v55, %v2967_v55 }
 0x940   :  { %3008 = vmatprep.mubr.bf16.mxu0 %v2975_v1  ;;  %3049 = vmatprep.mubr.bf16.mxu1 %v2975_v1 }
 0x941   :  { %3009 = vmatmul.mubr.bf16.vlgmr.msra.gmra.mrb[48].mxu0 %v5442_v6  ;;  %3050 = vmatmul.mubr.bf16.vlgmr.msra.gmra.mrb[48].mxu1 %v5442_v6 }
 0x942   :  { %3059 = vmatpush1.bf16.msra.mxu0 %v3919_v22  ;;  %3090 = vmatprep.mubr.bf16.mxu0 %v2975_v1 }
 0x943   :  { %3060 = vmatprep.subr.bf16.mxu0 %v3920_v28 }
 0x946   :  { %3061 = vmatpush1.bf16.msra.mxu0 %v3921_v59 }
 0x947   :  { %3062 = vmatprep.subr.bf16.mxu0 %v3922_v26 }
 0x94a   :  { %3063 = vmatpush1.bf16.msra.mxu0 %v3923_v48 }
 0x94b   :  { %3064 = vmatprep.subr.bf16.mxu0 %v3924_v37 }
 0x94e   :  { %3065 = vmatpush1.bf16.msra.mxu0 %v3925_v58 }
 0x94f   :  { %3066 = vmatprep.subr.bf16.mxu0 %v3926_v8 }
 0x952   :  { %3067 = vmatpush1.bf16.msra.mxu0 %v3927_v42  ;;  %v3177_v42 = vrot.slane %v3102_v34, 4 }
 0x953   :  { %3068 = vmatprep.subr.bf16.mxu0 %v3928_v27 }
 0x956   :  { %3069 = vmatpush1.bf16.msra.mxu0 %v3929_v23 }
 0x957   :  { %3070 = vmatprep.subr.bf16.mxu0 %v3930_v38 }
 0x95a   :  { %3071 = vmatpush1.bf16.msra.mxu0 %v3931_v40 }
 0x95b   :  { %3072 = vmatprep.subr.bf16.mxu0 %v3932_v57 }
 0x95e   :  { %3073 = vmatpush1.bf16.msra.mxu0 %v3933_v61 }
 0x95f   :  { %3074 = vmatprep.subr.bf16.mxu0 %v3934_v35 }
 0x962   :  { %3075 = vmatpush1.bf16.msra.mxu0 %v3935_v50 }
 0x963   :  { %3076 = vmatprep.subr.bf16.mxu0 %v3936_v29 }
 0x966   :  { %3077 = vmatpush1.bf16.msra.mxu0 %v3937_v33 }
 0x967   :  { %3078 = vmatprep.subr.bf16.mxu0 %v3938_v53 }
 0x96a   :  { %3079 = vmatpush1.bf16.msra.mxu0 %v3939_v49 }
 0x96b   :  { %3080 = vmatprep.subr.bf16.mxu0 %v3940_v51 }
 0x96e   :  { %3081 = vmatpush1.bf16.msra.mxu0 %v3941_v63 }
 0x96f   :  { %3082 = vmatprep.subr.bf16.mxu0 %v3942_v7 }
 0x972   :  { %3083 = vmatpush1.bf16.msra.mxu0 %v3943_v39 }
 0x973   :  { %3084 = vmatprep.subr.bf16.mxu0 %v3944_v21 }
 0x976   :  { %3085 = vmatpush1.bf16.msra.mxu0 %v3945_v13 }
 0x977   :  { %3086 = vmatprep.subr.bf16.mxu0 %v3946_v18 }
 0x97a   :  { %3087 = vmatpush1.bf16.msra.mxu0 %v3947_v52 }
 0x97b   :  { %3088 = vmatprep.subr.bf16.mxu0 %v3948_v2 }
 0x97e   :  { %3089 = vmatpush1.bf16.msra.mxu0 %v3949_v16 }
 0x981   :  { %3091 = vmatmul.mubr.bf16.vlgmr.msra.gmra.mrb[52].mxu0 %v5442_v6 }
 0xa14   :  { %v3010_v62 = vpop.f32.mrb[48].mxu0  ;;  %v3051_v5 = vpop.f32.mrb[48].mxu1 }
 0xa15   :  { %v3012_v3 = vpop.f32.mrb[49].mxu0  ;;  %v3053_v14 = vpop.f32.mrb[49].mxu1 }
 0xa16   :  { %v3105_v41 = vcombine.low %v3010_v62, %v3012_v3  ;;  %v3133_v24 = vcombine.low %v3051_v5, %v3053_v14  ;;  %v3014_v32 = vpop.f32.mrb[50].mxu0  ;;  %v3055_v15 = vpop.f32.mrb[50].mxu1 }
 0xa17   :  { %v3015_v36 = vpop.f32.mrb[51].mxu0  ;;  %v3056_v46 = vpop.f32.mrb[51].mxu1 }
 0xa18   :  { %v3112_v54 = vrot.slane %v3105_v41, %v4525_v19  ;;  %v3140_v25 = vrot.slane %v3133_v24, %v4525_v19 }
 0xa1a   :  { %v3119_v12 = vrot.slane %v3112_v54, %v4525_v19  ;;  %v3147_v10 = vrot.slane %v3140_v25, %v4525_v19 }
 0xa1c   :  { %v3121_v17 = vadd.f32 %v3119_v12, %v3102_v34  ;;  %v3149_v4 = vadd.f32 %v3147_v10, %v3129_v43 }
 0xa1e   :  { %v3409_v20 = vmul.f32 -1.442695, %v3121_v17  ;;  %v3410_v30 = vmul.f32 -1.442695, %v3149_v4 }
 0xa20   :  { %3776 = vpow2.f32 %v3409_v20 }
 0xa21   :  { %3778 = vpow2.f32 %v3410_v30 }
 0xa2a   :  { %v3777_v44 = vpop.eup %3776 }
 0xa2b   :  { %v3125_v47 = vadd.f32 1.0, %v3777_v44  ;;  %v3779_v48 = vpop.eup %3778 }
 0xa2c   :  { %v3153_v27 = vadd.f32 1.0, %v3779_v48 }
 0xa2d   :  { %3780 = vrcp.f32 %v3125_v47 }
 0xa37   :  { %v3781_v58 = vpop.eup %3780 }
 0xa54   :  { %v3092_v45 = vpop.f32.mrb[52].mxu0 }
 0xa55   :  { %v3156_v55 = vadd.f32 %v3092_v45, %v5846_v31  ;;  %v3094_v1 = vpop.f32.mrb[53].mxu0 }
 0xa56   :  { %v3157_v6 = vadd.f32 %v3094_v1, %v4536_v9  ;;  %v3096_v22 = vpop.f32.mrb[54].mxu0 }
 0xa57   :  { %v3097_v28 = vpop.f32.mrb[55].mxu0 }
 0xa58   :  { %v3160_v59 = vcombine.low %v3156_v55, %v3157_v6 }
 0xa5a   :  { %v3167_v26 = vrot.slane %v3160_v59, %v4525_v19 }
 0xa5c   :  { %v3174_v37 = vrot.slane %v3167_v26, %v4525_v19 }
 0xa5e   :  { %v3176_v8 = vmul.f32 %v3781_v58, %v3174_v37 }
 0xa60   :  { %v3179_v23 = vadd.f32 %v3177_v42, %v3176_v8 }
 0xa62   :  { %3782 = vtanh.f32 %v3179_v23 }
 0xa63   :  { %3784 = vrcp.f32 %v3153_v27 }
 0xa6c   :  { %v3783_v38 = vpop.eup %3782 }
 0xa6d   :  { %v3181_v31 = vsub.f32 %v5433_v11, %v3783_v38  ;;  %v3785_v40 = vpop.eup %3784 }
 0xa6f   :  { %v3182_v9 = vmul.f32 %v3785_v40, %v3181_v31 }
 0xa71   :  { %v3183_v57 = vadd.f32 %v3783_v38, %v3182_v9 }
 0xa73   :  { %3185 = vst.msk [vmem:[#allocation9 + $0x7] ss:$8 sm:$0x3] %vm4546_vm0, %v3183_v57 }
 0xa74   :  { %4027 = shalt.err (!%p4024_p0)
}
 0xa75   :  { %s4028_s16 = scalar_lea.hbm %s5476_s6, 256 }
 0xa76   :  { %p4029_p1 = scmp.ne.s32.totalorder %s5476_s6, %s4028_s16  ;;  %p4032_p2 = scmp.lt.u32.totalorder %s4028_s16, %s5476_s6 }
 0xa78   :  { %p4034_p3 = pnand %p4032_p2, %p4029_p1 }
 0xa7a   :  { %4037 = shalt.err (!%p4034_p3)
}
 0xa7b   :  { %3196 = dma.vmem_to_hbm [thread:$0]  %s3194_s12, 256, %s5476_s6, [#allocation5]  }
 0xa7c   :  { %4042 = dma.done.wait [#allocation5], 256  }
 0xa7d   :  { %4043 = vsyncadd [#allocation5], 4294967040 }
 0xa7e   :  { %3200 = vsyncpa [#allocation4], 1 }
 0xa7f   :  { %3201 = vsyncpa [#allocation7], 1 }
 0xa80   :  { %3202 = vsyncpa [#allocation5], 1 }

</bundles_post_ra>
